<compile_context>
chip_gen: v7x
topology: tpu7x:2x2x1
jax: 0.10.0
libtpu: 0.0.40
codegen_flags: <defaults>
</compile_context>

<pallas_src>
import math
import jax
import jax.numpy as jnp
from jax.experimental import pallas as pl
from jax.experimental.pallas import tpu as pltpu

D_MODEL = 32
N_HEAD = 4
D_HEAD = D_MODEL // N_HEAD
D_FF = 64
N_LAYERS = 3          # n_layers_left = 3; encoder shared with right tower
LN_EPS = 1e-5
COMPUTE_DTYPE = jnp.bfloat16   # MXU operands; accumulation & elementwise in f32

_VEC_ROWS = 8          # bqkv, bo, g1, b1, bf1, bf2, g2, b2
_VEC_LANES = 128       # every bias/LN vector sits at lane 0 of its own row


def _layer_norm(x, gamma, beta):
    mu = jnp.mean(x, axis=-1, keepdims=True)
    var = jnp.mean(jnp.square(x - mu), axis=-1, keepdims=True)
    return (x - mu) * jax.lax.rsqrt(var + LN_EPS) * gamma + beta


def twin_encoder_kernel(x_ref, wqkv_ref, wo_ref, w1_ref, w2_ref, vec_ref,
                        out_ref):
    _, Bb, S, D = x_ref.shape
    n_layers = wqkv_ref.shape[0]
    d_ff = w1_ref.shape[2]
    n = 2 * Bb                      # sequences per block (left + right towers)
    R = n * S                       # matmul row dimension

    # (2, Bb, S, D) -> (R, D): left-tower rows first, then right tower.
    # Free contiguous reshape (shared encoder -> one pass for both towers).
    x2 = x_ref[...].reshape(R, D).astype(jnp.float32)

    for l in range(n_layers):                       # static, fully unrolled
        wqkv = wqkv_ref[l]                          # (D, 3D) bf16, scale folded
        wo = wo_ref[l]                              # (D, D)   bf16
        w1 = w1_ref[l]                              # (D, D_FF) bf16
        w2 = w2_ref[l]                              # (D_FF, D) bf16
        vec = vec_ref[l]                            # (8, 128) f32, lane-0 rows

        bqkv = vec[0:1, 0:3 * D]
        bo = vec[1:2, 0:D]
        g1 = vec[2:3, 0:D]
        b1 = vec[3:4, 0:D]
        bf1 = vec[4:5, 0:d_ff]
        bf2 = vec[5:6, 0:D]
        g2 = vec[6:7, 0:D]
        b2 = vec[7:8, 0:D]

        # --- multi-head self-attention (fused QKV, all heads batched) ---
        qkv = jnp.dot(x2.astype(COMPUTE_DTYPE), wqkv,
                      preferred_element_type=jnp.float32) + bqkv    # (R, 3D)
        q3 = qkv[:, 0:D].reshape(n, S, D)
        k3 = qkv[:, D:2 * D].reshape(n, S, D)
        v3 = qkv[:, 2 * D:3 * D].reshape(n, S, D)

        # Move heads to the batch (row) dim -> one batched einsum pair and one
        # fused softmax per layer instead of a per-head loop.
        qh = jnp.concatenate(
            [q3[:, :, h * D_HEAD:(h + 1) * D_HEAD] for h in range(N_HEAD)],
            axis=0).astype(COMPUTE_DTYPE)                        # (H*n, S, Dh)
        kh = jnp.concatenate(
            [k3[:, :, h * D_HEAD:(h + 1) * D_HEAD] for h in range(N_HEAD)],
            axis=0).astype(COMPUTE_DTYPE)
        vh = jnp.concatenate(
            [v3[:, :, h * D_HEAD:(h + 1) * D_HEAD] for h in range(N_HEAD)],
            axis=0).astype(COMPUTE_DTYPE)

        s_ = jnp.einsum('bqd,bkd->bqk', qh, kh,
                        preferred_element_type=jnp.float32)      # (H*n, S, S)
        s_ = s_ - jnp.max(s_, axis=-1, keepdims=True)
        p = jnp.exp(s_)
        p = p * pl.reciprocal(jnp.sum(p, axis=-1, keepdims=True), approx=True)
        ao = jnp.einsum('bqk,bkd->bqd', p.astype(COMPUTE_DTYPE), vh,
                        preferred_element_type=jnp.float32)      # (H*n, S, Dh)

        ao = ao.reshape(N_HEAD, n, S, D_HEAD)                    # free row split
        ao = jnp.concatenate([ao[h] for h in range(N_HEAD)],
                             axis=-1)                            # (n, S, D)
        attn = jnp.dot(ao.reshape(R, D).astype(COMPUTE_DTYPE), wo,
                       preferred_element_type=jnp.float32) + bo
        x2 = _layer_norm(x2 + attn, g1, b1)

        # --- position-wise feed-forward ---
        h1 = jnp.dot(x2.astype(COMPUTE_DTYPE), w1,
                     preferred_element_type=jnp.float32) + bf1
        h1 = jnp.maximum(h1, 0.0)
        ffn = jnp.dot(h1.astype(COMPUTE_DTYPE), w2,
                      preferred_element_type=jnp.float32) + bf2
        x2 = _layer_norm(x2 + ffn, g2, b2)

    # Epilogue: CONCAT combine + torch.flatten(-2, -1) done in-kernel so the
    # store stays lane-dense (S*2*D = 512 lanes): one left/right lane concat
    # plus one interleave concat (was 16 lane-concats before).
    y = x2.reshape(2, Bb, S, D)
    lr = jnp.concatenate([y[0], y[1]], axis=-1)                  # (Bb, S, 2D)
    out_ref[...] = jnp.concatenate(
        [lr[:, s, :] for s in range(S)], axis=-1).astype(out_ref.dtype)


def _choose_batch_block(B, S, target_rows=512, min_rows=128):
    # Bb must divide B; output block second-minor dim needs Bb % 8 == 0 or
    # Bb == B.  Prefer >= 2 grid steps (both v7x TensorCores busy) as long as
    # each block still carries >= min_rows matmul rows, then the largest block
    # with 2*Bb*S <= target_rows (fills the MXU row tile on v6e/v7x).
    candidates = [bb for bb in range(1, B + 1)
                  if B % bb == 0 and (bb % 8 == 0 or bb == B)]
    multi = [bb for bb in candidates
             if B // bb >= 2 and 2 * bb * S >= min_rows]
    pool = multi if multi else candidates
    fitting = [bb for bb in pool if 2 * bb * S <= target_rows]
    return max(fitting) if fitting else min(pool)


def _vec_row(v, width=_VEC_LANES):
    v = jnp.asarray(v, jnp.float32).reshape(1, -1)
    return jnp.pad(v, ((0, 0), (0, width - v.shape[1])))


def pack_params(layer_params):
    """Pack per-layer params into a few slabs.

    - attention scale folded into Wq / bq,
    - matmul weights pre-cast to bf16 (halves weight DMA, no per-step casts),
    - biases / LayerNorm vectors kept in f32, one per sublane row at lane 0.
    """
    scale = 1.0 / math.sqrt(D_HEAD)
    wqkv, wo, w1, w2, vec = [], [], [], [], []
    for p in layer_params:
        wqkv.append(jnp.concatenate([p["wq"] * scale, p["wk"], p["wv"]],
                                    axis=1).astype(COMPUTE_DTYPE))
        wo.append(p["wo"].astype(COMPUTE_DTYPE))
        w1.append(p["w1"].astype(COMPUTE_DTYPE))
        w2.append(p["w2"].astype(COMPUTE_DTYPE))
        rows = [
            _vec_row(jnp.concatenate([p["bq"] * scale, p["bk"], p["bv"]],
                                     axis=1)),
            _vec_row(p["bo"]), _vec_row(p["g1"]), _vec_row(p["b1"]),
            _vec_row(p["bf1"]), _vec_row(p["bf2"]), _vec_row(p["g2"]),
            _vec_row(p["b2"]),
        ]
        vec.append(jnp.concatenate(rows, axis=0))   # (8, 128)
    return (jnp.stack(wqkv),                        # (L, D, 3D)   bf16
            jnp.stack(wo),                          # (L, D, D)    bf16
            jnp.stack(w1),                          # (L, D, D_FF) bf16
            jnp.stack(w2),                          # (L, D_FF, D) bf16
            jnp.stack(vec))                         # (L, 8, 128)  f32


def twin_encoder_forward(left_seq, right_seq, packed_params):
    # flip=False; share_encoder -> same params both towers; CONCAT combine.
    B, S, D = left_seq.shape
    wqkv, wo, w1, w2, vec = packed_params
    Bb = _choose_batch_block(B, S)
    grid = (B // Bb,)
    out_w = S * 2 * D

    # Stack towers outside the kernel: single input ref, the in-kernel row
    # stack becomes a free contiguous reshape (no per-step concat copy).
    x_lr = jnp.stack([left_seq, right_seq], axis=0)          # (2, B, S, D)

    in_specs = [
        pl.BlockSpec((2, Bb, S, D), lambda b: (0, b, 0, 0)),
        pl.BlockSpec(wqkv.shape, lambda b: (0, 0, 0)),
        pl.BlockSpec(wo.shape, lambda b: (0, 0, 0)),
        pl.BlockSpec(w1.shape, lambda b: (0, 0, 0)),
        pl.BlockSpec(w2.shape, lambda b: (0, 0, 0)),
        pl.BlockSpec(vec.shape, lambda b: (0, 0, 0)),
    ]
    out = pl.pallas_call(
        twin_encoder_kernel,
        out_shape=jax.ShapeDtypeStruct((B, out_w), jnp.float32),
        grid=grid,
        in_specs=in_specs,
        out_specs=pl.BlockSpec((Bb, out_w), lambda b: (b, 0)),
        compiler_params=pltpu.CompilerParams(
            dimension_semantics=("parallel",),
            # VMEM is not the binding resource here (live set << 1 MiB even at
            # Bb ~ 128); this is just a sane scoped-VMEM cap on all generations.
            vmem_limit_bytes=32 * 1024 * 1024),
    )(x_lr, wqkv, wo, w1, w2, vec)
    assert out.ndim == 2
    return out
    # TODO(synk): PMA pooling (pma_start/pma_low), dropout and non-CONCAT
    # combine modes not modeled; matches eval-mode, pma_start=-1, CONCAT config.


def init_encoder_params(key, n_layers=N_LAYERS):
    layers = []
    for _ in range(n_layers):
        key, *ks = jax.random.split(key, 9)
        s_d = 1.0 / math.sqrt(D_MODEL)
        s_f = 1.0 / math.sqrt(D_FF)
        p = dict(
            wq=jax.random.normal(ks[0], (D_MODEL, D_MODEL), jnp.float32) * s_d,
            wk=jax.random.normal(ks[1], (D_MODEL, D_MODEL), jnp.float32) * s_d,
            wv=jax.random.normal(ks[2], (D_MODEL, D_MODEL), jnp.float32) * s_d,
            wo=jax.random.normal(ks[3], (D_MODEL, D_MODEL), jnp.float32) * s_d,
            bq=jnp.zeros((1, D_MODEL), jnp.float32),
            bk=jnp.zeros((1, D_MODEL), jnp.float32),
            bv=jnp.zeros((1, D_MODEL), jnp.float32),
            bo=jnp.zeros((1, D_MODEL), jnp.float32),
            g1=jnp.ones((1, D_MODEL), jnp.float32),
            b1=jnp.zeros((1, D_MODEL), jnp.float32),
            w1=jax.random.normal(ks[4], (D_MODEL, D_FF), jnp.float32) * s_d,
            bf1=jnp.zeros((1, D_FF), jnp.float32),
            w2=jax.random.normal(ks[5], (D_FF, D_MODEL), jnp.float32) * s_f,
            bf2=jnp.zeros((1, D_MODEL), jnp.float32),
            g2=jnp.ones((1, D_MODEL), jnp.float32),
            b2=jnp.zeros((1, D_MODEL), jnp.float32),
        )
        layers.append(p)
    return layers


if __name__ == "__main__":
    B, S = 2, 8
    key = jax.random.PRNGKey(0)
    k_param, k_left, k_right = jax.random.split(key, 3)

    enc_params = init_encoder_params(k_param)
    packed = pack_params(enc_params)
    left_seq = jax.random.normal(k_left, (B, S, D_MODEL), jnp.float32)
    right_seq = jax.random.normal(k_right, (B, S, D_MODEL), jnp.float32)

    out = twin_encoder_forward(left_seq, right_seq, packed)
    out = jax.block_until_ready(out)
    assert out.shape == (B, S * 2 * D_MODEL), out.shape
    assert bool(jnp.all(jnp.isfinite(out)))
    print("KERNEL_OK")
</pallas_src>

<mosaic_0001>
module attributes {stable_mosaic.version = 11 : i64} {
  func.func @twin_encoder_kernel(%arg0: i32, %arg1: memref<2x2x8x32xf32, #tpu.memory_space<vmem>>, %arg2: memref<3x32x96xbf16, #tpu.memory_space<vmem>>, %arg3: memref<3x32x32xbf16, #tpu.memory_space<vmem>>, %arg4: memref<3x32x64xbf16, #tpu.memory_space<vmem>>, %arg5: memref<3x64x32xbf16, #tpu.memory_space<vmem>>, %arg6: memref<3x8x128xf32, #tpu.memory_space<vmem>>, %arg7: memref<2x512xf32, #tpu.memory_space<vmem>>) attributes {dimension_semantics = [#tpu.dimension_semantics<parallel>], iteration_bounds = array<i64: 1>, scalar_prefetch = 0 : i64, scratch_operands = 0 : i64, tpu.core_type = #tpu.core_type<tc>, window_params = [{transform_indices = @transform_0, window_bounds = array<i64: 2, 2, 8, 32>}, {pipeline_mode = #tpu.pipeline_mode<synchronous>, transform_indices = @transform_1, window_bounds = array<i64: 3, 32, 96>}, {pipeline_mode = #tpu.pipeline_mode<synchronous>, transform_indices = @transform_2, window_bounds = array<i64: 3, 32, 32>}, {pipeline_mode = #tpu.pipeline_mode<synchronous>, transform_indices = @transform_3, window_bounds = array<i64: 3, 32, 64>}, {pipeline_mode = #tpu.pipeline_mode<synchronous>, transform_indices = @transform_4, window_bounds = array<i64: 3, 64, 32>}, {pipeline_mode = #tpu.pipeline_mode<synchronous>, transform_indices = @transform_5, window_bounds = array<i64: 3, 8, 128>}, {transform_indices = @transform_6, window_bounds = array<i64: 2, 512>}]} {
    %c0 = arith.constant 0 : index
    %c0_0 = arith.constant 0 : index
    %c0_1 = arith.constant 0 : index
    %c0_2 = arith.constant 0 : index
    %0 = vector.load %arg1[%c0, %c0_0, %c0_1, %c0_2] : memref<2x2x8x32xf32, #tpu.memory_space<vmem>>, vector<2x2x8x32xf32>
    %1 = vector.shape_cast %0 : vector<2x2x8x32xf32> to vector<32x32xf32>
    %c0_3 = arith.constant 0 : index
    %c0_4 = arith.constant 0 : index
    %c0_5 = arith.constant 0 : index
    %2 = vector.load %arg2[%c0_3, %c0_4, %c0_5] : memref<3x32x96xbf16, #tpu.memory_space<vmem>>, vector<1x32x96xbf16>
    %3 = vector.shape_cast %2 : vector<1x32x96xbf16> to vector<32x96xbf16>
    %c0_6 = arith.constant 0 : index
    %c0_7 = arith.constant 0 : index
    %c0_8 = arith.constant 0 : index
    %4 = vector.load %arg3[%c0_6, %c0_7, %c0_8] : memref<3x32x32xbf16, #tpu.memory_space<vmem>>, vector<1x32x32xbf16>
    %5 = vector.shape_cast %4 : vector<1x32x32xbf16> to vector<32x32xbf16>
    %c0_9 = arith.constant 0 : index
    %c0_10 = arith.constant 0 : index
    %c0_11 = arith.constant 0 : index
    %6 = vector.load %arg4[%c0_9, %c0_10, %c0_11] : memref<3x32x64xbf16, #tpu.memory_space<vmem>>, vector<1x32x64xbf16>
    %7 = vector.shape_cast %6 : vector<1x32x64xbf16> to vector<32x64xbf16>
    %c0_12 = arith.constant 0 : index
    %c0_13 = arith.constant 0 : index
    %c0_14 = arith.constant 0 : index
    %8 = vector.load %arg5[%c0_12, %c0_13, %c0_14] : memref<3x64x32xbf16, #tpu.memory_space<vmem>>, vector<1x64x32xbf16>
    %9 = vector.shape_cast %8 : vector<1x64x32xbf16> to vector<64x32xbf16>
    %c0_15 = arith.constant 0 : index
    %c0_16 = arith.constant 0 : index
    %c0_17 = arith.constant 0 : index
    %10 = vector.load %arg6[%c0_15, %c0_16, %c0_17] : memref<3x8x128xf32, #tpu.memory_space<vmem>>, vector<1x8x128xf32>
    %11 = vector.shape_cast %10 : vector<1x8x128xf32> to vector<8x128xf32>
    %12 = vector.extract_strided_slice %11 {offsets = [0, 0], sizes = [1, 96], strides = [1, 1]} : vector<8x128xf32> to vector<1x96xf32>
    %13 = vector.extract_strided_slice %11 {offsets = [1, 0], sizes = [1, 32], strides = [1, 1]} : vector<8x128xf32> to vector<1x32xf32>
    %14 = vector.extract_strided_slice %11 {offsets = [2, 0], sizes = [1, 32], strides = [1, 1]} : vector<8x128xf32> to vector<1x32xf32>
    %15 = vector.extract_strided_slice %11 {offsets = [3, 0], sizes = [1, 32], strides = [1, 1]} : vector<8x128xf32> to vector<1x32xf32>
    %16 = vector.extract_strided_slice %11 {offsets = [4, 0], sizes = [1, 64], strides = [1, 1]} : vector<8x128xf32> to vector<1x64xf32>
    %17 = vector.extract_strided_slice %11 {offsets = [5, 0], sizes = [1, 32], strides = [1, 1]} : vector<8x128xf32> to vector<1x32xf32>
    %18 = vector.extract_strided_slice %11 {offsets = [6, 0], sizes = [1, 32], strides = [1, 1]} : vector<8x128xf32> to vector<1x32xf32>
    %19 = vector.extract_strided_slice %11 {offsets = [7, 0], sizes = [1, 32], strides = [1, 1]} : vector<8x128xf32> to vector<1x32xf32>
    %20 = arith.truncf %1 : vector<32x32xf32> to vector<32x32xbf16>
    %cst = arith.constant dense<0.000000e+00> : vector<32x96xf32>
    %21 = tpu.matmul %20, %3, %cst {dimension_numbers = #tpu.dot_dimension_numbers<[1], [0], [0], [1], [0, 0, 1, 1], [], []>} : vector<32x32xbf16>, vector<32x96xbf16>, vector<32x96xf32> -> vector<32x96xf32>
    %22 = vector.broadcast %12 : vector<1x96xf32> to vector<32x96xf32>
    %23 = arith.addf %21, %22 : vector<32x96xf32>
    %24 = vector.extract_strided_slice %23 {offsets = [0, 0], sizes = [32, 32], strides = [1, 1]} : vector<32x96xf32> to vector<32x32xf32>
    %25 = vector.shape_cast %24 : vector<32x32xf32> to vector<4x8x32xf32>
    %26 = vector.extract_strided_slice %23 {offsets = [0, 32], sizes = [32, 32], strides = [1, 1]} : vector<32x96xf32> to vector<32x32xf32>
    %27 = vector.shape_cast %26 : vector<32x32xf32> to vector<4x8x32xf32>
    %28 = vector.extract_strided_slice %23 {offsets = [0, 64], sizes = [32, 32], strides = [1, 1]} : vector<32x96xf32> to vector<32x32xf32>
    %29 = vector.shape_cast %28 : vector<32x32xf32> to vector<4x8x32xf32>
    %30 = vector.extract_strided_slice %25 {offsets = [0, 0, 0], sizes = [4, 8, 8], strides = [1, 1, 1]} : vector<4x8x32xf32> to vector<4x8x8xf32>
    %31 = vector.extract_strided_slice %25 {offsets = [0, 0, 8], sizes = [4, 8, 8], strides = [1, 1, 1]} : vector<4x8x32xf32> to vector<4x8x8xf32>
    %32 = vector.extract_strided_slice %25 {offsets = [0, 0, 16], sizes = [4, 8, 8], strides = [1, 1, 1]} : vector<4x8x32xf32> to vector<4x8x8xf32>
    %33 = vector.extract_strided_slice %25 {offsets = [0, 0, 24], sizes = [4, 8, 8], strides = [1, 1, 1]} : vector<4x8x32xf32> to vector<4x8x8xf32>
    %34 = tpu.concatenate %30, %31, %32, %33 in 0 : vector<4x8x8xf32>, vector<4x8x8xf32>, vector<4x8x8xf32>, vector<4x8x8xf32> -> vector<16x8x8xf32>
    %35 = arith.truncf %34 : vector<16x8x8xf32> to vector<16x8x8xbf16>
    %36 = vector.extract_strided_slice %27 {offsets = [0, 0, 0], sizes = [4, 8, 8], strides = [1, 1, 1]} : vector<4x8x32xf32> to vector<4x8x8xf32>
    %37 = vector.extract_strided_slice %27 {offsets = [0, 0, 8], sizes = [4, 8, 8], strides = [1, 1, 1]} : vector<4x8x32xf32> to vector<4x8x8xf32>
    %38 = vector.extract_strided_slice %27 {offsets = [0, 0, 16], sizes = [4, 8, 8], strides = [1, 1, 1]} : vector<4x8x32xf32> to vector<4x8x8xf32>
    %39 = vector.extract_strided_slice %27 {offsets = [0, 0, 24], sizes = [4, 8, 8], strides = [1, 1, 1]} : vector<4x8x32xf32> to vector<4x8x8xf32>
    %40 = tpu.concatenate %36, %37, %38, %39 in 0 : vector<4x8x8xf32>, vector<4x8x8xf32>, vector<4x8x8xf32>, vector<4x8x8xf32> -> vector<16x8x8xf32>
    %41 = arith.truncf %40 : vector<16x8x8xf32> to vector<16x8x8xbf16>
    %42 = vector.extract_strided_slice %29 {offsets = [0, 0, 0], sizes = [4, 8, 8], strides = [1, 1, 1]} : vector<4x8x32xf32> to vector<4x8x8xf32>
    %43 = vector.extract_strided_slice %29 {offsets = [0, 0, 8], sizes = [4, 8, 8], strides = [1, 1, 1]} : vector<4x8x32xf32> to vector<4x8x8xf32>
    %44 = vector.extract_strided_slice %29 {offsets = [0, 0, 16], sizes = [4, 8, 8], strides = [1, 1, 1]} : vector<4x8x32xf32> to vector<4x8x8xf32>
    %45 = vector.extract_strided_slice %29 {offsets = [0, 0, 24], sizes = [4, 8, 8], strides = [1, 1, 1]} : vector<4x8x32xf32> to vector<4x8x8xf32>
    %46 = tpu.concatenate %42, %43, %44, %45 in 0 : vector<4x8x8xf32>, vector<4x8x8xf32>, vector<4x8x8xf32>, vector<4x8x8xf32> -> vector<16x8x8xf32>
    %47 = arith.truncf %46 : vector<16x8x8xf32> to vector<16x8x8xbf16>
    "tpu.trace_start"() <{level = 10 : i32, message = "bqd,bkd->bqk"}> : () -> ()
    %cst_18 = arith.constant dense<0.000000e+00> : vector<16x8x8xf32>
    %48 = tpu.matmul %35, %41, %cst_18 {dimension_numbers = #tpu.dot_dimension_numbers<[2], [2], [1], [1], [0, 0, 0, 1, 1, 1], [0], [0]>} : vector<16x8x8xbf16>, vector<16x8x8xbf16>, vector<16x8x8xf32> -> vector<16x8x8xf32>
    "tpu.trace_stop"() : () -> ()
    %cst_19 = arith.constant dense<0xFF800000> : vector<16x8xf32>
    %49 = vector.multi_reduction <maximumf>, %48, %cst_19 [2] : vector<16x8x8xf32> to vector<16x8xf32>
    %50 = vector.shape_cast %49 : vector<16x8xf32> to vector<16x8x1xf32>
    %51 = vector.broadcast %50 : vector<16x8x1xf32> to vector<16x8x8xf32>
    %52 = arith.subf %48, %51 : vector<16x8x8xf32>
    %53 = math.exp %52 : vector<16x8x8xf32>
    %cst_20 = arith.constant dense<0.000000e+00> : vector<16x8xf32>
    %54 = vector.multi_reduction <add>, %53, %cst_20 [2] : vector<16x8x8xf32> to vector<16x8xf32>
    %55 = vector.shape_cast %54 : vector<16x8xf32> to vector<16x8x1xf32>
    %56 = tpu.reciprocal %55 {approx = true} : vector<16x8x1xf32> -> vector<16x8x1xf32>
    %57 = vector.broadcast %56 : vector<16x8x1xf32> to vector<16x8x8xf32>
    %58 = arith.mulf %53, %57 : vector<16x8x8xf32>
    %59 = arith.truncf %58 : vector<16x8x8xf32> to vector<16x8x8xbf16>
    "tpu.trace_start"() <{level = 10 : i32, message = "bqk,bkd->bqd"}> : () -> ()
    %cst_21 = arith.constant dense<0.000000e+00> : vector<16x8x8xf32>
    %60 = tpu.matmul %59, %47, %cst_21 {dimension_numbers = #tpu.dot_dimension_numbers<[2], [1], [1], [2], [0, 0, 0, 1, 1, 2], [0], [0]>} : vector<16x8x8xbf16>, vector<16x8x8xbf16>, vector<16x8x8xf32> -> vector<16x8x8xf32>
    "tpu.trace_stop"() : () -> ()
    %61 = vector.shape_cast %60 : vector<16x8x8xf32> to vector<4x4x8x8xf32>
    %62 = vector.extract_strided_slice %61 {offsets = [0, 0, 0, 0], sizes = [1, 4, 8, 8], strides = [1, 1, 1, 1]} : vector<4x4x8x8xf32> to vector<1x4x8x8xf32>
    %63 = vector.shape_cast %62 : vector<1x4x8x8xf32> to vector<4x8x8xf32>
    %64 = vector.extract_strided_slice %61 {offsets = [1, 0, 0, 0], sizes = [1, 4, 8, 8], strides = [1, 1, 1, 1]} : vector<4x4x8x8xf32> to vector<1x4x8x8xf32>
    %65 = vector.shape_cast %64 : vector<1x4x8x8xf32> to vector<4x8x8xf32>
    %66 = vector.extract_strided_slice %61 {offsets = [2, 0, 0, 0], sizes = [1, 4, 8, 8], strides = [1, 1, 1, 1]} : vector<4x4x8x8xf32> to vector<1x4x8x8xf32>
    %67 = vector.shape_cast %66 : vector<1x4x8x8xf32> to vector<4x8x8xf32>
    %68 = vector.extract_strided_slice %61 {offsets = [3, 0, 0, 0], sizes = [1, 4, 8, 8], strides = [1, 1, 1, 1]} : vector<4x4x8x8xf32> to vector<1x4x8x8xf32>
    %69 = vector.shape_cast %68 : vector<1x4x8x8xf32> to vector<4x8x8xf32>
    %70 = tpu.concatenate %63, %65, %67, %69 in 2 : vector<4x8x8xf32>, vector<4x8x8xf32>, vector<4x8x8xf32>, vector<4x8x8xf32> -> vector<4x8x32xf32>
    %71 = vector.shape_cast %70 : vector<4x8x32xf32> to vector<32x32xf32>
    %72 = arith.truncf %71 : vector<32x32xf32> to vector<32x32xbf16>
    %cst_22 = arith.constant dense<0.000000e+00> : vector<32x32xf32>
    %73 = tpu.matmul %72, %5, %cst_22 {dimension_numbers = #tpu.dot_dimension_numbers<[1], [0], [0], [1], [0, 0, 1, 1], [], []>} : vector<32x32xbf16>, vector<32x32xbf16>, vector<32x32xf32> -> vector<32x32xf32>
    %74 = vector.broadcast %13 : vector<1x32xf32> to vector<32x32xf32>
    %75 = arith.addf %73, %74 : vector<32x32xf32>
    %76 = arith.addf %1, %75 : vector<32x32xf32>
    %cst_23 = arith.constant dense<0.000000e+00> : vector<32xf32>
    %77 = vector.multi_reduction <add>, %76, %cst_23 [1] : vector<32x32xf32> to vector<32xf32>
    %78 = vector.shape_cast %77 : vector<32xf32> to vector<32x1xf32>
    %cst_24 = arith.constant 3.200000e+01 : f32
    %79 = vector.broadcast %cst_24 : f32 to vector<32x1xf32>
    %80 = arith.divf %78, %79 : vector<32x1xf32>
    %81 = vector.broadcast %80 : vector<32x1xf32> to vector<32x32xf32>
    %82 = arith.subf %76, %81 : vector<32x32xf32>
    %83 = arith.mulf %82, %82 : vector<32x32xf32>
    %cst_25 = arith.constant dense<0.000000e+00> : vector<32xf32>
    %84 = vector.multi_reduction <add>, %83, %cst_25 [1] : vector<32x32xf32> to vector<32xf32>
    %85 = vector.shape_cast %84 : vector<32xf32> to vector<32x1xf32>
    %cst_26 = arith.constant 3.200000e+01 : f32
    %86 = vector.broadcast %cst_26 : f32 to vector<32x1xf32>
    %87 = arith.divf %85, %86 : vector<32x1xf32>
    %88 = vector.broadcast %80 : vector<32x1xf32> to vector<32x32xf32>
    %89 = arith.subf %76, %88 : vector<32x32xf32>
    %cst_27 = arith.constant 9.99999974E-6 : f32
    %90 = vector.broadcast %cst_27 : f32 to vector<32x1xf32>
    %91 = arith.addf %87, %90 : vector<32x1xf32>
    %92 = math.rsqrt %91 : vector<32x1xf32>
    %93 = vector.broadcast %92 : vector<32x1xf32> to vector<32x32xf32>
    %94 = arith.mulf %89, %93 : vector<32x32xf32>
    %95 = vector.broadcast %14 : vector<1x32xf32> to vector<32x32xf32>
    %96 = arith.mulf %94, %95 : vector<32x32xf32>
    %97 = vector.broadcast %15 : vector<1x32xf32> to vector<32x32xf32>
    %98 = arith.addf %96, %97 : vector<32x32xf32>
    %99 = arith.truncf %98 : vector<32x32xf32> to vector<32x32xbf16>
    %cst_28 = arith.constant dense<0.000000e+00> : vector<32x64xf32>
    %100 = tpu.matmul %99, %7, %cst_28 {dimension_numbers = #tpu.dot_dimension_numbers<[1], [0], [0], [1], [0, 0, 1, 1], [], []>} : vector<32x32xbf16>, vector<32x64xbf16>, vector<32x64xf32> -> vector<32x64xf32>
    %101 = vector.broadcast %16 : vector<1x64xf32> to vector<32x64xf32>
    %102 = arith.addf %100, %101 : vector<32x64xf32>
    %cst_29 = arith.constant 0.000000e+00 : f32
    %103 = vector.broadcast %cst_29 : f32 to vector<32x64xf32>
    %104 = arith.maximumf %102, %103 : vector<32x64xf32>
    %105 = arith.truncf %104 : vector<32x64xf32> to vector<32x64xbf16>
    %cst_30 = arith.constant dense<0.000000e+00> : vector<32x32xf32>
    %106 = tpu.matmul %105, %9, %cst_30 {dimension_numbers = #tpu.dot_dimension_numbers<[1], [0], [0], [1], [0, 0, 1, 1], [], []>} : vector<32x64xbf16>, vector<64x32xbf16>, vector<32x32xf32> -> vector<32x32xf32>
    %107 = vector.broadcast %17 : vector<1x32xf32> to vector<32x32xf32>
    %108 = arith.addf %106, %107 : vector<32x32xf32>
    %109 = arith.addf %98, %108 : vector<32x32xf32>
    %cst_31 = arith.constant dense<0.000000e+00> : vector<32xf32>
    %110 = vector.multi_reduction <add>, %109, %cst_31 [1] : vector<32x32xf32> to vector<32xf32>
    %111 = vector.shape_cast %110 : vector<32xf32> to vector<32x1xf32>
    %cst_32 = arith.constant 3.200000e+01 : f32
    %112 = vector.broadcast %cst_32 : f32 to vector<32x1xf32>
    %113 = arith.divf %111, %112 : vector<32x1xf32>
    %114 = vector.broadcast %113 : vector<32x1xf32> to vector<32x32xf32>
    %115 = arith.subf %109, %114 : vector<32x32xf32>
    %116 = arith.mulf %115, %115 : vector<32x32xf32>
    %cst_33 = arith.constant dense<0.000000e+00> : vector<32xf32>
    %117 = vector.multi_reduction <add>, %116, %cst_33 [1] : vector<32x32xf32> to vector<32xf32>
    %118 = vector.shape_cast %117 : vector<32xf32> to vector<32x1xf32>
    %cst_34 = arith.constant 3.200000e+01 : f32
    %119 = vector.broadcast %cst_34 : f32 to vector<32x1xf32>
    %120 = arith.divf %118, %119 : vector<32x1xf32>
    %121 = vector.broadcast %113 : vector<32x1xf32> to vector<32x32xf32>
    %122 = arith.subf %109, %121 : vector<32x32xf32>
    %cst_35 = arith.constant 9.99999974E-6 : f32
    %123 = vector.broadcast %cst_35 : f32 to vector<32x1xf32>
    %124 = arith.addf %120, %123 : vector<32x1xf32>
    %125 = math.rsqrt %124 : vector<32x1xf32>
    %126 = vector.broadcast %125 : vector<32x1xf32> to vector<32x32xf32>
    %127 = arith.mulf %122, %126 : vector<32x32xf32>
    %128 = vector.broadcast %18 : vector<1x32xf32> to vector<32x32xf32>
    %129 = arith.mulf %127, %128 : vector<32x32xf32>
    %130 = vector.broadcast %19 : vector<1x32xf32> to vector<32x32xf32>
    %131 = arith.addf %129, %130 : vector<32x32xf32>
    %c1 = arith.constant 1 : index
    %c0_36 = arith.constant 0 : index
    %c0_37 = arith.constant 0 : index
    %132 = vector.load %arg2[%c1, %c0_36, %c0_37] : memref<3x32x96xbf16, #tpu.memory_space<vmem>>, vector<1x32x96xbf16>
    %133 = vector.shape_cast %132 : vector<1x32x96xbf16> to vector<32x96xbf16>
    %c1_38 = arith.constant 1 : index
    %c0_39 = arith.constant 0 : index
    %c0_40 = arith.constant 0 : index
    %134 = vector.load %arg3[%c1_38, %c0_39, %c0_40] : memref<3x32x32xbf16, #tpu.memory_space<vmem>>, vector<1x32x32xbf16>
    %135 = vector.shape_cast %134 : vector<1x32x32xbf16> to vector<32x32xbf16>
    %c1_41 = arith.constant 1 : index
    %c0_42 = arith.constant 0 : index
    %c0_43 = arith.constant 0 : index
    %136 = vector.load %arg4[%c1_41, %c0_42, %c0_43] : memref<3x32x64xbf16, #tpu.memory_space<vmem>>, vector<1x32x64xbf16>
    %137 = vector.shape_cast %136 : vector<1x32x64xbf16> to vector<32x64xbf16>
    %c1_44 = arith.constant 1 : index
    %c0_45 = arith.constant 0 : index
    %c0_46 = arith.constant 0 : index
    %138 = vector.load %arg5[%c1_44, %c0_45, %c0_46] : memref<3x64x32xbf16, #tpu.memory_space<vmem>>, vector<1x64x32xbf16>
    %139 = vector.shape_cast %138 : vector<1x64x32xbf16> to vector<64x32xbf16>
    %c1_47 = arith.constant 1 : index
    %c0_48 = arith.constant 0 : index
    %c0_49 = arith.constant 0 : index
    %140 = vector.load %arg6[%c1_47, %c0_48, %c0_49] : memref<3x8x128xf32, #tpu.memory_space<vmem>>, vector<1x8x128xf32>
    %141 = vector.shape_cast %140 : vector<1x8x128xf32> to vector<8x128xf32>
    %142 = vector.extract_strided_slice %141 {offsets = [0, 0], sizes = [1, 96], strides = [1, 1]} : vector<8x128xf32> to vector<1x96xf32>
    %143 = vector.extract_strided_slice %141 {offsets = [1, 0], sizes = [1, 32], strides = [1, 1]} : vector<8x128xf32> to vector<1x32xf32>
    %144 = vector.extract_strided_slice %141 {offsets = [2, 0], sizes = [1, 32], strides = [1, 1]} : vector<8x128xf32> to vector<1x32xf32>
    %145 = vector.extract_strided_slice %141 {offsets = [3, 0], sizes = [1, 32], strides = [1, 1]} : vector<8x128xf32> to vector<1x32xf32>
    %146 = vector.extract_strided_slice %141 {offsets = [4, 0], sizes = [1, 64], strides = [1, 1]} : vector<8x128xf32> to vector<1x64xf32>
    %147 = vector.extract_strided_slice %141 {offsets = [5, 0], sizes = [1, 32], strides = [1, 1]} : vector<8x128xf32> to vector<1x32xf32>
    %148 = vector.extract_strided_slice %141 {offsets = [6, 0], sizes = [1, 32], strides = [1, 1]} : vector<8x128xf32> to vector<1x32xf32>
    %149 = vector.extract_strided_slice %141 {offsets = [7, 0], sizes = [1, 32], strides = [1, 1]} : vector<8x128xf32> to vector<1x32xf32>
    %150 = arith.truncf %131 : vector<32x32xf32> to vector<32x32xbf16>
    %cst_50 = arith.constant dense<0.000000e+00> : vector<32x96xf32>
    %151 = tpu.matmul %150, %133, %cst_50 {dimension_numbers = #tpu.dot_dimension_numbers<[1], [0], [0], [1], [0, 0, 1, 1], [], []>} : vector<32x32xbf16>, vector<32x96xbf16>, vector<32x96xf32> -> vector<32x96xf32>
    %152 = vector.broadcast %142 : vector<1x96xf32> to vector<32x96xf32>
    %153 = arith.addf %151, %152 : vector<32x96xf32>
    %154 = vector.extract_strided_slice %153 {offsets = [0, 0], sizes = [32, 32], strides = [1, 1]} : vector<32x96xf32> to vector<32x32xf32>
    %155 = vector.shape_cast %154 : vector<32x32xf32> to vector<4x8x32xf32>
    %156 = vector.extract_strided_slice %153 {offsets = [0, 32], sizes = [32, 32], strides = [1, 1]} : vector<32x96xf32> to vector<32x32xf32>
    %157 = vector.shape_cast %156 : vector<32x32xf32> to vector<4x8x32xf32>
    %158 = vector.extract_strided_slice %153 {offsets = [0, 64], sizes = [32, 32], strides = [1, 1]} : vector<32x96xf32> to vector<32x32xf32>
    %159 = vector.shape_cast %158 : vector<32x32xf32> to vector<4x8x32xf32>
    %160 = vector.extract_strided_slice %155 {offsets = [0, 0, 0], sizes = [4, 8, 8], strides = [1, 1, 1]} : vector<4x8x32xf32> to vector<4x8x8xf32>
    %161 = vector.extract_strided_slice %155 {offsets = [0, 0, 8], sizes = [4, 8, 8], strides = [1, 1, 1]} : vector<4x8x32xf32> to vector<4x8x8xf32>
    %162 = vector.extract_strided_slice %155 {offsets = [0, 0, 16], sizes = [4, 8, 8], strides = [1, 1, 1]} : vector<4x8x32xf32> to vector<4x8x8xf32>
    %163 = vector.extract_strided_slice %155 {offsets = [0, 0, 24], sizes = [4, 8, 8], strides = [1, 1, 1]} : vector<4x8x32xf32> to vector<4x8x8xf32>
    %164 = tpu.concatenate %160, %161, %162, %163 in 0 : vector<4x8x8xf32>, vector<4x8x8xf32>, vector<4x8x8xf32>, vector<4x8x8xf32> -> vector<16x8x8xf32>
    %165 = arith.truncf %164 : vector<16x8x8xf32> to vector<16x8x8xbf16>
    %166 = vector.extract_strided_slice %157 {offsets = [0, 0, 0], sizes = [4, 8, 8], strides = [1, 1, 1]} : vector<4x8x32xf32> to vector<4x8x8xf32>
    %167 = vector.extract_strided_slice %157 {offsets = [0, 0, 8], sizes = [4, 8, 8], strides = [1, 1, 1]} : vector<4x8x32xf32> to vector<4x8x8xf32>
    %168 = vector.extract_strided_slice %157 {offsets = [0, 0, 16], sizes = [4, 8, 8], strides = [1, 1, 1]} : vector<4x8x32xf32> to vector<4x8x8xf32>
    %169 = vector.extract_strided_slice %157 {offsets = [0, 0, 24], sizes = [4, 8, 8], strides = [1, 1, 1]} : vector<4x8x32xf32> to vector<4x8x8xf32>
    %170 = tpu.concatenate %166, %167, %168, %169 in 0 : vector<4x8x8xf32>, vector<4x8x8xf32>, vector<4x8x8xf32>, vector<4x8x8xf32> -> vector<16x8x8xf32>
    %171 = arith.truncf %170 : vector<16x8x8xf32> to vector<16x8x8xbf16>
    %172 = vector.extract_strided_slice %159 {offsets = [0, 0, 0], sizes = [4, 8, 8], strides = [1, 1, 1]} : vector<4x8x32xf32> to vector<4x8x8xf32>
    %173 = vector.extract_strided_slice %159 {offsets = [0, 0, 8], sizes = [4, 8, 8], strides = [1, 1, 1]} : vector<4x8x32xf32> to vector<4x8x8xf32>
    %174 = vector.extract_strided_slice %159 {offsets = [0, 0, 16], sizes = [4, 8, 8], strides = [1, 1, 1]} : vector<4x8x32xf32> to vector<4x8x8xf32>
    %175 = vector.extract_strided_slice %159 {offsets = [0, 0, 24], sizes = [4, 8, 8], strides = [1, 1, 1]} : vector<4x8x32xf32> to vector<4x8x8xf32>
    %176 = tpu.concatenate %172, %173, %174, %175 in 0 : vector<4x8x8xf32>, vector<4x8x8xf32>, vector<4x8x8xf32>, vector<4x8x8xf32> -> vector<16x8x8xf32>
    %177 = arith.truncf %176 : vector<16x8x8xf32> to vector<16x8x8xbf16>
    "tpu.trace_start"() <{level = 10 : i32, message = "bqd,bkd->bqk"}> : () -> ()
    %cst_51 = arith.constant dense<0.000000e+00> : vector<16x8x8xf32>
    %178 = tpu.matmul %165, %171, %cst_51 {dimension_numbers = #tpu.dot_dimension_numbers<[2], [2], [1], [1], [0, 0, 0, 1, 1, 1], [0], [0]>} : vector<16x8x8xbf16>, vector<16x8x8xbf16>, vector<16x8x8xf32> -> vector<16x8x8xf32>
    "tpu.trace_stop"() : () -> ()
    %cst_52 = arith.constant dense<0xFF800000> : vector<16x8xf32>
    %179 = vector.multi_reduction <maximumf>, %178, %cst_52 [2] : vector<16x8x8xf32> to vector<16x8xf32>
    %180 = vector.shape_cast %179 : vector<16x8xf32> to vector<16x8x1xf32>
    %181 = vector.broadcast %180 : vector<16x8x1xf32> to vector<16x8x8xf32>
    %182 = arith.subf %178, %181 : vector<16x8x8xf32>
    %183 = math.exp %182 : vector<16x8x8xf32>
    %cst_53 = arith.constant dense<0.000000e+00> : vector<16x8xf32>
    %184 = vector.multi_reduction <add>, %183, %cst_53 [2] : vector<16x8x8xf32> to vector<16x8xf32>
    %185 = vector.shape_cast %184 : vector<16x8xf32> to vector<16x8x1xf32>
    %186 = tpu.reciprocal %185 {approx = true} : vector<16x8x1xf32> -> vector<16x8x1xf32>
    %187 = vector.broadcast %186 : vector<16x8x1xf32> to vector<16x8x8xf32>
    %188 = arith.mulf %183, %187 : vector<16x8x8xf32>
    %189 = arith.truncf %188 : vector<16x8x8xf32> to vector<16x8x8xbf16>
    "tpu.trace_start"() <{level = 10 : i32, message = "bqk,bkd->bqd"}> : () -> ()
    %cst_54 = arith.constant dense<0.000000e+00> : vector<16x8x8xf32>
    %190 = tpu.matmul %189, %177, %cst_54 {dimension_numbers = #tpu.dot_dimension_numbers<[2], [1], [1], [2], [0, 0, 0, 1, 1, 2], [0], [0]>} : vector<16x8x8xbf16>, vector<16x8x8xbf16>, vector<16x8x8xf32> -> vector<16x8x8xf32>
    "tpu.trace_stop"() : () -> ()
    %191 = vector.shape_cast %190 : vector<16x8x8xf32> to vector<4x4x8x8xf32>
    %192 = vector.extract_strided_slice %191 {offsets = [0, 0, 0, 0], sizes = [1, 4, 8, 8], strides = [1, 1, 1, 1]} : vector<4x4x8x8xf32> to vector<1x4x8x8xf32>
    %193 = vector.shape_cast %192 : vector<1x4x8x8xf32> to vector<4x8x8xf32>
    %194 = vector.extract_strided_slice %191 {offsets = [1, 0, 0, 0], sizes = [1, 4, 8, 8], strides = [1, 1, 1, 1]} : vector<4x4x8x8xf32> to vector<1x4x8x8xf32>
    %195 = vector.shape_cast %194 : vector<1x4x8x8xf32> to vector<4x8x8xf32>
    %196 = vector.extract_strided_slice %191 {offsets = [2, 0, 0, 0], sizes = [1, 4, 8, 8], strides = [1, 1, 1, 1]} : vector<4x4x8x8xf32> to vector<1x4x8x8xf32>
    %197 = vector.shape_cast %196 : vector<1x4x8x8xf32> to vector<4x8x8xf32>
    %198 = vector.extract_strided_slice %191 {offsets = [3, 0, 0, 0], sizes = [1, 4, 8, 8], strides = [1, 1, 1, 1]} : vector<4x4x8x8xf32> to vector<1x4x8x8xf32>
    %199 = vector.shape_cast %198 : vector<1x4x8x8xf32> to vector<4x8x8xf32>
    %200 = tpu.concatenate %193, %195, %197, %199 in 2 : vector<4x8x8xf32>, vector<4x8x8xf32>, vector<4x8x8xf32>, vector<4x8x8xf32> -> vector<4x8x32xf32>
    %201 = vector.shape_cast %200 : vector<4x8x32xf32> to vector<32x32xf32>
    %202 = arith.truncf %201 : vector<32x32xf32> to vector<32x32xbf16>
    %cst_55 = arith.constant dense<0.000000e+00> : vector<32x32xf32>
    %203 = tpu.matmul %202, %135, %cst_55 {dimension_numbers = #tpu.dot_dimension_numbers<[1], [0], [0], [1], [0, 0, 1, 1], [], []>} : vector<32x32xbf16>, vector<32x32xbf16>, vector<32x32xf32> -> vector<32x32xf32>
    %204 = vector.broadcast %143 : vector<1x32xf32> to vector<32x32xf32>
    %205 = arith.addf %203, %204 : vector<32x32xf32>
    %206 = arith.addf %131, %205 : vector<32x32xf32>
    %cst_56 = arith.constant dense<0.000000e+00> : vector<32xf32>
    %207 = vector.multi_reduction <add>, %206, %cst_56 [1] : vector<32x32xf32> to vector<32xf32>
    %208 = vector.shape_cast %207 : vector<32xf32> to vector<32x1xf32>
    %cst_57 = arith.constant 3.200000e+01 : f32
    %209 = vector.broadcast %cst_57 : f32 to vector<32x1xf32>
    %210 = arith.divf %208, %209 : vector<32x1xf32>
    %211 = vector.broadcast %210 : vector<32x1xf32> to vector<32x32xf32>
    %212 = arith.subf %206, %211 : vector<32x32xf32>
    %213 = arith.mulf %212, %212 : vector<32x32xf32>
    %cst_58 = arith.constant dense<0.000000e+00> : vector<32xf32>
    %214 = vector.multi_reduction <add>, %213, %cst_58 [1] : vector<32x32xf32> to vector<32xf32>
    %215 = vector.shape_cast %214 : vector<32xf32> to vector<32x1xf32>
    %cst_59 = arith.constant 3.200000e+01 : f32
    %216 = vector.broadcast %cst_59 : f32 to vector<32x1xf32>
    %217 = arith.divf %215, %216 : vector<32x1xf32>
    %218 = vector.broadcast %210 : vector<32x1xf32> to vector<32x32xf32>
    %219 = arith.subf %206, %218 : vector<32x32xf32>
    %cst_60 = arith.constant 9.99999974E-6 : f32
    %220 = vector.broadcast %cst_60 : f32 to vector<32x1xf32>
    %221 = arith.addf %217, %220 : vector<32x1xf32>
    %222 = math.rsqrt %221 : vector<32x1xf32>
    %223 = vector.broadcast %222 : vector<32x1xf32> to vector<32x32xf32>
    %224 = arith.mulf %219, %223 : vector<32x32xf32>
    %225 = vector.broadcast %144 : vector<1x32xf32> to vector<32x32xf32>
    %226 = arith.mulf %224, %225 : vector<32x32xf32>
    %227 = vector.broadcast %145 : vector<1x32xf32> to vector<32x32xf32>
    %228 = arith.addf %226, %227 : vector<32x32xf32>
    %229 = arith.truncf %228 : vector<32x32xf32> to vector<32x32xbf16>
    %cst_61 = arith.constant dense<0.000000e+00> : vector<32x64xf32>
    %230 = tpu.matmul %229, %137, %cst_61 {dimension_numbers = #tpu.dot_dimension_numbers<[1], [0], [0], [1], [0, 0, 1, 1], [], []>} : vector<32x32xbf16>, vector<32x64xbf16>, vector<32x64xf32> -> vector<32x64xf32>
    %231 = vector.broadcast %146 : vector<1x64xf32> to vector<32x64xf32>
    %232 = arith.addf %230, %231 : vector<32x64xf32>
    %cst_62 = arith.constant 0.000000e+00 : f32
    %233 = vector.broadcast %cst_62 : f32 to vector<32x64xf32>
    %234 = arith.maximumf %232, %233 : vector<32x64xf32>
    %235 = arith.truncf %234 : vector<32x64xf32> to vector<32x64xbf16>
    %cst_63 = arith.constant dense<0.000000e+00> : vector<32x32xf32>
    %236 = tpu.matmul %235, %139, %cst_63 {dimension_numbers = #tpu.dot_dimension_numbers<[1], [0], [0], [1], [0, 0, 1, 1], [], []>} : vector<32x64xbf16>, vector<64x32xbf16>, vector<32x32xf32> -> vector<32x32xf32>
    %237 = vector.broadcast %147 : vector<1x32xf32> to vector<32x32xf32>
    %238 = arith.addf %236, %237 : vector<32x32xf32>
    %239 = arith.addf %228, %238 : vector<32x32xf32>
    %cst_64 = arith.constant dense<0.000000e+00> : vector<32xf32>
    %240 = vector.multi_reduction <add>, %239, %cst_64 [1] : vector<32x32xf32> to vector<32xf32>
    %241 = vector.shape_cast %240 : vector<32xf32> to vector<32x1xf32>
    %cst_65 = arith.constant 3.200000e+01 : f32
    %242 = vector.broadcast %cst_65 : f32 to vector<32x1xf32>
    %243 = arith.divf %241, %242 : vector<32x1xf32>
    %244 = vector.broadcast %243 : vector<32x1xf32> to vector<32x32xf32>
    %245 = arith.subf %239, %244 : vector<32x32xf32>
    %246 = arith.mulf %245, %245 : vector<32x32xf32>
    %cst_66 = arith.constant dense<0.000000e+00> : vector<32xf32>
    %247 = vector.multi_reduction <add>, %246, %cst_66 [1] : vector<32x32xf32> to vector<32xf32>
    %248 = vector.shape_cast %247 : vector<32xf32> to vector<32x1xf32>
    %cst_67 = arith.constant 3.200000e+01 : f32
    %249 = vector.broadcast %cst_67 : f32 to vector<32x1xf32>
    %250 = arith.divf %248, %249 : vector<32x1xf32>
    %251 = vector.broadcast %243 : vector<32x1xf32> to vector<32x32xf32>
    %252 = arith.subf %239, %251 : vector<32x32xf32>
    %cst_68 = arith.constant 9.99999974E-6 : f32
    %253 = vector.broadcast %cst_68 : f32 to vector<32x1xf32>
    %254 = arith.addf %250, %253 : vector<32x1xf32>
    %255 = math.rsqrt %254 : vector<32x1xf32>
    %256 = vector.broadcast %255 : vector<32x1xf32> to vector<32x32xf32>
    %257 = arith.mulf %252, %256 : vector<32x32xf32>
    %258 = vector.broadcast %148 : vector<1x32xf32> to vector<32x32xf32>
    %259 = arith.mulf %257, %258 : vector<32x32xf32>
    %260 = vector.broadcast %149 : vector<1x32xf32> to vector<32x32xf32>
    %261 = arith.addf %259, %260 : vector<32x32xf32>
    %c2 = arith.constant 2 : index
    %c0_69 = arith.constant 0 : index
    %c0_70 = arith.constant 0 : index
    %262 = vector.load %arg2[%c2, %c0_69, %c0_70] : memref<3x32x96xbf16, #tpu.memory_space<vmem>>, vector<1x32x96xbf16>
    %263 = vector.shape_cast %262 : vector<1x32x96xbf16> to vector<32x96xbf16>
    %c2_71 = arith.constant 2 : index
    %c0_72 = arith.constant 0 : index
    %c0_73 = arith.constant 0 : index
    %264 = vector.load %arg3[%c2_71, %c0_72, %c0_73] : memref<3x32x32xbf16, #tpu.memory_space<vmem>>, vector<1x32x32xbf16>
    %265 = vector.shape_cast %264 : vector<1x32x32xbf16> to vector<32x32xbf16>
    %c2_74 = arith.constant 2 : index
    %c0_75 = arith.constant 0 : index
    %c0_76 = arith.constant 0 : index
    %266 = vector.load %arg4[%c2_74, %c0_75, %c0_76] : memref<3x32x64xbf16, #tpu.memory_space<vmem>>, vector<1x32x64xbf16>
    %267 = vector.shape_cast %266 : vector<1x32x64xbf16> to vector<32x64xbf16>
    %c2_77 = arith.constant 2 : index
    %c0_78 = arith.constant 0 : index
    %c0_79 = arith.constant 0 : index
    %268 = vector.load %arg5[%c2_77, %c0_78, %c0_79] : memref<3x64x32xbf16, #tpu.memory_space<vmem>>, vector<1x64x32xbf16>
    %269 = vector.shape_cast %268 : vector<1x64x32xbf16> to vector<64x32xbf16>
    %c2_80 = arith.constant 2 : index
    %c0_81 = arith.constant 0 : index
    %c0_82 = arith.constant 0 : index
    %270 = vector.load %arg6[%c2_80, %c0_81, %c0_82] : memref<3x8x128xf32, #tpu.memory_space<vmem>>, vector<1x8x128xf32>
    %271 = vector.shape_cast %270 : vector<1x8x128xf32> to vector<8x128xf32>
    %272 = vector.extract_strided_slice %271 {offsets = [0, 0], sizes = [1, 96], strides = [1, 1]} : vector<8x128xf32> to vector<1x96xf32>
    %273 = vector.extract_strided_slice %271 {offsets = [1, 0], sizes = [1, 32], strides = [1, 1]} : vector<8x128xf32> to vector<1x32xf32>
    %274 = vector.extract_strided_slice %271 {offsets = [2, 0], sizes = [1, 32], strides = [1, 1]} : vector<8x128xf32> to vector<1x32xf32>
    %275 = vector.extract_strided_slice %271 {offsets = [3, 0], sizes = [1, 32], strides = [1, 1]} : vector<8x128xf32> to vector<1x32xf32>
    %276 = vector.extract_strided_slice %271 {offsets = [4, 0], sizes = [1, 64], strides = [1, 1]} : vector<8x128xf32> to vector<1x64xf32>
    %277 = vector.extract_strided_slice %271 {offsets = [5, 0], sizes = [1, 32], strides = [1, 1]} : vector<8x128xf32> to vector<1x32xf32>
    %278 = vector.extract_strided_slice %271 {offsets = [6, 0], sizes = [1, 32], strides = [1, 1]} : vector<8x128xf32> to vector<1x32xf32>
    %279 = vector.extract_strided_slice %271 {offsets = [7, 0], sizes = [1, 32], strides = [1, 1]} : vector<8x128xf32> to vector<1x32xf32>
    %280 = arith.truncf %261 : vector<32x32xf32> to vector<32x32xbf16>
    %cst_83 = arith.constant dense<0.000000e+00> : vector<32x96xf32>
    %281 = tpu.matmul %280, %263, %cst_83 {dimension_numbers = #tpu.dot_dimension_numbers<[1], [0], [0], [1], [0, 0, 1, 1], [], []>} : vector<32x32xbf16>, vector<32x96xbf16>, vector<32x96xf32> -> vector<32x96xf32>
    %282 = vector.broadcast %272 : vector<1x96xf32> to vector<32x96xf32>
    %283 = arith.addf %281, %282 : vector<32x96xf32>
    %284 = vector.extract_strided_slice %283 {offsets = [0, 0], sizes = [32, 32], strides = [1, 1]} : vector<32x96xf32> to vector<32x32xf32>
    %285 = vector.shape_cast %284 : vector<32x32xf32> to vector<4x8x32xf32>
    %286 = vector.extract_strided_slice %283 {offsets = [0, 32], sizes = [32, 32], strides = [1, 1]} : vector<32x96xf32> to vector<32x32xf32>
    %287 = vector.shape_cast %286 : vector<32x32xf32> to vector<4x8x32xf32>
    %288 = vector.extract_strided_slice %283 {offsets = [0, 64], sizes = [32, 32], strides = [1, 1]} : vector<32x96xf32> to vector<32x32xf32>
    %289 = vector.shape_cast %288 : vector<32x32xf32> to vector<4x8x32xf32>
    %290 = vector.extract_strided_slice %285 {offsets = [0, 0, 0], sizes = [4, 8, 8], strides = [1, 1, 1]} : vector<4x8x32xf32> to vector<4x8x8xf32>
    %291 = vector.extract_strided_slice %285 {offsets = [0, 0, 8], sizes = [4, 8, 8], strides = [1, 1, 1]} : vector<4x8x32xf32> to vector<4x8x8xf32>
    %292 = vector.extract_strided_slice %285 {offsets = [0, 0, 16], sizes = [4, 8, 8], strides = [1, 1, 1]} : vector<4x8x32xf32> to vector<4x8x8xf32>
    %293 = vector.extract_strided_slice %285 {offsets = [0, 0, 24], sizes = [4, 8, 8], strides = [1, 1, 1]} : vector<4x8x32xf32> to vector<4x8x8xf32>
    %294 = tpu.concatenate %290, %291, %292, %293 in 0 : vector<4x8x8xf32>, vector<4x8x8xf32>, vector<4x8x8xf32>, vector<4x8x8xf32> -> vector<16x8x8xf32>
    %295 = arith.truncf %294 : vector<16x8x8xf32> to vector<16x8x8xbf16>
    %296 = vector.extract_strided_slice %287 {offsets = [0, 0, 0], sizes = [4, 8, 8], strides = [1, 1, 1]} : vector<4x8x32xf32> to vector<4x8x8xf32>
    %297 = vector.extract_strided_slice %287 {offsets = [0, 0, 8], sizes = [4, 8, 8], strides = [1, 1, 1]} : vector<4x8x32xf32> to vector<4x8x8xf32>
    %298 = vector.extract_strided_slice %287 {offsets = [0, 0, 16], sizes = [4, 8, 8], strides = [1, 1, 1]} : vector<4x8x32xf32> to vector<4x8x8xf32>
    %299 = vector.extract_strided_slice %287 {offsets = [0, 0, 24], sizes = [4, 8, 8], strides = [1, 1, 1]} : vector<4x8x32xf32> to vector<4x8x8xf32>
    %300 = tpu.concatenate %296, %297, %298, %299 in 0 : vector<4x8x8xf32>, vector<4x8x8xf32>, vector<4x8x8xf32>, vector<4x8x8xf32> -> vector<16x8x8xf32>
    %301 = arith.truncf %300 : vector<16x8x8xf32> to vector<16x8x8xbf16>
    %302 = vector.extract_strided_slice %289 {offsets = [0, 0, 0], sizes = [4, 8, 8], strides = [1, 1, 1]} : vector<4x8x32xf32> to vector<4x8x8xf32>
    %303 = vector.extract_strided_slice %289 {offsets = [0, 0, 8], sizes = [4, 8, 8], strides = [1, 1, 1]} : vector<4x8x32xf32> to vector<4x8x8xf32>
    %304 = vector.extract_strided_slice %289 {offsets = [0, 0, 16], sizes = [4, 8, 8], strides = [1, 1, 1]} : vector<4x8x32xf32> to vector<4x8x8xf32>
    %305 = vector.extract_strided_slice %289 {offsets = [0, 0, 24], sizes = [4, 8, 8], strides = [1, 1, 1]} : vector<4x8x32xf32> to vector<4x8x8xf32>
    %306 = tpu.concatenate %302, %303, %304, %305 in 0 : vector<4x8x8xf32>, vector<4x8x8xf32>, vector<4x8x8xf32>, vector<4x8x8xf32> -> vector<16x8x8xf32>
    %307 = arith.truncf %306 : vector<16x8x8xf32> to vector<16x8x8xbf16>
    "tpu.trace_start"() <{level = 10 : i32, message = "bqd,bkd->bqk"}> : () -> ()
    %cst_84 = arith.constant dense<0.000000e+00> : vector<16x8x8xf32>
    %308 = tpu.matmul %295, %301, %cst_84 {dimension_numbers = #tpu.dot_dimension_numbers<[2], [2], [1], [1], [0, 0, 0, 1, 1, 1], [0], [0]>} : vector<16x8x8xbf16>, vector<16x8x8xbf16>, vector<16x8x8xf32> -> vector<16x8x8xf32>
    "tpu.trace_stop"() : () -> ()
    %cst_85 = arith.constant dense<0xFF800000> : vector<16x8xf32>
    %309 = vector.multi_reduction <maximumf>, %308, %cst_85 [2] : vector<16x8x8xf32> to vector<16x8xf32>
    %310 = vector.shape_cast %309 : vector<16x8xf32> to vector<16x8x1xf32>
    %311 = vector.broadcast %310 : vector<16x8x1xf32> to vector<16x8x8xf32>
    %312 = arith.subf %308, %311 : vector<16x8x8xf32>
    %313 = math.exp %312 : vector<16x8x8xf32>
    %cst_86 = arith.constant dense<0.000000e+00> : vector<16x8xf32>
    %314 = vector.multi_reduction <add>, %313, %cst_86 [2] : vector<16x8x8xf32> to vector<16x8xf32>
    %315 = vector.shape_cast %314 : vector<16x8xf32> to vector<16x8x1xf32>
    %316 = tpu.reciprocal %315 {approx = true} : vector<16x8x1xf32> -> vector<16x8x1xf32>
    %317 = vector.broadcast %316 : vector<16x8x1xf32> to vector<16x8x8xf32>
    %318 = arith.mulf %313, %317 : vector<16x8x8xf32>
    %319 = arith.truncf %318 : vector<16x8x8xf32> to vector<16x8x8xbf16>
    "tpu.trace_start"() <{level = 10 : i32, message = "bqk,bkd->bqd"}> : () -> ()
    %cst_87 = arith.constant dense<0.000000e+00> : vector<16x8x8xf32>
    %320 = tpu.matmul %319, %307, %cst_87 {dimension_numbers = #tpu.dot_dimension_numbers<[2], [1], [1], [2], [0, 0, 0, 1, 1, 2], [0], [0]>} : vector<16x8x8xbf16>, vector<16x8x8xbf16>, vector<16x8x8xf32> -> vector<16x8x8xf32>
    "tpu.trace_stop"() : () -> ()
    %321 = vector.shape_cast %320 : vector<16x8x8xf32> to vector<4x4x8x8xf32>
    %322 = vector.extract_strided_slice %321 {offsets = [0, 0, 0, 0], sizes = [1, 4, 8, 8], strides = [1, 1, 1, 1]} : vector<4x4x8x8xf32> to vector<1x4x8x8xf32>
    %323 = vector.shape_cast %322 : vector<1x4x8x8xf32> to vector<4x8x8xf32>
    %324 = vector.extract_strided_slice %321 {offsets = [1, 0, 0, 0], sizes = [1, 4, 8, 8], strides = [1, 1, 1, 1]} : vector<4x4x8x8xf32> to vector<1x4x8x8xf32>
    %325 = vector.shape_cast %324 : vector<1x4x8x8xf32> to vector<4x8x8xf32>
    %326 = vector.extract_strided_slice %321 {offsets = [2, 0, 0, 0], sizes = [1, 4, 8, 8], strides = [1, 1, 1, 1]} : vector<4x4x8x8xf32> to vector<1x4x8x8xf32>
    %327 = vector.shape_cast %326 : vector<1x4x8x8xf32> to vector<4x8x8xf32>
    %328 = vector.extract_strided_slice %321 {offsets = [3, 0, 0, 0], sizes = [1, 4, 8, 8], strides = [1, 1, 1, 1]} : vector<4x4x8x8xf32> to vector<1x4x8x8xf32>
    %329 = vector.shape_cast %328 : vector<1x4x8x8xf32> to vector<4x8x8xf32>
    %330 = tpu.concatenate %323, %325, %327, %329 in 2 : vector<4x8x8xf32>, vector<4x8x8xf32>, vector<4x8x8xf32>, vector<4x8x8xf32> -> vector<4x8x32xf32>
    %331 = vector.shape_cast %330 : vector<4x8x32xf32> to vector<32x32xf32>
    %332 = arith.truncf %331 : vector<32x32xf32> to vector<32x32xbf16>
    %cst_88 = arith.constant dense<0.000000e+00> : vector<32x32xf32>
    %333 = tpu.matmul %332, %265, %cst_88 {dimension_numbers = #tpu.dot_dimension_numbers<[1], [0], [0], [1], [0, 0, 1, 1], [], []>} : vector<32x32xbf16>, vector<32x32xbf16>, vector<32x32xf32> -> vector<32x32xf32>
    %334 = vector.broadcast %273 : vector<1x32xf32> to vector<32x32xf32>
    %335 = arith.addf %333, %334 : vector<32x32xf32>
    %336 = arith.addf %261, %335 : vector<32x32xf32>
    %cst_89 = arith.constant dense<0.000000e+00> : vector<32xf32>
    %337 = vector.multi_reduction <add>, %336, %cst_89 [1] : vector<32x32xf32> to vector<32xf32>
    %338 = vector.shape_cast %337 : vector<32xf32> to vector<32x1xf32>
    %cst_90 = arith.constant 3.200000e+01 : f32
    %339 = vector.broadcast %cst_90 : f32 to vector<32x1xf32>
    %340 = arith.divf %338, %339 : vector<32x1xf32>
    %341 = vector.broadcast %340 : vector<32x1xf32> to vector<32x32xf32>
    %342 = arith.subf %336, %341 : vector<32x32xf32>
    %343 = arith.mulf %342, %342 : vector<32x32xf32>
    %cst_91 = arith.constant dense<0.000000e+00> : vector<32xf32>
    %344 = vector.multi_reduction <add>, %343, %cst_91 [1] : vector<32x32xf32> to vector<32xf32>
    %345 = vector.shape_cast %344 : vector<32xf32> to vector<32x1xf32>
    %cst_92 = arith.constant 3.200000e+01 : f32
    %346 = vector.broadcast %cst_92 : f32 to vector<32x1xf32>
    %347 = arith.divf %345, %346 : vector<32x1xf32>
    %348 = vector.broadcast %340 : vector<32x1xf32> to vector<32x32xf32>
    %349 = arith.subf %336, %348 : vector<32x32xf32>
    %cst_93 = arith.constant 9.99999974E-6 : f32
    %350 = vector.broadcast %cst_93 : f32 to vector<32x1xf32>
    %351 = arith.addf %347, %350 : vector<32x1xf32>
    %352 = math.rsqrt %351 : vector<32x1xf32>
    %353 = vector.broadcast %352 : vector<32x1xf32> to vector<32x32xf32>
    %354 = arith.mulf %349, %353 : vector<32x32xf32>
    %355 = vector.broadcast %274 : vector<1x32xf32> to vector<32x32xf32>
    %356 = arith.mulf %354, %355 : vector<32x32xf32>
    %357 = vector.broadcast %275 : vector<1x32xf32> to vector<32x32xf32>
    %358 = arith.addf %356, %357 : vector<32x32xf32>
    %359 = arith.truncf %358 : vector<32x32xf32> to vector<32x32xbf16>
    %cst_94 = arith.constant dense<0.000000e+00> : vector<32x64xf32>
    %360 = tpu.matmul %359, %267, %cst_94 {dimension_numbers = #tpu.dot_dimension_numbers<[1], [0], [0], [1], [0, 0, 1, 1], [], []>} : vector<32x32xbf16>, vector<32x64xbf16>, vector<32x64xf32> -> vector<32x64xf32>
    %361 = vector.broadcast %276 : vector<1x64xf32> to vector<32x64xf32>
    %362 = arith.addf %360, %361 : vector<32x64xf32>
    %cst_95 = arith.constant 0.000000e+00 : f32
    %363 = vector.broadcast %cst_95 : f32 to vector<32x64xf32>
    %364 = arith.maximumf %362, %363 : vector<32x64xf32>
    %365 = arith.truncf %364 : vector<32x64xf32> to vector<32x64xbf16>
    %cst_96 = arith.constant dense<0.000000e+00> : vector<32x32xf32>
    %366 = tpu.matmul %365, %269, %cst_96 {dimension_numbers = #tpu.dot_dimension_numbers<[1], [0], [0], [1], [0, 0, 1, 1], [], []>} : vector<32x64xbf16>, vector<64x32xbf16>, vector<32x32xf32> -> vector<32x32xf32>
    %367 = vector.broadcast %277 : vector<1x32xf32> to vector<32x32xf32>
    %368 = arith.addf %366, %367 : vector<32x32xf32>
    %369 = arith.addf %358, %368 : vector<32x32xf32>
    %cst_97 = arith.constant dense<0.000000e+00> : vector<32xf32>
    %370 = vector.multi_reduction <add>, %369, %cst_97 [1] : vector<32x32xf32> to vector<32xf32>
    %371 = vector.shape_cast %370 : vector<32xf32> to vector<32x1xf32>
    %cst_98 = arith.constant 3.200000e+01 : f32
    %372 = vector.broadcast %cst_98 : f32 to vector<32x1xf32>
    %373 = arith.divf %371, %372 : vector<32x1xf32>
    %374 = vector.broadcast %373 : vector<32x1xf32> to vector<32x32xf32>
    %375 = arith.subf %369, %374 : vector<32x32xf32>
    %376 = arith.mulf %375, %375 : vector<32x32xf32>
    %cst_99 = arith.constant dense<0.000000e+00> : vector<32xf32>
    %377 = vector.multi_reduction <add>, %376, %cst_99 [1] : vector<32x32xf32> to vector<32xf32>
    %378 = vector.shape_cast %377 : vector<32xf32> to vector<32x1xf32>
    %cst_100 = arith.constant 3.200000e+01 : f32
    %379 = vector.broadcast %cst_100 : f32 to vector<32x1xf32>
    %380 = arith.divf %378, %379 : vector<32x1xf32>
    %381 = vector.broadcast %373 : vector<32x1xf32> to vector<32x32xf32>
    %382 = arith.subf %369, %381 : vector<32x32xf32>
    %cst_101 = arith.constant 9.99999974E-6 : f32
    %383 = vector.broadcast %cst_101 : f32 to vector<32x1xf32>
    %384 = arith.addf %380, %383 : vector<32x1xf32>
    %385 = math.rsqrt %384 : vector<32x1xf32>
    %386 = vector.broadcast %385 : vector<32x1xf32> to vector<32x32xf32>
    %387 = arith.mulf %382, %386 : vector<32x32xf32>
    %388 = vector.broadcast %278 : vector<1x32xf32> to vector<32x32xf32>
    %389 = arith.mulf %387, %388 : vector<32x32xf32>
    %390 = vector.broadcast %279 : vector<1x32xf32> to vector<32x32xf32>
    %391 = arith.addf %389, %390 : vector<32x32xf32>
    %392 = vector.shape_cast %391 : vector<32x32xf32> to vector<2x2x8x32xf32>
    %393 = vector.extract_strided_slice %392 {offsets = [0, 0, 0, 0], sizes = [1, 2, 8, 32], strides = [1, 1, 1, 1]} : vector<2x2x8x32xf32> to vector<1x2x8x32xf32>
    %394 = vector.shape_cast %393 : vector<1x2x8x32xf32> to vector<2x8x32xf32>
    %395 = vector.extract_strided_slice %392 {offsets = [1, 0, 0, 0], sizes = [1, 2, 8, 32], strides = [1, 1, 1, 1]} : vector<2x2x8x32xf32> to vector<1x2x8x32xf32>
    %396 = vector.shape_cast %395 : vector<1x2x8x32xf32> to vector<2x8x32xf32>
    %397 = tpu.concatenate %394, %396 in 2 : vector<2x8x32xf32>, vector<2x8x32xf32> -> vector<2x8x64xf32>
    %398 = vector.extract_strided_slice %397 {offsets = [0, 0, 0], sizes = [2, 1, 64], strides = [1, 1, 1]} : vector<2x8x64xf32> to vector<2x1x64xf32>
    %399 = vector.shape_cast %398 : vector<2x1x64xf32> to vector<2x64xf32>
    %400 = vector.extract_strided_slice %397 {offsets = [0, 1, 0], sizes = [2, 1, 64], strides = [1, 1, 1]} : vector<2x8x64xf32> to vector<2x1x64xf32>
    %401 = vector.shape_cast %400 : vector<2x1x64xf32> to vector<2x64xf32>
    %402 = vector.extract_strided_slice %397 {offsets = [0, 2, 0], sizes = [2, 1, 64], strides = [1, 1, 1]} : vector<2x8x64xf32> to vector<2x1x64xf32>
    %403 = vector.shape_cast %402 : vector<2x1x64xf32> to vector<2x64xf32>
    %404 = vector.extract_strided_slice %397 {offsets = [0, 3, 0], sizes = [2, 1, 64], strides = [1, 1, 1]} : vector<2x8x64xf32> to vector<2x1x64xf32>
    %405 = vector.shape_cast %404 : vector<2x1x64xf32> to vector<2x64xf32>
    %406 = vector.extract_strided_slice %397 {offsets = [0, 4, 0], sizes = [2, 1, 64], strides = [1, 1, 1]} : vector<2x8x64xf32> to vector<2x1x64xf32>
    %407 = vector.shape_cast %406 : vector<2x1x64xf32> to vector<2x64xf32>
    %408 = vector.extract_strided_slice %397 {offsets = [0, 5, 0], sizes = [2, 1, 64], strides = [1, 1, 1]} : vector<2x8x64xf32> to vector<2x1x64xf32>
    %409 = vector.shape_cast %408 : vector<2x1x64xf32> to vector<2x64xf32>
    %410 = vector.extract_strided_slice %397 {offsets = [0, 6, 0], sizes = [2, 1, 64], strides = [1, 1, 1]} : vector<2x8x64xf32> to vector<2x1x64xf32>
    %411 = vector.shape_cast %410 : vector<2x1x64xf32> to vector<2x64xf32>
    %412 = vector.extract_strided_slice %397 {offsets = [0, 7, 0], sizes = [2, 1, 64], strides = [1, 1, 1]} : vector<2x8x64xf32> to vector<2x1x64xf32>
    %413 = vector.shape_cast %412 : vector<2x1x64xf32> to vector<2x64xf32>
    %414 = tpu.concatenate %399, %401, %403, %405, %407, %409, %411, %413 in 1 : vector<2x64xf32>, vector<2x64xf32>, vector<2x64xf32>, vector<2x64xf32>, vector<2x64xf32>, vector<2x64xf32>, vector<2x64xf32>, vector<2x64xf32> -> vector<2x512xf32>
    %c0_102 = arith.constant 0 : index
    %c0_103 = arith.constant 0 : index
    %415 = vector.load %arg7[%c0_102, %c0_103] : memref<2x512xf32, #tpu.memory_space<vmem>>, vector<2x512xf32>
    tpu.vector_store %arg7[%c0_102, %c0_103], %414 {strides = array<i32>} : memref<2x512xf32, #tpu.memory_space<vmem>>, vector<2x512xf32>,
    return
  }
  func.func @transform_0(%arg0: i32) -> (i32, i32, i32, i32) {
    %c0_i32 = arith.constant 0 : i32
    %c0_i32_0 = arith.constant 0 : i32
    %c0_i32_1 = arith.constant 0 : i32
    %c0_i32_2 = arith.constant 0 : i32
    return %c0_i32, %arg0, %c0_i32_0, %c0_i32_1 : i32, i32, i32, i32
  }
  func.func @transform_1(%arg0: i32) -> (i32, i32, i32) {
    %c0_i32 = arith.constant 0 : i32
    %c0_i32_0 = arith.constant 0 : i32
    %c0_i32_1 = arith.constant 0 : i32
    %c0_i32_2 = arith.constant 0 : i32
    return %c0_i32, %c0_i32_0, %c0_i32_1 : i32, i32, i32
  }
  func.func @transform_2(%arg0: i32) -> (i32, i32, i32) {
    %c0_i32 = arith.constant 0 : i32
    %c0_i32_0 = arith.constant 0 : i32
    %c0_i32_1 = arith.constant 0 : i32
    %c0_i32_2 = arith.constant 0 : i32
    return %c0_i32, %c0_i32_0, %c0_i32_1 : i32, i32, i32
  }
  func.func @transform_3(%arg0: i32) -> (i32, i32, i32) {
    %c0_i32 = arith.constant 0 : i32
    %c0_i32_0 = arith.constant 0 : i32
    %c0_i32_1 = arith.constant 0 : i32
    %c0_i32_2 = arith.constant 0 : i32
    return %c0_i32, %c0_i32_0, %c0_i32_1 : i32, i32, i32
  }
  func.func @transform_4(%arg0: i32) -> (i32, i32, i32) {
    %c0_i32 = arith.constant 0 : i32
    %c0_i32_0 = arith.constant 0 : i32
    %c0_i32_1 = arith.constant 0 : i32
    %c0_i32_2 = arith.constant 0 : i32
    return %c0_i32, %c0_i32_0, %c0_i32_1 : i32, i32, i32
  }
  func.func @transform_5(%arg0: i32) -> (i32, i32, i32) {
    %c0_i32 = arith.constant 0 : i32
    %c0_i32_0 = arith.constant 0 : i32
    %c0_i32_1 = arith.constant 0 : i32
    %c0_i32_2 = arith.constant 0 : i32
    return %c0_i32, %c0_i32_0, %c0_i32_1 : i32, i32, i32
  }
  func.func @transform_6(%arg0: i32) -> (i32, i32) {
    %c0_i32 = arith.constant 0 : i32
    %c0_i32_0 = arith.constant 0 : i32
    return %arg0, %c0_i32 : i32, i32
  }
}

</mosaic_0001>

<bundles_post_ra>
// kernel: tpu_custom_call.1
= control target key start
LH: loop header
LB: loop body
LE: loop exit
PB: predicated region body
PF: predicated region fallthrough
CT: control target
= control target key end

     0   :  { %11 = vsyncpa [#allocation3], 0  ;;  %s10705_s0 = inlined_call_operand.hbm [shape: f32[2,2,8,32], index: 0, kind: input, shape index: {}]   ;;  %s10706_s1 = inlined_call_operand.vmem [shape: bf16[3,32,96], index: 1, kind: input, shape index: {}]   ;;  %s10707_s2 = inlined_call_operand.vmem [shape: bf16[3,32,32], index: 2, kind: input, shape index: {}]   ;;  %s10708_s3 = inlined_call_operand.vmem [shape: bf16[3,32,64], index: 3, kind: input, shape index: {}]   ;;  %s10709_s4 = inlined_call_operand.vmem [shape: bf16[3,64,32], index: 4, kind: input, shape index: {}]   ;;  %s10710_s5 = inlined_call_operand.hbm [shape: f32[3,8,128], index: 5, kind: input, shape index: {}]   ;;  %s10711_s6 = inlined_call_operand.hbm [shape: f32[2,512], index: 6, kind: output, shape index: {}]  }
   0x1   :  { %12 = vsyncpa [#allocation6], 0 }
   0x2   :  { %13 = vsyncpa [#allocation4], 0  ;;  %s8832_s21 = smov [#allocation2]   ;;  %s8760_s25 = scalar_lea.hbm %s10705_s0, 512 }
   0x3   :  { %s19_s22 = sshll.u32 %s8832_s21, 4  ;;  %p8761_p0 = scmp.ne.s32.totalorder %s10705_s0, %s8760_s25  ;;  %s20_s22 = int_to_ptr.vmem [resolvable:$true] %s19_s22 }
   0x4   :  { %p8764_p1 = scmp.lt.u32.totalorder %s8760_s25, %s10705_s0 }
   0x6   :  { %p8766_p2 = pnand %p8764_p1, %p8761_p0 }
   0x8   :  { %8769 = shalt.err (!%p8766_p2)
}
   0x9   :  { %s8770_s30 = scalar_lea.vmem %s20_s22, 512  ;;  %p8775_p4 = scmp.lt.s32.totalorder %s20_s22, %s20_s22 }
   0xa   :  { %p8771_p3 = scmp.ne.s32.totalorder %s20_s22, %s8770_s30  ;;  %p8776_p5 = scmp.lt.s32.totalorder %s8770_s30, %s8770_s30 }
   0xc   :  { %p8777_p6 = por %p8776_p5, %p8775_p4 }
   0xe   :  { %p8778_p7 = pnand %p8777_p6, %p8771_p3 }
  0x10   :  { %8781 = shalt.err (!%p8778_p7)
}
  0x11   :  { %s8833_s7 = smov 128   ;;  %s8834_s8 = smov 8  }
  0x12   :  { %25 = dma.hbm_to_vmem [thread:$0]  %s10705_s0, 512, %s20_s22, [#allocation3], %s8833_s7, %s8833_s7, %s8834_s8  }
  0x13   :  { %s8835_s11 = smov [#allocation5]   ;;  %s8782_s15 = scalar_lea.hbm %s10710_s5, 384 }
  0x14   :  { %s39_s12 = sshll.u32 %s8835_s11, 4  ;;  %p8783_p8 = scmp.ne.s32.totalorder %s10710_s5, %s8782_s15  ;;  %s40_s12 = int_to_ptr.vmem [resolvable:$true] %s39_s12 }
  0x15   :  { %p8786_p9 = scmp.lt.u32.totalorder %s8782_s15, %s10710_s5 }
  0x17   :  { %p8788_p10 = pnand %p8786_p9, %p8783_p8 }
  0x19   :  { %8791 = shalt.err (!%p8788_p10)
}
  0x1a   :  { %s8792_s20 = scalar_lea.vmem %s40_s12, 384  ;;  %p8797_p12 = scmp.lt.s32.totalorder %s40_s12, %s40_s12 }
  0x1b   :  { %p8793_p11 = scmp.ne.s32.totalorder %s40_s12, %s8792_s20  ;;  %p8798_p13 = scmp.lt.s32.totalorder %s8792_s20, %s8792_s20 }
  0x1d   :  { %p8799_p0 = por %p8798_p13, %p8797_p12 }
  0x1f   :  { %p8800_p1 = pnand %p8799_p0, %p8793_p11 }
  0x21   :  { %8803 = shalt.err (!%p8800_p1)
}
  0x22   :  { %45 = dma.hbm_to_vmem [thread:$0]  %s10710_s5, 384, %s40_s12, [#allocation6], %s8833_s7, %s8833_s7, %s8834_s8  }
  0x23   :  { %8826 = dma.done.wait [#allocation3], 512  }
  0x24   :  { %8827 = vsyncadd [#allocation3], 4294966784 }
  0x25   :  { %8828 = dma.done.wait [#allocation6], 384  }
  0x26   :  { %8829 = vsyncadd [#allocation6], 4294966912  ;;  %v8483_v0 = vld [vmem:[%s10706_s1] sm:$0xff]   ;;  %v8484_v1 = vld [vmem:[%s10706_s1 + $0x8] sm:$0xff]   ;;  %vm96_vm0 = vcmask 261120   ;;  %v80_v8 = vlaneseq  ;;  %s8836_s5 = smov 112  }
  0x27   :  { %7603 = vmatprep.subr.bf16.mxu0 %v8483_v0  ;;  %v53_v2 = vld [vmem:[#allocation2] sm:$0xff]  ;;  %v54_v3 = vld [vmem:[#allocation2 + $0x8] sm:$0xff]  ;;  %v55_v5 = vld [vmem:[#allocation2 + $0x10] sm:$0xff]  ;;  %s8837_s26 = smov 120   ;;  %v8838_v23 = vmov 0.0   ;;  %vm8839_vm1 = vmmov 0  }
  0x28   :  { %7604 = vmatpush3.bf16.msra.mxu0 %v8483_v0  ;;  %v78_v4 = vpack.c.bf16 %v54_v3, %v53_v2  ;;  %v56_v6 = vld [vmem:[#allocation2 + $0x18] sm:$0xff]  ;;  %v8917_v9 = vshrl.u32 %v80_v8, 7  ;;  %v77_v11 = vld [vmem:[#allocation5] sm:$0xff]  ;;  %7611 = vmatprep.subr.bf16.mxu1 %v8838_v23  ;;  %s8840_s27 = smov 104   ;;  %s8841_s28 = smov 96   ;;  %vm211_vm2 = vcmask 64512  }
  0x29   :  { %7605 = vmatprep.subr.bf16.mxu0 %v8484_v1  ;;  %v79_v7 = vpack.c.bf16 %v56_v6, %v55_v5  ;;  %7613 = vmatprep.mubr.msk.bf16.mxu1 %vm8839_vm1, %v8838_v23  ;;  %s8842_s29 = smov 64   ;;  %vm1190_vm3 = vcmask 1043456   ;;  %s8843_s30 = smov 16   ;;  %vm2006_vm4 = vcmask 130048   ;;  %vm2011_vm5 = vcmask 195584  }
  0x2a   :  { %7607 = vmatprep.mubr.msk.bf16.mxu0 %vm96_vm0, %v78_v4  ;;  %v8920_v10 = vsub.s32 0, %v8917_v9  ;;  %s8844_s12 = smov 24   ;;  %vm2269_vm6 = vcmask 523264   ;;  %vm7086_vm7 = vcmask 1041409  }
  0x2c   :  { %7606 = vmatpush3.bf16.msra.mxu0 %v8484_v1  ;;  %v83_v12 = vrot.slane %v77_v11, %v8920_v10 }
  0x2d   :  { %7617 = vmatprep.subr.bf16.mxu0 %v8838_v23 }
  0x2f   :  { %7608 = vmatmul.mubr.msk.bf16.vlgmr.msra.gmra.mrb[0].mxu0 %vm96_vm0, %v79_v7 }
  0x30   :  { %7619 = vmatprep.mubr.msk.bf16.mxu0 %vm8839_vm1, %v8838_v23 }
 0x102   :  { %v7609_v13 = vpop.f32.mrb[0].mxu0 }
 0x103   :  { %v137_v14 = vpop.f32.mrb[1].mxu0  ;;  %v146_v16 = vadd.f32 %v7609_v13, %v83_v12 }
 0x104   :  { %v7610_v15 = vpop.f32.mrb[2].mxu0  ;;  %v138_v19 = vadd.f32 %v137_v14, %v83_v12 }
 0x105   :  { %v149_v17 = vadd.f32 %v7610_v15, %v83_v12  ;;  %v140_v18 = vpop.f32.mrb[3].mxu0  ;;  %v8945_v27 = vpack.c.bf16 %v146_v16, %v146_v16 }
 0x106   :  { %v141_v20 = vadd.f32 %v140_v18, %v83_v12  ;;  %v8937_v25 = vpack.c.bf16 %v138_v19, %v138_v19 }
 0x107   :  { %v8318_v21 = vpack.i.bf16 %v149_v17, %v146_v16  ;;  %v8943_v26 = vpack.c.bf16 %v149_v17, %v149_v17 }
 0x108   :  { %v8313_v22 = vpack.i.bf16 %v141_v20, %v138_v19  ;;  %v8935_v24 = vpack.c.bf16 %v141_v20, %v141_v20 }
 0x10a   :  { %8314 = vrot.lane.b32.xlu1 %v8313_v22, %s8836_s5  ;;  %8304 = vrot.lane.b32.xlu0 %v8313_v22, %s8837_s26 }
 0x10e   :  { %8319 = vrot.lane.b32.xlu1 %v8318_v21, %s8836_s5  ;;  %8309 = vrot.lane.b32.xlu0 %v8318_v21, %s8837_s26 }
 0x112   :  { %8329 = vrot.lane.b32.xlu1 %v8318_v21, %s8840_s27  ;;  %8324 = vrot.lane.b32.xlu0 %v8313_v22, %s8840_s27 }
 0x116   :  { %259 = vrot.lane.b32.xlu1 %v8935_v24, %s8841_s28  ;;  %209 = vrot.lane.b32.xlu0 %v8937_v25, %s8841_s28 }
 0x11a   :  { %357 = vrot.lane.b32.xlu1 %v8943_v26, %s8841_s28  ;;  %308 = vrot.lane.b32.xlu0 %v8945_v27, %s8841_s28 }
 0x17c   :  { %v8315_v28 = vpop.permute.xlu1 %8314  ;;  %v8305_v29 = vpop.permute.xlu0 %8304 }
 0x17d   :  { %v8307_v30 = vunpack.i.h.bf16 %v8305_v29  ;;  %v8306_v31 = vunpack.i.l.bf16 %v8305_v29  ;;  %v8317_v38 = vunpack.i.h.bf16 %v8315_v28  ;;  %v8316_v39 = vunpack.i.l.bf16 %v8315_v28 }
 0x17f   :  { %v8951_v32 = vpack.c.bf16 %v8307_v30, %v8307_v30  ;;  %v8953_v33 = vpack.c.bf16 %v8306_v31, %v8306_v31  ;;  %v8967_v46 = vpack.c.bf16 %v8317_v38, %v8317_v38  ;;  %v8969_v47 = vpack.c.bf16 %v8316_v39, %v8316_v39 }
 0x180   :  { %v8320_v34 = vpop.permute.xlu1 %8319  ;;  %v8310_v35 = vpop.permute.xlu0 %8309 }
 0x181   :  { %v8312_v36 = vunpack.i.h.bf16 %v8310_v35  ;;  %v8311_v37 = vunpack.i.l.bf16 %v8310_v35  ;;  %455 = vrot.lane.b32.xlu1 %v8951_v32, %s8841_s28  ;;  %406 = vrot.lane.b32.xlu0 %v8953_v33, %s8841_s28  ;;  %v8322_v44 = vunpack.i.h.bf16 %v8320_v34  ;;  %v8321_v45 = vunpack.i.l.bf16 %v8320_v34 }
 0x183   :  { %v8959_v40 = vpack.c.bf16 %v8312_v36, %v8312_v36  ;;  %v8961_v41 = vpack.c.bf16 %v8311_v37, %v8311_v37  ;;  %v8977_v53 = vpack.c.bf16 %v8322_v44, %v8322_v44  ;;  %v8979_v54 = vpack.c.bf16 %v8321_v45, %v8321_v45 }
 0x184   :  { %v8330_v42 = vpop.permute.xlu1 %8329  ;;  %v8325_v43 = vpop.permute.xlu0 %8324 }
 0x185   :  { %553 = vrot.lane.b32.xlu1 %v8959_v40, %s8841_s28  ;;  %504 = vrot.lane.b32.xlu0 %v8961_v41, %s8841_s28  ;;  %v8327_v52 = vunpack.i.h.bf16 %v8325_v43  ;;  %v8326_v55 = vunpack.i.l.bf16 %v8325_v43  ;;  %v8332_v56 = vunpack.i.h.bf16 %v8330_v42  ;;  %v8331_v60 = vunpack.i.l.bf16 %v8330_v42 }
 0x187   :  { %v8987_v59 = vpack.c.bf16 %v8327_v52, %v8327_v52  ;;  %v8989_v61 = vpack.c.bf16 %v8326_v55, %v8326_v55  ;;  %v9001_v0 = vpack.c.bf16 %v8332_v56, %v8332_v56  ;;  %v9003_v1 = vpack.c.bf16 %v8331_v60, %v8331_v60 }
 0x188   :  { %v260_v48 = vpop.permute.xlu1 %259  ;;  %v210_v49 = vpop.permute.xlu0 %209 }
 0x189   :  { %v265_v50 = vsel %vm211_vm2, %v260_v48, 0  ;;  %651 = vrot.lane.b32.xlu1 %v8967_v46, %s8841_s28  ;;  %602 = vrot.lane.b32.xlu0 %v8969_v47, %s8841_s28  ;;  %v216_v51 = vsel %vm211_vm2, %v210_v49, 0 }
 0x18a   :  { %7612 = vmatpush3.bf16.xpose.msra.mxu1 %v216_v51  ;;  %7618 = vmatpush3.bf16.xpose.msra.mxu0 %v265_v50 }
 0x18b   :  { %7629 = vmatprep.subr.bf16.mxu0 %v8838_v23  ;;  %7623 = vmatprep.subr.bf16.mxu1 %v8838_v23 }
 0x18c   :  { %v358_v57 = vpop.permute.xlu1 %357  ;;  %v309_v58 = vpop.permute.xlu0 %308 }
 0x18d   :  { %749 = vrot.lane.b32.xlu1 %v8977_v53, %s8841_s28  ;;  %700 = vrot.lane.b32.xlu0 %v8979_v54, %s8841_s28  ;;  %v363_v62 = vsel %vm211_vm2, %v358_v57, 0  ;;  %v314_v63 = vsel %vm211_vm2, %v309_v58, 0 }
 0x191   :  { %7620 = vmatmul.mubr.msk.bf16.vlgmr.msra.gmra.mrb[4].mxu0 %vm211_vm2, %v8935_v24  ;;  %847 = vrot.lane.b32.xlu1 %v8987_v59, %s8841_s28 }
 0x192   :  { %798 = vrot.lane.b32.xlu0 %v8989_v61, %s8841_s28  ;;  %7614 = vmatmul.mubr.msk.bf16.vlgmr.msra.gmra.mrb[0].mxu1 %vm211_vm2, %v8937_v25 }
 0x193   :  { %7624 = vmatpush3.bf16.xpose.msra.mxu1 %v314_v63  ;;  %7630 = vmatpush3.bf16.xpose.msra.mxu0 %v363_v62 }
 0x194   :  { %7625 = vmatprep.mubr.msk.bf16.mxu1 %vm8839_vm1, %v8838_v23  ;;  %7631 = vmatprep.mubr.msk.bf16.mxu0 %vm8839_vm1, %v8838_v23 }
 0x195   :  { %945 = vrot.lane.b32.xlu1 %v9001_v0, %s8841_s28  ;;  %7635 = vmatprep.subr.bf16.mxu1 %v8838_v23 }
 0x196   :  { %896 = vrot.lane.b32.xlu0 %v9003_v1, %s8841_s28  ;;  %7641 = vmatprep.subr.bf16.mxu0 %v8838_v23 }
 0x199   :  { %1185 = vrot.lane.b32.xlu1 %v8937_v25, %s8842_s29 }
 0x19a   :  { %7632 = vmatmul.mubr.msk.bf16.vlgmr.msra.gmra.mrb[8].mxu0 %vm211_vm2, %v8943_v26  ;;  %1234 = vrot.lane.b32.xlu0 %v8935_v24, %s8842_s29 }
 0x19b   :  { %7626 = vmatmul.mubr.msk.bf16.vlgmr.msra.gmra.mrb[4].mxu1 %vm211_vm2, %v8945_v27  ;;  %7643 = vmatprep.mubr.msk.bf16.mxu0 %vm8839_vm1, %v8838_v23 }
 0x19c   :  { %7637 = vmatprep.mubr.msk.bf16.mxu1 %vm8839_vm1, %v8838_v23 }
 0x19d   :  { %1282 = vrot.lane.b32.xlu1 %v8945_v27, %s8842_s29 }
 0x19e   :  { %1330 = vrot.lane.b32.xlu0 %v8943_v26, %s8842_s29 }
 0x1a1   :  { %1378 = vrot.lane.b32.xlu1 %v8953_v33, %s8842_s29 }
 0x1a2   :  { %1522 = vrot.lane.b32.xlu0 %v8959_v40, %s8842_s29 }
 0x1a5   :  { %1474 = vrot.lane.b32.xlu1 %v8961_v41, %s8842_s29 }
 0x1a6   :  { %1426 = vrot.lane.b32.xlu0 %v8951_v32, %s8842_s29 }
 0x1a9   :  { %1570 = vrot.lane.b32.xlu1 %v8969_v47, %s8842_s29 }
 0x1f3   :  { %v456_v2 = vpop.permute.xlu1 %455  ;;  %v407_v3 = vpop.permute.xlu0 %406 }
 0x1f4   :  { %v461_v4 = vsel %vm211_vm2, %v456_v2, 0  ;;  %v412_v5 = vsel %vm211_vm2, %v407_v3, 0 }
 0x1f5   :  { %7636 = vmatpush3.bf16.xpose.msra.mxu1 %v412_v5  ;;  %7642 = vmatpush3.bf16.xpose.msra.mxu0 %v461_v4 }
 0x1f6   :  { %7647 = vmatprep.subr.bf16.mxu1 %v8838_v23  ;;  %7653 = vmatprep.subr.bf16.mxu0 %v8838_v23 }
 0x1f7   :  { %v554_v6 = vpop.permute.xlu1 %553  ;;  %v505_v7 = vpop.permute.xlu0 %504 }
 0x1f8   :  { %v559_v8 = vsel %vm211_vm2, %v554_v6, 0  ;;  %v510_v11 = vsel %vm211_vm2, %v505_v7, 0 }
 0x1fb   :  { %v652_v12 = vpop.permute.xlu1 %651  ;;  %v603_v13 = vpop.permute.xlu0 %602 }
 0x1fc   :  { %7638 = vmatmul.mubr.msk.bf16.vlgmr.msra.gmra.mrb[8].mxu1 %vm211_vm2, %v8953_v33  ;;  %7644 = vmatmul.mubr.msk.bf16.vlgmr.msra.gmra.mrb[12].mxu0 %vm211_vm2, %v8951_v32  ;;  %v657_v14 = vsel %vm211_vm2, %v652_v12, 0  ;;  %v608_v15 = vsel %vm211_vm2, %v603_v13, 0 }
 0x1fd   :  { %7648 = vmatpush3.bf16.xpose.msra.mxu1 %v510_v11  ;;  %7654 = vmatpush3.bf16.xpose.msra.mxu0 %v559_v8 }
 0x1fe   :  { %7655 = vmatprep.mubr.msk.bf16.mxu0 %vm8839_vm1, %v8838_v23  ;;  %7649 = vmatprep.mubr.msk.bf16.mxu1 %vm8839_vm1, %v8838_v23 }
 0x1ff   :  { %7659 = vmatprep.subr.bf16.mxu1 %v8838_v23  ;;  %7665 = vmatprep.subr.bf16.mxu0 %v8838_v23  ;;  %v750_v16 = vpop.permute.xlu1 %749  ;;  %v701_v17 = vpop.permute.xlu0 %700 }
 0x200   :  { %v755_v18 = vsel %vm211_vm2, %v750_v16, 0  ;;  %v706_v19 = vsel %vm211_vm2, %v701_v17, 0 }
 0x203   :  { %v848_v20 = vpop.permute.xlu1 %847 }
 0x204   :  { %7650 = vmatmul.mubr.msk.bf16.vlgmr.msra.gmra.mrb[12].mxu1 %vm211_vm2, %v8961_v41  ;;  %7656 = vmatmul.mubr.msk.bf16.vlgmr.msra.gmra.mrb[16].mxu0 %vm211_vm2, %v8959_v40  ;;  %v799_v21 = vpop.permute.xlu0 %798  ;;  %v853_v22 = vsel %vm211_vm2, %v848_v20, 0 }
 0x205   :  { %7660 = vmatpush3.bf16.xpose.msra.mxu1 %v608_v15  ;;  %7666 = vmatpush3.bf16.xpose.msra.mxu0 %v657_v14  ;;  %v804_v24 = vsel %vm211_vm2, %v799_v21, 0 }
 0x206   :  { %7667 = vmatprep.mubr.msk.bf16.mxu0 %vm8839_vm1, %v8838_v23  ;;  %7661 = vmatprep.mubr.msk.bf16.mxu1 %vm8839_vm1, %v8838_v23 }
 0x207   :  { %7671 = vmatprep.subr.bf16.mxu1 %v8838_v23  ;;  %7677 = vmatprep.subr.bf16.mxu0 %v8838_v23  ;;  %v946_v25 = vpop.permute.xlu1 %945 }
 0x208   :  { %v897_v26 = vpop.permute.xlu0 %896  ;;  %v951_v27 = vsel %vm211_vm2, %v946_v25, 0 }
 0x209   :  { %v902_v28 = vsel %vm211_vm2, %v897_v26, 0 }
 0x20b   :  { %v1186_v29 = vpop.permute.xlu1 %1185 }
 0x20c   :  { %7662 = vmatmul.mubr.msk.bf16.vlgmr.msra.gmra.mrb[16].mxu1 %vm211_vm2, %v8969_v47  ;;  %7668 = vmatmul.mubr.msk.bf16.vlgmr.msra.gmra.mrb[20].mxu0 %vm211_vm2, %v8967_v46  ;;  %v1235_v30 = vpop.permute.xlu0 %1234  ;;  %v1192_v31 = vsel %vm1190_vm3, %v1186_v29, 0 }
 0x20d   :  { %7672 = vmatpush3.bf16.xpose.msra.mxu1 %v706_v19  ;;  %7678 = vmatpush3.bf16.xpose.msra.mxu0 %v755_v18  ;;  %v1240_v32 = vsel %vm1190_vm3, %v1235_v30, 0 }
 0x20e   :  { %7679 = vmatprep.mubr.msk.bf16.mxu0 %vm8839_vm1, %v8838_v23  ;;  %7673 = vmatprep.mubr.msk.bf16.mxu1 %vm8839_vm1, %v8838_v23 }
 0x20f   :  { %7683 = vmatprep.subr.bf16.mxu1 %v8838_v23  ;;  %7689 = vmatprep.subr.bf16.mxu0 %v8838_v23 }
 0x214   :  { %7674 = vmatmul.mubr.msk.bf16.vlgmr.msra.gmra.mrb[20].mxu1 %vm211_vm2, %v8979_v54  ;;  %7680 = vmatmul.mubr.msk.bf16.vlgmr.msra.gmra.mrb[24].mxu0 %vm211_vm2, %v8977_v53 }
 0x215   :  { %7684 = vmatpush3.bf16.xpose.msra.mxu1 %v804_v24  ;;  %7690 = vmatpush3.bf16.xpose.msra.mxu0 %v853_v22 }
 0x216   :  { %7691 = vmatprep.mubr.msk.bf16.mxu0 %vm8839_vm1, %v8838_v23  ;;  %7685 = vmatprep.mubr.msk.bf16.mxu1 %vm8839_vm1, %v8838_v23 }
 0x217   :  { %7695 = vmatprep.subr.bf16.mxu1 %v8838_v23  ;;  %7701 = vmatprep.subr.bf16.mxu0 %v8838_v23 }
 0x21c   :  { %7686 = vmatmul.mubr.msk.bf16.vlgmr.msra.gmra.mrb[24].mxu1 %vm211_vm2, %v8989_v61  ;;  %7692 = vmatmul.mubr.msk.bf16.vlgmr.msra.gmra.mrb[28].mxu0 %vm211_vm2, %v8987_v59 }
 0x21d   :  { %7696 = vmatpush3.bf16.xpose.msra.mxu1 %v902_v28  ;;  %7702 = vmatpush3.bf16.xpose.msra.mxu0 %v951_v27 }
 0x21e   :  { %7697 = vmatprep.mubr.msk.bf16.mxu1 %vm8839_vm1, %v8838_v23  ;;  %7703 = vmatprep.mubr.msk.bf16.mxu0 %vm8839_vm1, %v8838_v23 }
 0x21f   :  { %7707 = vmatprep.subr.bf16.mxu1 %v8838_v23  ;;  %7713 = vmatprep.subr.bf16.mxu0 %v8838_v23 }
 0x224   :  { %7698 = vmatmul.mubr.msk.bf16.vlgmr.msra.gmra.mrb[28].mxu1 %vm211_vm2, %v9003_v1  ;;  %7704 = vmatmul.mubr.msk.bf16.vlgmr.msra.gmra.mrb[32].mxu0 %vm211_vm2, %v9001_v0 }
 0x225   :  { %7708 = vmatpush3.bf16.msra.mxu1 %v1192_v31  ;;  %7714 = vmatpush3.bf16.msra.mxu0 %v1240_v32 }
 0x226   :  { %7715 = vmatprep.mubr.msk.bf16.mxu0 %vm8839_vm1, %v8838_v23  ;;  %7725 = vmatprep.subr.bf16.mxu0 %v8838_v23 }
 0x227   :  { %7709 = vmatprep.mubr.msk.bf16.mxu1 %vm8839_vm1, %v8838_v23  ;;  %7719 = vmatprep.subr.bf16.mxu1 %v8838_v23 }
 0x264   :  { %v9117_v33 = vpop.f32.mrb[4].mxu0 }
 0x265   :  { %v9119_v34 = vpop.f32.mrb[0].mxu1  ;;  %v7621_v35 = vpop.f32.mrb[5].mxu0  ;;  %v996_v36 = vsel %vm211_vm2, %v9117_v33, -inf }
 0x266   :  { %v7615_v37 = vpop.f32.mrb[1].mxu1  ;;  %v304_v38 = vpop.f32.mrb[6].mxu0  ;;  %997 = vmax.xlane.f32.xlu1 %v996_v36  ;;  %v993_v39 = vsel %vm211_vm2, %v9119_v34, -inf }
 0x267   :  { %994 = vmax.xlane.f32.xlu0 %v993_v39  ;;  %v255_v40 = vpop.f32.mrb[2].mxu1  ;;  %v7622_v41 = vpop.f32.mrb[7].mxu0 }
 0x268   :  { %v7616_v42 = vpop.f32.mrb[3].mxu1 }
 0x26d   :  { %v9125_v43 = vpop.f32.mrb[8].mxu0 }
 0x26e   :  { %v9127_v44 = vpop.f32.mrb[4].mxu1  ;;  %v7633_v45 = vpop.f32.mrb[9].mxu0  ;;  %v1002_v55 = vsel %vm211_vm2, %v9125_v43, -inf }
 0x26f   :  { %v7627_v47 = vpop.f32.mrb[5].mxu1  ;;  %v402_v48 = vpop.f32.mrb[10].mxu0  ;;  %v999_v49 = vsel %vm211_vm2, %v9127_v44, -inf }
 0x270   :  { %1000 = vmax.xlane.f32.xlu0 %v999_v49  ;;  %v353_v50 = vpop.f32.mrb[6].mxu1  ;;  %v7634_v51 = vpop.f32.mrb[11].mxu0 }
 0x271   :  { %v7628_v52 = vpop.f32.mrb[7].mxu1 }
 0x274   :  { %1003 = vmax.xlane.f32.xlu0 %v1002_v55 }
 0x2cf   :  { %v9133_v56 = vpop.f32.mrb[8].mxu1  ;;  %v9135_v57 = vpop.f32.mrb[12].mxu0 }
 0x2d0   :  { %v7639_v58 = vpop.f32.mrb[9].mxu1  ;;  %v7645_v60 = vpop.f32.mrb[13].mxu0  ;;  %v1008_v62 = vsel %vm211_vm2, %v9135_v57, -inf  ;;  %v1005_v63 = vsel %vm211_vm2, %v9133_v56, -inf }
 0x2d1   :  { %v500_v2 = vpop.f32.mrb[14].mxu0  ;;  %1009 = vmax.xlane.f32.xlu0 %v1008_v62  ;;  %1006 = vmax.xlane.f32.xlu1 %v1005_v63  ;;  %v451_v3 = vpop.f32.mrb[10].mxu1 }
 0x2d2   :  { %v7640_v4 = vpop.f32.mrb[11].mxu1  ;;  %v7646_v5 = vpop.f32.mrb[15].mxu0 }
 0x2d7   :  { %v9141_v6 = vpop.f32.mrb[12].mxu1  ;;  %v9143_v7 = vpop.f32.mrb[16].mxu0 }
 0x2d8   :  { %v7651_v8 = vpop.f32.mrb[13].mxu1  ;;  %v7657_v11 = vpop.f32.mrb[17].mxu0  ;;  %v1014_v12 = vsel %vm211_vm2, %v9143_v7, -inf  ;;  %v1011_v13 = vsel %vm211_vm2, %v9141_v6, -inf }
 0x2d9   :  { %v598_v14 = vpop.f32.mrb[18].mxu0  ;;  %1015 = vmax.xlane.f32.xlu0 %v1014_v12  ;;  %1012 = vmax.xlane.f32.xlu1 %v1011_v13  ;;  %v549_v15 = vpop.f32.mrb[14].mxu1 }
 0x2da   :  { %v7652_v16 = vpop.f32.mrb[15].mxu1  ;;  %v7658_v17 = vpop.f32.mrb[19].mxu0 }
 0x2db   :  { %v9181_v12 = vpop.permute.xlu1 %1282  ;;  %v9183_v13 = vpop.permute.xlu0 %1330 }
 0x2df   :  { %v9149_v18 = vpop.f32.mrb[16].mxu1  ;;  %v9151_v19 = vpop.f32.mrb[20].mxu0 }
 0x2e0   :  { %v7663_v20 = vpop.f32.mrb[17].mxu1  ;;  %v7669_v21 = vpop.f32.mrb[21].mxu0  ;;  %v1020_v22 = vsel %vm211_vm2, %v9151_v19, -inf  ;;  %v1017_v24 = vsel %vm211_vm2, %v9149_v18, -inf }
 0x2e1   :  { %v696_v25 = vpop.f32.mrb[22].mxu0  ;;  %1021 = vmax.xlane.f32.xlu0 %v1020_v22  ;;  %1018 = vmax.xlane.f32.xlu1 %v1017_v24  ;;  %v647_v26 = vpop.f32.mrb[18].mxu1 }
 0x2e2   :  { %v7664_v27 = vpop.f32.mrb[19].mxu1  ;;  %v7670_v28 = vpop.f32.mrb[23].mxu0 }
 0x2e3   :  { %v9185_v14 = vpop.permute.xlu1 %1378  ;;  %v9187_v15 = vpop.permute.xlu0 %1522 }
 0x2e7   :  { %v9157_v29 = vpop.f32.mrb[20].mxu1  ;;  %v9159_v30 = vpop.f32.mrb[24].mxu0 }
 0x2e8   :  { %v7675_v31 = vpop.f32.mrb[21].mxu1  ;;  %v7681_v32 = vpop.f32.mrb[25].mxu0  ;;  %v1026_v35 = vsel %vm211_vm2, %v9159_v30, -inf  ;;  %v1023_v36 = vsel %vm211_vm2, %v9157_v29, -inf }
 0x2e9   :  { %v794_v37 = vpop.f32.mrb[26].mxu0  ;;  %1027 = vmax.xlane.f32.xlu0 %v1026_v35  ;;  %1024 = vmax.xlane.f32.xlu1 %v1023_v36  ;;  %v745_v38 = vpop.f32.mrb[22].mxu1 }
 0x2ea   :  { %v7676_v39 = vpop.f32.mrb[23].mxu1  ;;  %v7682_v40 = vpop.f32.mrb[27].mxu0 }
 0x2eb   :  { %v9191_v16 = vpop.permute.xlu1 %1474  ;;  %v9193_v17 = vpop.permute.xlu0 %1426 }
 0x2ef   :  { %v9165_v41 = vpop.f32.mrb[24].mxu1  ;;  %v9167_v42 = vpop.f32.mrb[28].mxu0 }
 0x2f0   :  { %v7687_v45 = vpop.f32.mrb[25].mxu1  ;;  %v7693_v47 = vpop.f32.mrb[29].mxu0  ;;  %v1032_v48 = vsel %vm211_vm2, %v9167_v42, -inf  ;;  %v1029_v49 = vsel %vm211_vm2, %v9165_v41, -inf }
 0x2f1   :  { %v892_v50 = vpop.f32.mrb[30].mxu0  ;;  %1033 = vmax.xlane.f32.xlu0 %v1032_v48  ;;  %1030 = vmax.xlane.f32.xlu1 %v1029_v49  ;;  %v843_v51 = vpop.f32.mrb[26].mxu1 }
 0x2f2   :  { %v7688_v52 = vpop.f32.mrb[27].mxu1  ;;  %v7694_v55 = vpop.f32.mrb[31].mxu0 }
 0x2f3   :  { %v9199_v21 = vpop.permute.xlu1 %1570 }
 0x2f4   :  { %v995_v20 = vpop.xlane.xlu0 %994 }
 0x2f7   :  { %v9173_v58 = vpop.f32.mrb[28].mxu1  ;;  %v9175_v60 = vpop.f32.mrb[32].mxu0 }
 0x2f8   :  { %v7699_v62 = vpop.f32.mrb[29].mxu1  ;;  %v7705_v63 = vpop.f32.mrb[33].mxu0  ;;  %v1038_v2 = vsel %vm211_vm2, %v9175_v60, -inf  ;;  %v1035_v3 = vsel %vm211_vm2, %v9173_v58, -inf }
 0x2f9   :  { %v990_v4 = vpop.f32.mrb[34].mxu0  ;;  %1039 = vmax.xlane.f32.xlu0 %v1038_v2  ;;  %1036 = vmax.xlane.f32.xlu1 %v1035_v3  ;;  %v941_v5 = vpop.f32.mrb[30].mxu1 }
 0x2fa   :  { %v7700_v8 = vpop.f32.mrb[31].mxu1  ;;  %v7706_v11 = vpop.f32.mrb[35].mxu0 }
 0x2fb   :  { %v998_v24 = vpop.xlane.xlu1 %997 }
 0x2fc   :  { %v1042_v25 = vsub.f32 %v9117_v33, %v998_v24 }
 0x2fd   :  { %v1001_v22 = vpop.xlane.xlu0 %1000 }
 0x2fe   :  { %v1059_v27 = vmul.f32 1.442695, %v1042_v25 }
 0x300   :  { %8513 = vpow2.f32 %v1059_v27 }
 0x301   :  { %v1004_v26 = vpop.xlane.xlu0 %1003 }
 0x302   :  { %v1044_v28 = vsub.f32 %v9125_v43, %v1004_v26 }
 0x304   :  { %v1063_v32 = vmul.f32 1.442695, %v1044_v28 }
 0x30a   :  { %1666 = vrot.lane.b32.xlu1 %v8979_v54, %s8842_s29  ;;  %v1041_v54 = vsub.f32 %v9119_v34, %v995_v20 }
 0x30c   :  { %v1057_v31 = vmul.f32 1.442695, %v1041_v54 }
 0x30e   :  { %1714 = vrot.lane.b32.xlu1 %v8977_v53, %s8842_s29  ;;  %v1043_v53 = vsub.f32 %v9127_v44, %v1001_v22  ;;  %8515 = vpow2.f32 %v1057_v31 }
 0x30f   :  { %1618 = vrot.lane.b32.xlu0 %v8967_v46, %s8842_s29  ;;  %8517 = vpow2.f32 %v1063_v32  ;;  %v9205_v46 = vpop.eup %8513 }
 0x310   :  { %v1061_v35 = vmul.f32 1.442695, %v1043_v53  ;;  %v1092_v33 = vsel %vm211_vm2, %v9205_v46, 0.0 }
 0x312   :  { %8519 = vpow2.f32 %v1061_v35 }
 0x318   :  { %v9207_v36 = vpop.eup %8515 }
 0x319   :  { %v9211_v34 = vpop.eup %8517  ;;  %v1089_v43 = vsel %vm211_vm2, %v9207_v36, 0.0 }
 0x31a   :  { %v1098_v44 = vsel %vm211_vm2, %v9211_v34, 0.0 }
 0x31c   :  { %v9217_v37 = vpop.eup %8519 }
 0x31d   :  { %v1095_v38 = vsel %vm211_vm2, %v9217_v37, 0.0 }
 0x32e   :  { %1093 = vadd.xlane.f32.xlu0 %v1092_v33 }
 0x332   :  { %1090 = vadd.xlane.f32.xlu1 %v1089_v43  ;;  %1099 = vadd.xlane.f32.xlu0 %v1098_v44 }
 0x336   :  { %1096 = vadd.xlane.f32.xlu1 %v1095_v38 }
 0x35e   :  { %v1007_v39 = vpop.xlane.xlu1 %1006  ;;  %v1010_v40 = vpop.xlane.xlu0 %1009 }
 0x35f   :  { %v1045_v45 = vsub.f32 %v9133_v56, %v1007_v39  ;;  %v1046_v47 = vsub.f32 %v9135_v57, %v1010_v40 }
 0x361   :  { %v1065_v48 = vmul.f32 1.442695, %v1045_v45  ;;  %v1067_v49 = vmul.f32 1.442695, %v1046_v47 }
 0x363   :  { %8521 = vpow2.f32 %v1065_v48 }
 0x364   :  { %8523 = vpow2.f32 %v1067_v49 }
 0x366   :  { %v1013_v50 = vpop.xlane.xlu1 %1012  ;;  %v1016_v51 = vpop.xlane.xlu0 %1015 }
 0x367   :  { %v1047_v52 = vsub.f32 %v9141_v6, %v1013_v50  ;;  %v1048_v55 = vsub.f32 %v9143_v7, %v1016_v51 }
 0x369   :  { %v1069_v62 = vmul.f32 1.442695, %v1047_v52  ;;  %v1071_v63 = vmul.f32 1.442695, %v1048_v55 }
 0x36b   :  { %8525 = vpow2.f32 %v1069_v62 }
 0x36c   :  { %8527 = vpow2.f32 %v1071_v63 }
 0x36d   :  { %v9225_v2 = vpop.eup %8521 }
 0x36e   :  { %v9227_v3 = vpop.eup %8523  ;;  %v1019_v56 = vpop.xlane.xlu1 %1018  ;;  %v1101_v4 = vsel %vm211_vm2, %v9225_v2, 0.0 }
 0x36f   :  { %v1022_v57 = vpop.xlane.xlu0 %1021  ;;  %v1049_v5 = vsub.f32 %v9149_v18, %v1019_v56  ;;  %1102 = vadd.xlane.f32.xlu1 %v1101_v4  ;;  %v1104_v6 = vsel %vm211_vm2, %v9227_v3, 0.0 }
 0x370   :  { %v1050_v8 = vsub.f32 %v9151_v19, %v1022_v57  ;;  %1105 = vadd.xlane.f32.xlu0 %v1104_v6 }
 0x371   :  { %v1073_v7 = vmul.f32 1.442695, %v1049_v5 }
 0x372   :  { %v1075_v11 = vmul.f32 1.442695, %v1050_v8 }
 0x373   :  { %8529 = vpow2.f32 %v1073_v7 }
 0x374   :  { %8531 = vpow2.f32 %v1075_v11 }
 0x375   :  { %v9235_v20 = vpop.eup %8525 }
 0x376   :  { %v9237_v22 = vpop.eup %8527  ;;  %v1025_v24 = vpop.xlane.xlu1 %1024  ;;  %v1107_v18 = vsel %vm211_vm2, %v9235_v20, 0.0 }
 0x377   :  { %v1028_v25 = vpop.xlane.xlu0 %1027  ;;  %v1051_v19 = vsub.f32 %v9157_v29, %v1025_v24  ;;  %1108 = vadd.xlane.f32.xlu1 %v1107_v18  ;;  %v1110_v54 = vsel %vm211_vm2, %v9237_v22, 0.0 }
 0x378   :  { %v1052_v26 = vsub.f32 %v9159_v30, %v1028_v25  ;;  %1111 = vadd.xlane.f32.xlu0 %v1110_v54 }
 0x379   :  { %v1077_v27 = vmul.f32 1.442695, %v1051_v19 }
 0x37a   :  { %v1079_v28 = vmul.f32 1.442695, %v1052_v26  ;;  %v1336_v26 = vsel %vm1190_vm3, %v9183_v13, 0 }
 0x37b   :  { %8533 = vpow2.f32 %v1077_v27 }
 0x37c   :  { %8535 = vpow2.f32 %v1079_v28 }
 0x37d   :  { %v9245_v31 = vpop.eup %8529 }
 0x37e   :  { %v9247_v53 = vpop.eup %8531  ;;  %v1113_v32 = vsel %vm211_vm2, %v9245_v31, 0.0  ;;  %v1031_v44 = vpop.xlane.xlu1 %1030 }
 0x37f   :  { %1114 = vadd.xlane.f32.xlu1 %v1113_v32  ;;  %v1116_v29 = vsel %vm211_vm2, %v9247_v53, 0.0  ;;  %v1034_v38 = vpop.xlane.xlu0 %1033  ;;  %v1053_v39 = vsub.f32 %v9165_v41, %v1031_v44  ;;  %v1288_v32 = vsel %vm1190_vm3, %v9181_v12, 0 }
 0x380   :  { %1117 = vadd.xlane.f32.xlu0 %v1116_v29  ;;  %v1054_v40 = vsub.f32 %v9167_v42, %v1034_v38 }
 0x381   :  { %v1081_v48 = vmul.f32 1.442695, %v1053_v39 }
 0x382   :  { %v1083_v50 = vmul.f32 1.442695, %v1054_v40  ;;  %v1480_v40 = vsel %vm1190_vm3, %v9191_v16, 0 }
 0x383   :  { %8537 = vpow2.f32 %v1081_v48 }
 0x384   :  { %8539 = vpow2.f32 %v1083_v50 }
 0x385   :  { %v9253_v30 = vpop.eup %8533 }
 0x386   :  { %v9255_v35 = vpop.eup %8535  ;;  %v1119_v33 = vsel %vm211_vm2, %v9253_v30, 0.0  ;;  %v1037_v45 = vpop.xlane.xlu1 %1036 }
 0x387   :  { %1120 = vadd.xlane.f32.xlu1 %v1119_v33  ;;  %v1122_v43 = vsel %vm211_vm2, %v9255_v35, 0.0  ;;  %v1040_v47 = vpop.xlane.xlu0 %1039  ;;  %v1055_v49 = vsub.f32 %v9173_v58, %v1037_v45 }
 0x388   :  { %1123 = vadd.xlane.f32.xlu0 %v1122_v43  ;;  %v1056_v51 = vsub.f32 %v9175_v60, %v1040_v47  ;;  %v1528_v47 = vsel %vm1190_vm3, %v9187_v15, 0 }
 0x389   :  { %v1085_v52 = vmul.f32 1.442695, %v1055_v49 }
 0x38b   :  { %8541 = vpow2.f32 %v1085_v52  ;;  %v9271_v55 = vpop.permute.xlu0 %1618 }
 0x38d   :  { %v9273_v41 = vpop.eup %8537 }
 0x38e   :  { %v9275_v42 = vpop.eup %8539  ;;  %v1125_v60 = vsel %vm211_vm2, %v9273_v41, 0.0 }
 0x38f   :  { %v1128_v56 = vsel %vm211_vm2, %v9275_v42, 0.0 }
 0x395   :  { %v9281_v63 = vpop.eup %8541 }
 0x396   :  { %v1131_v8 = vsel %vm211_vm2, %v9281_v63, 0.0 }
 0x398   :  { %1810 = vrot.lane.b32.xlu1 %v8987_v59, %s8842_s29  ;;  %v1087_v59 = vmul.f32 1.442695, %v1056_v51  ;;  %v1576_v51 = vsel %vm1190_vm3, %v9199_v21, 0 }
 0x39a   :  { %8543 = vpow2.f32 %v1087_v59  ;;  %v1624_v59 = vsel %vm1190_vm3, %v9271_v55, 0 }
 0x39e   :  { %1762 = vrot.lane.b32.xlu0 %v8989_v61, %s8842_s29  ;;  %v9269_v61 = vpop.permute.xlu1 %1666 }
 0x3a2   :  { %v9277_v62 = vpop.permute.xlu1 %1714 }
 0x3a4   :  { %v9285_v57 = vpop.eup %8543 }
 0x3a5   :  { %v1134_v6 = vsel %vm211_vm2, %v9285_v57, 0.0 }
 0x3bb   :  { %v1094_v58 = vpop.xlane.xlu0 %1093 }
 0x3bc   :  { %8545 = vrcp.f32 %v1094_v58  ;;  %1126 = vadd.xlane.f32.xlu1 %v1125_v60 }
 0x3bd   :  { %1129 = vadd.xlane.f32.xlu0 %v1128_v56 }
 0x3bf   :  { %v1091_v4 = vpop.xlane.xlu1 %1090  ;;  %v1100_v5 = vpop.xlane.xlu0 %1099 }
 0x3c0   :  { %8547 = vrcp.f32 %v1091_v4  ;;  %1132 = vadd.xlane.f32.xlu1 %v1131_v8  ;;  %v1672_v4 = vsel %vm1190_vm3, %v9269_v61, 0 }
 0x3c1   :  { %8549 = vrcp.f32 %v1100_v5  ;;  %1135 = vadd.xlane.f32.xlu0 %v1134_v6  ;;  %v1720_v5 = vsel %vm1190_vm3, %v9277_v62, 0 }
 0x3c3   :  { %v1097_v7 = vpop.xlane.xlu1 %1096 }
 0x3c4   :  { %8551 = vrcp.f32 %v1097_v7 }
 0x3c6   :  { %v8546_v11 = vpop.eup %8545 }
 0x3c7   :  { %v1154_v24 = vmul.f32 %v8546_v11, %v9205_v46 }
 0x3c9   :  { %v1170_v25 = vpack.c.bf16 %v1154_v24, %v1154_v24 }
 0x3ca   :  { %v8548_v18 = vpop.eup %8547 }
 0x3cb   :  { %v8550_v19 = vpop.eup %8549  ;;  %7716 = vmatmul.mubr.msk.bf16.vlgmr.msra.gmra.mrb[36].mxu0 %vm211_vm2, %v1170_v25  ;;  %v1153_v54 = vmul.f32 %v8548_v18, %v9207_v36 }
 0x3cc   :  { %7726 = vmatpush3.bf16.msra.mxu0 %v1336_v26  ;;  %7727 = vmatprep.mubr.msk.bf16.mxu0 %vm8839_vm1, %v8838_v23  ;;  %v1156_v28 = vmul.f32 %v8550_v19, %v9211_v34  ;;  %v1432_v34 = vsel %vm1190_vm3, %v9193_v17, 0 }
 0x3cd   :  { %v1169_v27 = vpack.c.bf16 %v1153_v54, %v1153_v54  ;;  %7737 = vmatprep.subr.bf16.mxu0 %v8838_v23 }
 0x3ce   :  { %v8552_v46 = vpop.eup %8551  ;;  %v1172_v13 = vpack.c.bf16 %v1156_v28, %v1156_v28 }
 0x3cf   :  { %7710 = vmatmul.mubr.msk.bf16.vlgmr.msra.gmra.mrb[32].mxu1 %vm211_vm2, %v1169_v27  ;;  %v1155_v36 = vmul.f32 %v8552_v46, %v9217_v37 }
 0x3d0   :  { %7720 = vmatpush3.bf16.msra.mxu1 %v1288_v32  ;;  %7721 = vmatprep.mubr.msk.bf16.mxu1 %vm8839_vm1, %v8838_v23 }
 0x3d1   :  { %1906 = vrot.lane.b32.xlu1 %v9001_v0, %s8842_s29  ;;  %7731 = vmatprep.subr.bf16.mxu1 %v8838_v23  ;;  %v1171_v12 = vpack.c.bf16 %v1155_v36, %v1155_v36  ;;  %v1384_v0 = vsel %vm1190_vm3, %v9185_v14, 0 }
 0x3d3   :  { %7728 = vmatmul.mubr.msk.bf16.vlgmr.msra.gmra.mrb[40].mxu0 %vm211_vm2, %v1172_v13 }
 0x3d4   :  { %7738 = vmatpush3.bf16.msra.mxu0 %v1432_v34  ;;  %7739 = vmatprep.mubr.msk.bf16.mxu0 %vm8839_vm1, %v8838_v23 }
 0x3d5   :  { %7749 = vmatprep.subr.bf16.mxu0 %v8838_v23 }
 0x3d7   :  { %1858 = vrot.lane.b32.xlu0 %v9003_v1, %s8842_s29  ;;  %7722 = vmatmul.mubr.msk.bf16.vlgmr.msra.gmra.mrb[36].mxu1 %vm211_vm2, %v1171_v12 }
 0x3d8   :  { %7732 = vmatpush3.bf16.msra.mxu1 %v1384_v0  ;;  %7733 = vmatprep.mubr.msk.bf16.mxu1 %vm8839_vm1, %v8838_v23 }
 0x3d9   :  { %7743 = vmatprep.subr.bf16.mxu1 %v8838_v23 }
 0x3fc   :  { %v1103_v17 = vpop.xlane.xlu1 %1102 }
 0x3fd   :  { %8553 = vrcp.f32 %v1103_v17  ;;  %v1106_v37 = vpop.xlane.xlu0 %1105 }
 0x3fe   :  { %8555 = vrcp.f32 %v1106_v37 }
 0x404   :  { %v1109_v29 = vpop.xlane.xlu1 %1108 }
 0x405   :  { %8557 = vrcp.f32 %v1109_v29  ;;  %v1112_v33 = vpop.xlane.xlu0 %1111 }
 0x406   :  { %8559 = vrcp.f32 %v1112_v33 }
 0x407   :  { %v8554_v14 = vpop.eup %8553 }
 0x408   :  { %v8556_v43 = vpop.eup %8555  ;;  %v1157_v1 = vmul.f32 %v8554_v14, %v9225_v2 }
 0x409   :  { %v1158_v44 = vmul.f32 %v8556_v43, %v9227_v3 }
 0x40a   :  { %v1173_v38 = vpack.c.bf16 %v1157_v1, %v1157_v1 }
 0x40b   :  { %v1174_v39 = vpack.c.bf16 %v1158_v44, %v1158_v44 }
 0x40c   :  { %7734 = vmatmul.mubr.msk.bf16.vlgmr.msra.gmra.mrb[40].mxu1 %vm211_vm2, %v1173_v38  ;;  %v1115_v45 = vpop.xlane.xlu1 %1114 }
 0x40d   :  { %7744 = vmatpush3.bf16.msra.mxu1 %v1480_v40  ;;  %8561 = vrcp.f32 %v1115_v45  ;;  %7740 = vmatmul.mubr.msk.bf16.vlgmr.msra.gmra.mrb[44].mxu0 %vm211_vm2, %v1174_v39  ;;  %v1118_v48 = vpop.xlane.xlu0 %1117 }
 0x40e   :  { %7750 = vmatpush3.bf16.msra.mxu0 %v1528_v47  ;;  %8563 = vrcp.f32 %v1118_v48  ;;  %7745 = vmatprep.mubr.msk.bf16.mxu1 %vm8839_vm1, %v8838_v23 }
 0x40f   :  { %v8558_v2 = vpop.eup %8557  ;;  %7751 = vmatprep.mubr.msk.bf16.mxu0 %vm8839_vm1, %v8838_v23  ;;  %7755 = vmatprep.subr.bf16.mxu1 %v8838_v23 }
 0x410   :  { %v8560_v16 = vpop.eup %8559  ;;  %7761 = vmatprep.subr.bf16.mxu0 %v8838_v23  ;;  %v1159_v15 = vmul.f32 %v8558_v2, %v9235_v20 }
 0x411   :  { %v1160_v3 = vmul.f32 %v8560_v16, %v9237_v22 }
 0x412   :  { %v1175_v49 = vpack.c.bf16 %v1159_v15, %v1159_v15 }
 0x413   :  { %v1176_v50 = vpack.c.bf16 %v1160_v3, %v1160_v3 }
 0x414   :  { %7746 = vmatmul.mubr.msk.bf16.vlgmr.msra.gmra.mrb[44].mxu1 %vm211_vm2, %v1175_v49  ;;  %v1121_v52 = vpop.xlane.xlu1 %1120 }
 0x415   :  { %7756 = vmatpush3.bf16.msra.mxu1 %v1576_v51  ;;  %8565 = vrcp.f32 %v1121_v52  ;;  %7752 = vmatmul.mubr.msk.bf16.vlgmr.msra.gmra.mrb[48].mxu0 %vm211_vm2, %v1176_v50  ;;  %v1124_v58 = vpop.xlane.xlu0 %1123 }
 0x416   :  { %7762 = vmatpush3.bf16.msra.mxu0 %v1624_v59  ;;  %8567 = vrcp.f32 %v1124_v58  ;;  %7757 = vmatprep.mubr.msk.bf16.mxu1 %vm8839_vm1, %v8838_v23 }
 0x417   :  { %v8562_v20 = vpop.eup %8561  ;;  %7763 = vmatprep.mubr.msk.bf16.mxu0 %vm8839_vm1, %v8838_v23  ;;  %7767 = vmatprep.subr.bf16.mxu1 %v8838_v23 }
 0x418   :  { %v8564_v21 = vpop.eup %8563  ;;  %7773 = vmatprep.subr.bf16.mxu0 %v8838_v23  ;;  %v1161_v22 = vmul.f32 %v8562_v20, %v9245_v31  ;;  %v1811_v6 = vpop.permute.xlu1 %1810 }
 0x419   :  { %v1162_v55 = vmul.f32 %v8564_v21, %v9247_v53  ;;  %v1763_v8 = vpop.permute.xlu0 %1762  ;;  %v1816_v25 = vsel %vm1190_vm3, %v1811_v6, 0 }
 0x41a   :  { %v1177_v60 = vpack.c.bf16 %v1161_v22, %v1161_v22  ;;  %v1768_v24 = vsel %vm1190_vm3, %v1763_v8, 0 }
 0x41b   :  { %v1178_v56 = vpack.c.bf16 %v1162_v55, %v1162_v55 }
 0x41c   :  { %7758 = vmatmul.mubr.msk.bf16.vlgmr.msra.gmra.mrb[48].mxu1 %vm211_vm2, %v1177_v60 }
 0x41d   :  { %7764 = vmatmul.mubr.msk.bf16.vlgmr.msra.gmra.mrb[52].mxu0 %vm211_vm2, %v1178_v56  ;;  %7768 = vmatpush3.bf16.msra.mxu1 %v1672_v4 }
 0x41e   :  { %7774 = vmatpush3.bf16.msra.mxu0 %v1720_v5  ;;  %7769 = vmatprep.mubr.msk.bf16.mxu1 %vm8839_vm1, %v8838_v23 }
 0x41f   :  { %v8566_v31 = vpop.eup %8565  ;;  %7775 = vmatprep.mubr.msk.bf16.mxu0 %vm8839_vm1, %v8838_v23  ;;  %7779 = vmatprep.subr.bf16.mxu1 %v8838_v23 }
 0x420   :  { %v8568_v53 = vpop.eup %8567  ;;  %7785 = vmatprep.subr.bf16.mxu0 %v8838_v23  ;;  %v1163_v61 = vmul.f32 %v8566_v31, %v9253_v30 }
 0x421   :  { %v1164_v62 = vmul.f32 %v8568_v53, %v9255_v35 }
 0x422   :  { %v1179_v7 = vpack.c.bf16 %v1163_v61, %v1163_v61 }
 0x423   :  { %v1180_v11 = vpack.c.bf16 %v1164_v62, %v1164_v62 }
 0x424   :  { %7770 = vmatmul.mubr.msk.bf16.vlgmr.msra.gmra.mrb[52].mxu1 %vm211_vm2, %v1179_v7 }
 0x425   :  { %7776 = vmatmul.mubr.msk.bf16.vlgmr.msra.gmra.mrb[56].mxu0 %vm211_vm2, %v1180_v11  ;;  %7780 = vmatpush3.bf16.msra.mxu1 %v1768_v24 }
 0x426   :  { %7786 = vmatpush3.bf16.msra.mxu0 %v1816_v25  ;;  %7781 = vmatprep.mubr.msk.bf16.mxu1 %vm8839_vm1, %v8838_v23 }
 0x427   :  { %7787 = vmatprep.mubr.msk.bf16.mxu0 %vm8839_vm1, %v8838_v23  ;;  %7791 = vmatprep.subr.bf16.mxu1 %v8838_v23 }
 0x428   :  { %7797 = vmatprep.subr.bf16.mxu0 %v8838_v23 }
 0x449   :  { %v1127_v30 = vpop.xlane.xlu1 %1126 }
 0x44a   :  { %8569 = vrcp.f32 %v1127_v30  ;;  %v1130_v35 = vpop.xlane.xlu0 %1129 }
 0x44b   :  { %8571 = vrcp.f32 %v1130_v35 }
 0x44d   :  { %v1133_v18 = vpop.xlane.xlu1 %1132 }
 0x44e   :  { %8573 = vrcp.f32 %v1133_v18  ;;  %v1136_v19 = vpop.xlane.xlu0 %1135 }
 0x44f   :  { %8575 = vrcp.f32 %v1136_v19 }
 0x451   :  { %v1907_v32 = vpop.permute.xlu1 %1906 }
 0x452   :  { %v1859_v28 = vpop.permute.xlu0 %1858  ;;  %v1912_v17 = vsel %vm1190_vm3, %v1907_v32, 0 }
 0x453   :  { %v1864_v0 = vsel %vm1190_vm3, %v1859_v28, 0 }
 0x454   :  { %v8570_v26 = vpop.eup %8569 }
 0x455   :  { %v8572_v54 = vpop.eup %8571  ;;  %v1165_v27 = vmul.f32 %v8570_v26, %v9273_v41 }
 0x456   :  { %v1166_v46 = vmul.f32 %v8572_v54, %v9275_v42 }
 0x457   :  { %v1181_v13 = vpack.c.bf16 %v1165_v27, %v1165_v27 }
 0x458   :  { %v8574_v36 = vpop.eup %8573  ;;  %v1182_v34 = vpack.c.bf16 %v1166_v46, %v1166_v46 }
 0x459   :  { %v8576_v12 = vpop.eup %8575  ;;  %7782 = vmatmul.mubr.msk.bf16.vlgmr.msra.gmra.mrb[56].mxu1 %vm211_vm2, %v1181_v13  ;;  %v1167_v41 = vmul.f32 %v8574_v36, %v9281_v63  ;;  %v8485_v36 = vld [vmem:[%s10707_s2] sm:$0xff]  }
 0x45a   :  { %7788 = vmatmul.mubr.msk.bf16.vlgmr.msra.gmra.mrb[60].mxu0 %vm211_vm2, %v1182_v34  ;;  %7792 = vmatpush3.bf16.msra.mxu1 %v1864_v0  ;;  %v1168_v42 = vmul.f32 %v8576_v12, %v9285_v57  ;;  %v8486_v34 = vld [vmem:[%s10707_s2 + $0x8] sm:$0xff]  }
 0x45b   :  { %7798 = vmatpush3.bf16.msra.mxu0 %v1912_v17  ;;  %7793 = vmatprep.mubr.msk.bf16.mxu1 %vm8839_vm1, %v8838_v23  ;;  %v1183_v37 = vpack.c.bf16 %v1167_v41, %v1167_v41 }
 0x45c   :  { %7799 = vmatprep.mubr.msk.bf16.mxu0 %vm8839_vm1, %v8838_v23  ;;  %v1184_v29 = vpack.c.bf16 %v1168_v42, %v1168_v42  ;;  %7803 = vmatprep.subr.bf16.mxu1 %v8485_v36 }
 0x461   :  { %7794 = vmatmul.mubr.msk.bf16.vlgmr.msra.gmra.mrb[60].mxu1 %vm211_vm2, %v1183_v37 }
 0x462   :  { %7800 = vmatmul.mubr.msk.bf16.vlgmr.msra.gmra.mrb[64].mxu0 %vm211_vm2, %v1184_v29  ;;  %7804 = vmatpush3.bf16.msra.mxu1 %v8485_v36 }
 0x463   :  { %7805 = vmatprep.subr.bf16.mxu1 %v8486_v34 }
 0x466   :  { %7806 = vmatpush3.bf16.msra.mxu1 %v8486_v34  ;;  %v8754_v34 = vld [vmem:[#allocation2] sm:$0xff] }
 0x49e   :  { %v9391_v33 = vpop.f32.mrb[36].mxu0 }
 0x49f   :  { %v7717_v14 = vpop.f32.mrb[37].mxu0 }
 0x4a0   :  { %v1279_v43 = vpop.f32.mrb[38].mxu0 }
 0x4a1   :  { %v7718_v1 = vpop.f32.mrb[39].mxu0 }
 0x4a2   :  { %v9393_v44 = vpop.f32.mrb[32].mxu1 }
 0x4a3   :  { %v7711_v38 = vpop.f32.mrb[33].mxu1 }
 0x4a4   :  { %v1231_v63 = vpop.f32.mrb[34].mxu1 }
 0x4a5   :  { %v7712_v39 = vpop.f32.mrb[35].mxu1 }
 0x4a6   :  { %v9395_v40 = vpop.f32.mrb[40].mxu0 }
 0x4a7   :  { %v7729_v45 = vpop.f32.mrb[41].mxu0 }
 0x4a8   :  { %v1375_v57 = vpop.f32.mrb[42].mxu0 }
 0x4a9   :  { %v7730_v47 = vpop.f32.mrb[43].mxu0 }
 0x4aa   :  { %v9397_v48 = vpop.f32.mrb[36].mxu1 }
 0x4ab   :  { %v7723_v2 = vpop.f32.mrb[37].mxu1 }
 0x4ac   :  { %v1327_v16 = vpop.f32.mrb[38].mxu1 }
 0x4ad   :  { %v7724_v15 = vpop.f32.mrb[39].mxu1 }
 0x4df   :  { %v1420_v3 = vpop.f32.mrb[40].mxu1 }
 0x4e0   :  { %v1468_v49 = vpop.f32.mrb[44].mxu0  ;;  %v7735_v50 = vpop.f32.mrb[41].mxu1 }
 0x4e1   :  { %v8333_v51 = vpack.i.bf16 %v1468_v49, %v1420_v3  ;;  %v7741_v52 = vpop.f32.mrb[45].mxu0  ;;  %v1423_v59 = vpop.f32.mrb[42].mxu1 }
 0x4e2   :  { %v1471_v58 = vpop.f32.mrb[46].mxu0  ;;  %v7736_v20 = vpop.f32.mrb[43].mxu1 }
 0x4e3   :  { %8334 = vrot.lane.b32.xlu0 %v8333_v51, %s8834_s8  ;;  %v7742_v21 = vpop.f32.mrb[47].mxu0 }
 0x4e7   :  { %v1516_v22 = vpop.f32.mrb[44].mxu1 }
 0x4e8   :  { %v1564_v55 = vpop.f32.mrb[48].mxu0  ;;  %v7747_v60 = vpop.f32.mrb[45].mxu1 }
 0x4e9   :  { %v8338_v56 = vpack.i.bf16 %v1564_v55, %v1516_v22  ;;  %v7753_v4 = vpop.f32.mrb[49].mxu0  ;;  %v1519_v5 = vpop.f32.mrb[46].mxu1 }
 0x4ea   :  { %v1567_v31 = vpop.f32.mrb[50].mxu0  ;;  %v7748_v53 = vpop.f32.mrb[47].mxu1 }
 0x4eb   :  { %8339 = vrot.lane.b32.xlu1 %v8338_v56, %s8834_s8  ;;  %v7754_v61 = vpop.f32.mrb[51].mxu0 }
 0x4ef   :  { %v1612_v8 = vpop.f32.mrb[48].mxu1 }
 0x4f0   :  { %v1660_v62 = vpop.f32.mrb[52].mxu0  ;;  %v7759_v6 = vpop.f32.mrb[49].mxu1 }
 0x4f1   :  { %v8343_v7 = vpack.i.bf16 %v1660_v62, %v1612_v8  ;;  %v7765_v11 = vpop.f32.mrb[53].mxu0  ;;  %v1615_v24 = vpop.f32.mrb[50].mxu1 }
 0x4f2   :  { %v1663_v25 = vpop.f32.mrb[54].mxu0  ;;  %v7760_v30 = vpop.f32.mrb[51].mxu1 }
 0x4f3   :  { %8344 = vrot.lane.b32.xlu0 %v8343_v7, %s8843_s30  ;;  %v7766_v35 = vpop.f32.mrb[55].mxu0 }
 0x4f7   :  { %v1708_v18 = vpop.f32.mrb[52].mxu1 }
 0x4f8   :  { %v1756_v19 = vpop.f32.mrb[56].mxu0  ;;  %v7771_v26 = vpop.f32.mrb[53].mxu1 }
 0x4f9   :  { %v8348_v54 = vpack.i.bf16 %v1756_v19, %v1708_v18  ;;  %v7777_v27 = vpop.f32.mrb[57].mxu0  ;;  %v1711_v28 = vpop.f32.mrb[54].mxu1  ;;  %v9430_v26 = vsub.s32 1, %v8917_v9 }
 0x4fa   :  { %v1759_v46 = vpop.f32.mrb[58].mxu0  ;;  %v7772_v32 = vpop.f32.mrb[55].mxu1 }
 0x4fb   :  { %8349 = vrot.lane.b32.xlu1 %v8348_v54, %s8843_s30  ;;  %v7778_v13 = vpop.f32.mrb[59].mxu0 }
 0x52c   :  { %v1804_v12 = vpop.f32.mrb[56].mxu1 }
 0x52d   :  { %v1852_v0 = vpop.f32.mrb[60].mxu0  ;;  %v7783_v17 = vpop.f32.mrb[57].mxu1 }
 0x52e   :  { %v8353_v41 = vpack.i.bf16 %v1852_v0, %v1804_v12  ;;  %v7789_v42 = vpop.f32.mrb[61].mxu0  ;;  %v1807_v37 = vpop.f32.mrb[58].mxu1 }
 0x52f   :  { %v1855_v29 = vpop.f32.mrb[62].mxu0  ;;  %v7784_v14 = vpop.f32.mrb[59].mxu1  ;;  %v8756_v37 = vld [vmem:[#allocation2 + $0x10] sm:$0xff] }
 0x530   :  { %8354 = vrot.lane.b32.xlu0 %v8353_v41, %s8844_s12  ;;  %v7790_v43 = vpop.f32.mrb[63].mxu0  ;;  %v8755_v41 = vld [vmem:[#allocation2 + $0x8] sm:$0xff] }
 0x534   :  { %v1900_v1 = vpop.f32.mrb[60].mxu1 }
 0x535   :  { %v1948_v38 = vpop.f32.mrb[64].mxu0  ;;  %v7795_v63 = vpop.f32.mrb[61].mxu1 }
 0x536   :  { %v8358_v39 = vpack.i.bf16 %v1948_v38, %v1900_v1  ;;  %v7801_v45 = vpop.f32.mrb[65].mxu0  ;;  %v1903_v57 = vpop.f32.mrb[62].mxu1  ;;  %v8757_v1 = vld [vmem:[#allocation2 + $0x18] sm:$0xff] }
 0x537   :  { %v1951_v47 = vpop.f32.mrb[66].mxu0  ;;  %v7796_v2 = vpop.f32.mrb[63].mxu1 }
 0x538   :  { %v7802_v16 = vpop.f32.mrb[67].mxu0  ;;  %8359 = vrot.lane.b32.xlu1 %v8358_v39, %s8844_s12 }
 0x555   :  { %v8335_v15 = vpop.permute.xlu0 %8334 }
 0x556   :  { %v8337_v49 = vunpack.i.h.bf16 %v8335_v15  ;;  %v8336_v50 = vunpack.i.l.bf16 %v8335_v15 }
 0x558   :  { %v2003_v20 = vsel %vm211_vm2, %v9391_v33, %v8337_v49  ;;  %v2002_v21 = vsel %vm211_vm2, %v9393_v44, %v8336_v50 }
 0x55d   :  { %v8340_v59 = vpop.permute.xlu1 %8339 }
 0x55e   :  { %v8342_v61 = vunpack.i.h.bf16 %v8340_v59  ;;  %v8341_v8 = vunpack.i.l.bf16 %v8340_v59 }
 0x560   :  { %v2005_v44 = vsel %vm211_vm2, %v9395_v40, %v8342_v61  ;;  %v2004_v7 = vsel %vm211_vm2, %v9397_v48, %v8341_v8  ;;  %v9432_v40 = vld [vmem:[#allocation5] sm:$0xff] }
 0x561   :  { %v2021_v48 = vrot.slane %v9432_v40, %v9430_v26 }
 0x565   :  { %v8345_v3 = vpop.permute.xlu0 %8344 }
 0x566   :  { %v8347_v51 = vunpack.i.h.bf16 %v8345_v3  ;;  %v8346_v52 = vunpack.i.l.bf16 %v8345_v3 }
 0x568   :  { %v2007_v60 = vsel %vm2006_vm4, %v2002_v21, %v8346_v52  ;;  %v2008_v56 = vsel %vm2006_vm4, %v2003_v20, %v8347_v51 }
 0x56d   :  { %v8350_v4 = vpop.permute.xlu1 %8349 }
 0x56e   :  { %v8352_v62 = vunpack.i.h.bf16 %v8350_v4  ;;  %v8351_v6 = vunpack.i.l.bf16 %v8350_v4  ;;  %v8487_v4 = vld [vmem:[%s10708_s3] sm:$0xff]  }
 0x56f   :  { %7811 = vmatprep.subr.bf16.mxu0 %v8487_v4 }
 0x570   :  { %v2010_v25 = vsel %vm2006_vm4, %v2005_v44, %v8352_v62  ;;  %v2009_v30 = vsel %vm2006_vm4, %v2004_v7, %v8351_v6  ;;  %7812 = vmatpush3.bf16.msra.mxu0 %v8487_v4 }
 0x5a2   :  { %v8355_v58 = vpop.permute.xlu0 %8354 }
 0x5a3   :  { %v8357_v22 = vunpack.i.h.bf16 %v8355_v58  ;;  %v8356_v55 = vunpack.i.l.bf16 %v8355_v58 }
 0x5a5   :  { %v2012_v5 = vsel %vm2011_vm5, %v2007_v60, %v8356_v55  ;;  %v2013_v31 = vsel %vm2011_vm5, %v2008_v56, %v8357_v22 }
 0x5a6   :  { %v2016_v53 = vpack.c.bf16 %v2013_v31, %v2012_v5  ;;  %v8488_v5 = vld [vmem:[%s10708_s3 + $0x8] sm:$0xff]   ;;  %v8489_v31 = vld [vmem:[%s10709_s4] sm:$0xff]  }
 0x5a7   :  { %7813 = vmatprep.subr.bf16.mxu0 %v8488_v5  ;;  %7819 = vmatprep.subr.bf16.mxu1 %v8489_v31 }
 0x5a8   :  { %7807 = vmatprep.mubr.msk.bf16.mxu1 %vm96_vm0, %v2016_v53  ;;  %7814 = vmatpush3.bf16.msra.mxu0 %v8488_v5  ;;  %v8490_v53 = vld [vmem:[%s10709_s4 + $0x8] sm:$0xff]  }
 0x5aa   :  { %v8360_v33 = vpop.permute.xlu1 %8359 }
 0x5ab   :  { %v8362_v11 = vunpack.i.h.bf16 %v8360_v33  ;;  %v8361_v24 = vunpack.i.l.bf16 %v8360_v33 }
 0x5ad   :  { %v2015_v35 = vsel %vm2011_vm5, %v2010_v25, %v8362_v11  ;;  %v2014_v18 = vsel %vm2011_vm5, %v2009_v30, %v8361_v24 }
 0x5ae   :  { %v2017_v19 = vpack.c.bf16 %v2015_v35, %v2014_v18  ;;  %v9457_v35 = vsub.s32 2, %v8917_v9 }
 0x5b0   :  { %7808 = vmatmul.mubr.msk.bf16.vlgmr.msra.gmra.mrb[64].mxu1 %vm96_vm0, %v2017_v19  ;;  %v2149_v19 = vrot.slane %v9432_v40, %v9457_v35 }
 0x5b1   :  { %7820 = vmatpush3.bf16.msra.mxu1 %v8489_v31 }
 0x5b2   :  { %7821 = vmatprep.subr.bf16.mxu1 %v8490_v53 }
 0x5b5   :  { %7822 = vmatpush3.bf16.msra.mxu1 %v8490_v53 }
 0x683   :  { %v7809_v54 = vpop.f32.mrb[64].mxu1 }
 0x684   :  { %v2074_v27 = vpop.f32.mrb[65].mxu1  ;;  %v2083_v28 = vadd.f32 %v7809_v54, %v2021_v48 }
 0x685   :  { %v2075_v46 = vadd.f32 %v2074_v27, %v2021_v48  ;;  %v7810_v32 = vpop.f32.mrb[66].mxu1 }
 0x686   :  { %v2077_v13 = vpop.f32.mrb[67].mxu1  ;;  %v2086_v0 = vadd.f32 %v7810_v32, %v2021_v48  ;;  %v2091_v29 = vadd.f32 %v8756_v37, %v2083_v28 }
 0x687   :  { %v2078_v36 = vadd.f32 %v2077_v13, %v2021_v48  ;;  %v2089_v12 = vadd.f32 %v8754_v34, %v2075_v46  ;;  %v9462_v48 = vsub.s32 3, %v8917_v9 }
 0x688   :  { %v2099_v43 = vsel %vm96_vm0, %v2091_v29, 0.0  ;;  %v2092_v38 = vadd.f32 %v8757_v1, %v2086_v0 }
 0x689   :  { %v2093_v17 = vsel %vm96_vm0, %v2089_v12, 0.0  ;;  %v2090_v42 = vadd.f32 %v8755_v41, %v2078_v36  ;;  %v2157_v13 = vrot.slane %v9432_v40, %v9462_v48 }
 0x68a   :  { %2094 = vadd.xlane.f32.xlu0 %v2093_v17  ;;  %v2102_v63 = vsel %vm96_vm0, %v2092_v38, 0.0 }
 0x68b   :  { %v2096_v14 = vsel %vm96_vm0, %v2090_v42, 0.0 }
 0x68c   :  { %2097 = vadd.xlane.f32.xlu1 %v2096_v14 }
 0x68e   :  { %2100 = vadd.xlane.f32.xlu0 %v2099_v43 }
 0x692   :  { %2103 = vadd.xlane.f32.xlu0 %v2102_v63  ;;  %v8491_v63 = vld [vmem:[%s10709_s4 + $0x10] sm:$0xff]  }
 0x693   :  { %7823 = vmatprep.subr.bf16.mxu1 %v8491_v63 }
 0x694   :  { %7824 = vmatpush3.bf16.msra.mxu1 %v8491_v63  ;;  %v8494_v63 = vld [vmem:[%s10706_s1 + $0x18] sm:$0xff]  }
 0x717   :  { %v2095_v39 = vpop.xlane.xlu0 %2094 }
 0x718   :  { %v2106_v45 = vmul.f32 0.03125, %v2095_v39  ;;  %v8492_v39 = vld [vmem:[%s10709_s4 + $0x18] sm:$0xff]  }
 0x719   :  { %v2098_v57 = vpop.xlane.xlu1 %2097  ;;  %7825 = vmatprep.subr.bf16.mxu1 %v8492_v39 }
 0x71a   :  { %v2110_v47 = vsub.f32 %v2089_v12, %v2106_v45  ;;  %v2107_v2 = vmul.f32 0.03125, %v2098_v57  ;;  %7826 = vmatpush3.bf16.msra.mxu1 %v8492_v39  ;;  %v9476_v45 = vsub.s32 4, %v8917_v9 }
 0x71b   :  { %v2101_v16 = vpop.xlane.xlu0 %2100  ;;  %7845 = vmatprep.subr.bf16.mxu1 %v8838_v23 }
 0x71c   :  { %v2111_v15 = vsub.f32 %v2090_v42, %v2107_v2  ;;  %v2108_v3 = vmul.f32 0.03125, %v2101_v16  ;;  %v2114_v49 = vmul.f32 %v2110_v47, %v2110_v47  ;;  %v2167_v57 = vrot.slane %v9432_v40, %v9476_v45 }
 0x71e   :  { %v2112_v50 = vsub.f32 %v2091_v29, %v2108_v3  ;;  %v2118_v51 = vsel %vm96_vm0, %v2114_v49, 0.0  ;;  %v2115_v52 = vmul.f32 %v2111_v15, %v2111_v15 }
 0x71f   :  { %2119 = vadd.xlane.f32.xlu1 %v2118_v51  ;;  %v2104_v59 = vpop.xlane.xlu0 %2103 }
 0x720   :  { %v2109_v58 = vmul.f32 0.03125, %v2104_v59  ;;  %v2121_v20 = vsel %vm96_vm0, %v2115_v52, 0.0  ;;  %v2116_v21 = vmul.f32 %v2112_v50, %v2112_v50 }
 0x721   :  { %2122 = vadd.xlane.f32.xlu0 %v2121_v20 }
 0x722   :  { %v2113_v22 = vsub.f32 %v2092_v38, %v2109_v58  ;;  %v2124_v55 = vsel %vm96_vm0, %v2116_v21, 0.0 }
 0x723   :  { %2125 = vadd.xlane.f32.xlu1 %v2124_v55  ;;  %v9485_v55 = vsub.s32 5, %v8917_v9 }
 0x724   :  { %v2117_v60 = vmul.f32 %v2113_v22, %v2113_v22 }
 0x726   :  { %v2127_v56 = vsel %vm96_vm0, %v2117_v60, 0.0  ;;  %v2244_v60 = vrot.slane %v9432_v40, %v9485_v55 }
 0x727   :  { %2128 = vadd.xlane.f32.xlu0 %v2127_v56 }
 0x7ac   :  { %v2120_v61 = vpop.xlane.xlu1 %2119 }
 0x7ad   :  { %v2130_v8 = vmul.f32 0.03125, %v2120_v61 }
 0x7ae   :  { %v2123_v62 = vpop.xlane.xlu0 %2122 }
 0x7af   :  { %v2134_v6 = vadd.f32 1e-05, %v2130_v8  ;;  %v2131_v33 = vmul.f32 0.03125, %v2123_v62 }
 0x7b0   :  { %v2126_v44 = vpop.xlane.xlu1 %2125 }
 0x7b1   :  { %8577 = vrsqrt.f32 %v2134_v6  ;;  %v2135_v7 = vadd.f32 1e-05, %v2131_v33  ;;  %v2132_v11 = vmul.f32 0.03125, %v2126_v44 }
 0x7b3   :  { %8579 = vrsqrt.f32 %v2135_v7  ;;  %v2136_v24 = vadd.f32 1e-05, %v2132_v11 }
 0x7b4   :  { %v2129_v25 = vpop.xlane.xlu0 %2128 }
 0x7b5   :  { %8581 = vrsqrt.f32 %v2136_v24  ;;  %v2133_v30 = vmul.f32 0.03125, %v2129_v25 }
 0x7b7   :  { %v2137_v18 = vadd.f32 1e-05, %v2133_v30 }
 0x7b9   :  { %8583 = vrsqrt.f32 %v2137_v18 }
 0x7bb   :  { %v8578_v54 = vpop.eup %8577 }
 0x7bc   :  { %v2142_v27 = vmul.f32 %v8578_v54, %v2110_v47 }
 0x7bd   :  { %v8580_v28 = vpop.eup %8579 }
 0x7be   :  { %v2143_v46 = vmul.f32 %v8580_v28, %v2111_v15  ;;  %v2150_v32 = vmul.f32 %v2149_v19, %v2142_v27 }
 0x7bf   :  { %v8582_v36 = vpop.eup %8581 }
 0x7c0   :  { %v2144_v34 = vmul.f32 %v8582_v36, %v2112_v50  ;;  %v2151_v12 = vmul.f32 %v2149_v19, %v2143_v46  ;;  %v2158_v0 = vadd.f32 %v2157_v13, %v2150_v32 }
 0x7c2   :  { %v2159_v17 = vadd.f32 %v2157_v13, %v2151_v12  ;;  %v2152_v42 = vmul.f32 %v2149_v19, %v2144_v34 }
 0x7c3   :  { %v8584_v41 = vpop.eup %8583 }
 0x7c4   :  { %v2145_v37 = vmul.f32 %v8584_v41, %v2113_v22  ;;  %v2162_v29 = vpack.c.bf16 %v2159_v17, %v2158_v0  ;;  %v2160_v43 = vadd.f32 %v2157_v13, %v2152_v42 }
 0x7c6   :  { %v2153_v14 = vmul.f32 %v2149_v19, %v2145_v37  ;;  %7815 = vmatprep.mubr.msk.bf16.mxu0 %vm96_vm0, %v2162_v29 }
 0x7c8   :  { %v2161_v1 = vadd.f32 %v2157_v13, %v2153_v14 }
 0x7ca   :  { %v2163_v38 = vpack.c.bf16 %v2161_v1, %v2160_v43 }
 0x7cc   :  { %7816 = vmatmul.mubr.msk.bf16.vlgmr.msra.gmra.mrb[68].mxu0 %vm96_vm0, %v2163_v38  ;;  %v8493_v38 = vld [vmem:[%s10706_s1 + $0x10] sm:$0xff]  }
 0x7cd   :  { %7831 = vmatprep.subr.bf16.mxu0 %v8493_v38 }
 0x7ce   :  { %7832 = vmatpush3.bf16.msra.mxu0 %v8493_v38 }
 0x7cf   :  { %7833 = vmatprep.subr.bf16.mxu0 %v8494_v63 }
 0x7d2   :  { %7834 = vmatpush3.bf16.msra.mxu0 %v8494_v63 }
 0x7d3   :  { %7839 = vmatprep.subr.bf16.mxu0 %v8838_v23 }
 0x89f   :  { %v7817_v47 = vpop.f32.mrb[68].mxu0 }
 0x8a0   :  { %v2229_v2 = vadd.f32 %v7817_v47, %v2167_v57  ;;  %v2220_v16 = vpop.f32.mrb[69].mxu0 }
 0x8a1   :  { %v2221_v15 = vadd.f32 %v2220_v16, %v2167_v57  ;;  %v7818_v3 = vpop.f32.mrb[70].mxu0 }
 0x8a2   :  { %v2232_v49 = vadd.f32 %v7818_v3, %v2167_v57  ;;  %v2223_v50 = vpop.f32.mrb[71].mxu0  ;;  %v2237_v52 = vmax.f32 %v2229_v2, 0.0 }
 0x8a3   :  { %v2224_v51 = vadd.f32 %v2223_v50, %v2167_v57  ;;  %v2235_v58 = vmax.f32 %v2221_v15, 0.0 }
 0x8a4   :  { %v2238_v59 = vmax.f32 %v2232_v49, 0.0 }
 0x8a5   :  { %v2236_v20 = vmax.f32 %v2224_v51, 0.0 }
 0x8a6   :  { %v2240_v21 = vpack.c.bf16 %v2238_v59, %v2237_v52 }
 0x8a7   :  { %v2239_v22 = vpack.c.bf16 %v2236_v20, %v2235_v58  ;;  %v9505_v58 = vsub.s32 6, %v8917_v9 }
 0x8a9   :  { %7827 = vmatprep.mubr.msk.bf16.mxu1 %vm2269_vm6, %v2239_v22  ;;  %v2384_v20 = vrot.slane %v9432_v40, %v9505_v58 }
 0x8aa   :  { %7828 = vmatmul.mubr.msk.bf16.vlgmr.msra.gmra.mrb[68].mxu1 %vm2269_vm6, %v2240_v21  ;;  %v9510_v21 = vsub.s32 7, %v8917_v9 }
 0x8ab   :  { %7847 = vmatprep.mubr.msk.bf16.mxu1 %vm8839_vm1, %v8838_v23 }
 0x97d   :  { %v7829_v56 = vpop.f32.mrb[68].mxu1 }
 0x97e   :  { %v2310_v4 = vpop.f32.mrb[69].mxu1  ;;  %v2319_v5 = vadd.f32 %v7829_v56, %v2244_v60 }
 0x97f   :  { %v2311_v31 = vadd.f32 %v2310_v4, %v2244_v60  ;;  %v7830_v53 = vpop.f32.mrb[70].mxu1 }
 0x980   :  { %v2313_v61 = vpop.f32.mrb[71].mxu1  ;;  %v2322_v8 = vadd.f32 %v7830_v53, %v2244_v60  ;;  %v2327_v7 = vadd.f32 %v2319_v5, %v2160_v43 }
 0x981   :  { %v2314_v62 = vadd.f32 %v2313_v61, %v2244_v60  ;;  %v2325_v6 = vadd.f32 %v2311_v31, %v2158_v0  ;;  %v2392_v31 = vrot.slane %v9432_v40, %v9510_v21 }
 0x982   :  { %v2328_v24 = vadd.f32 %v2322_v8, %v2161_v1  ;;  %v2335_v25 = vsel %vm96_vm0, %v2327_v7, 0.0 }
 0x983   :  { %v2329_v33 = vsel %vm96_vm0, %v2325_v6, 0.0  ;;  %v2326_v44 = vadd.f32 %v2314_v62, %v2159_v17 }
 0x984   :  { %2330 = vadd.xlane.f32.xlu1 %v2329_v33  ;;  %v2338_v30 = vsel %vm96_vm0, %v2328_v24, 0.0 }
 0x985   :  { %v2332_v11 = vsel %vm96_vm0, %v2326_v44, 0.0 }
 0x986   :  { %2333 = vadd.xlane.f32.xlu0 %v2332_v11 }
 0x988   :  { %2336 = vadd.xlane.f32.xlu1 %v2335_v25 }
 0x98a   :  { %2339 = vadd.xlane.f32.xlu0 %v2338_v30 }
 0xa11   :  { %v2331_v18 = vpop.xlane.xlu1 %2330 }
 0xa12   :  { %v2341_v19 = vmul.f32 0.03125, %v2331_v18  ;;  %v2422_v18 = vld [vmem:[#allocation5 + $0x8] sm:$0xff] }
 0xa13   :  { %v2334_v54 = vpop.xlane.xlu0 %2333 }
 0xa14   :  { %v2345_v27 = vsub.f32 %v2325_v6, %v2341_v19  ;;  %v2342_v28 = vmul.f32 0.03125, %v2334_v54  ;;  %v2428_v19 = vrot.slane %v2422_v18, %v8920_v10 }
 0xa15   :  { %v2337_v46 = vpop.xlane.xlu1 %2336 }
 0xa16   :  { %v2346_v32 = vsub.f32 %v2326_v44, %v2342_v28  ;;  %v2343_v13 = vmul.f32 0.03125, %v2337_v46  ;;  %v2349_v36 = vmul.f32 %v2345_v27, %v2345_v27 }
 0xa17   :  { %v2340_v34 = vpop.xlane.xlu0 %2339 }
 0xa18   :  { %v2347_v12 = vsub.f32 %v2327_v7, %v2343_v13  ;;  %v2344_v0 = vmul.f32 0.03125, %v2340_v34  ;;  %v2353_v17 = vsel %vm96_vm0, %v2349_v36, 0.0  ;;  %v2350_v41 = vmul.f32 %v2346_v32, %v2346_v32 }
 0xa19   :  { %2354 = vadd.xlane.f32.xlu1 %v2353_v17 }
 0xa1a   :  { %v2348_v42 = vsub.f32 %v2328_v24, %v2344_v0  ;;  %v2356_v37 = vsel %vm96_vm0, %v2350_v41, 0.0  ;;  %v2351_v29 = vmul.f32 %v2347_v12, %v2347_v12 }
 0xa1b   :  { %2357 = vadd.xlane.f32.xlu0 %v2356_v37 }
 0xa1c   :  { %v2359_v14 = vsel %vm96_vm0, %v2351_v29, 0.0  ;;  %v2352_v43 = vmul.f32 %v2348_v42, %v2348_v42 }
 0xa1d   :  { %2360 = vadd.xlane.f32.xlu1 %v2359_v14 }
 0xa1e   :  { %v2362_v1 = vsel %vm96_vm0, %v2352_v43, 0.0 }
 0xa1f   :  { %2363 = vadd.xlane.f32.xlu0 %v2362_v1 }
 0xaa6   :  { %v2355_v39 = vpop.xlane.xlu1 %2354 }
 0xaa7   :  { %v2365_v57 = vmul.f32 0.03125, %v2355_v39 }
 0xaa8   :  { %v2358_v47 = vpop.xlane.xlu0 %2357 }
 0xaa9   :  { %v2369_v2 = vadd.f32 1e-05, %v2365_v57  ;;  %v2366_v16 = vmul.f32 0.03125, %v2358_v47 }
 0xaaa   :  { %v2361_v15 = vpop.xlane.xlu1 %2360 }
 0xaab   :  { %8585 = vrsqrt.f32 %v2369_v2  ;;  %v2370_v3 = vadd.f32 1e-05, %v2366_v16  ;;  %v2367_v49 = vmul.f32 0.03125, %v2361_v15 }
 0xaac   :  { %v2364_v50 = vpop.xlane.xlu0 %2363 }
 0xaad   :  { %8587 = vrsqrt.f32 %v2370_v3  ;;  %v2371_v51 = vadd.f32 1e-05, %v2367_v49  ;;  %v2368_v52 = vmul.f32 0.03125, %v2364_v50 }
 0xaaf   :  { %8589 = vrsqrt.f32 %v2371_v51  ;;  %v2372_v59 = vadd.f32 1e-05, %v2368_v52 }
 0xab1   :  { %8591 = vrsqrt.f32 %v2372_v59 }
 0xab5   :  { %v8586_v22 = vpop.eup %8585 }
 0xab6   :  { %v2377_v60 = vmul.f32 %v8586_v22, %v2345_v27 }
 0xab7   :  { %v8588_v56 = vpop.eup %8587 }
 0xab8   :  { %v2378_v4 = vmul.f32 %v8588_v56, %v2346_v32  ;;  %v2385_v5 = vmul.f32 %v2384_v20, %v2377_v60 }
 0xab9   :  { %v8590_v53 = vpop.eup %8589 }
 0xaba   :  { %v2379_v61 = vmul.f32 %v8590_v53, %v2347_v12  ;;  %v2386_v8 = vmul.f32 %v2384_v20, %v2378_v4  ;;  %v9514_v44 = vadd.f32 %v2392_v31, %v2385_v5 }
 0xabb   :  { %v8592_v62 = vpop.eup %8591 }
 0xabc   :  { %v2387_v6 = vmul.f32 %v2384_v20, %v2379_v61  ;;  %v2380_v33 = vmul.f32 %v8592_v62, %v2348_v42  ;;  %v9516_v7 = vadd.f32 %v2392_v31, %v2386_v8 }
 0xabe   :  { %v2388_v11 = vmul.f32 %v2384_v20, %v2380_v33  ;;  %v2423_v24 = vpack.c.bf16 %v9516_v7, %v9514_v44  ;;  %v9521_v25 = vadd.f32 %v2392_v31, %v2387_v6 }
 0xac0   :  { %7835 = vmatprep.mubr.msk.bf16.mxu0 %vm96_vm0, %v2423_v24  ;;  %v9523_v30 = vadd.f32 %v2392_v31, %v2388_v11 }
 0xac2   :  { %v2424_v40 = vpack.c.bf16 %v9523_v30, %v9521_v25 }
 0xac4   :  { %7836 = vmatmul.mubr.msk.bf16.vlgmr.msra.gmra.mrb[72].mxu0 %vm96_vm0, %v2424_v40 }
 0xac5   :  { %7841 = vmatprep.mubr.msk.bf16.mxu0 %vm8839_vm1, %v8838_v23 }
 0xb97   :  { %v7837_v54 = vpop.f32.mrb[72].mxu0 }
 0xb98   :  { %v2481_v27 = vpop.f32.mrb[73].mxu0  ;;  %v2490_v46 = vadd.f32 %v7837_v54, %v2428_v19 }
 0xb99   :  { %v7838_v28 = vpop.f32.mrb[74].mxu0  ;;  %v2482_v36 = vadd.f32 %v2481_v27, %v2428_v19 }
 0xb9a   :  { %v2493_v32 = vadd.f32 %v7838_v28, %v2428_v19  ;;  %v2484_v13 = vpop.f32.mrb[75].mxu0  ;;  %v9540_v41 = vpack.c.bf16 %v2490_v46, %v2490_v46 }
 0xb9b   :  { %v2485_v34 = vadd.f32 %v2484_v13, %v2428_v19  ;;  %v9535_v17 = vpack.c.bf16 %v2482_v36, %v2482_v36 }
 0xb9c   :  { %v8368_v12 = vpack.i.bf16 %v2493_v32, %v2490_v46  ;;  %v9549_v37 = vpack.c.bf16 %v2493_v32, %v2493_v32 }
 0xb9d   :  { %v8363_v0 = vpack.i.bf16 %v2485_v34, %v2482_v36  ;;  %v9545_v42 = vpack.c.bf16 %v2485_v34, %v2485_v34 }
 0xb9e   :  { %8369 = vrot.lane.b32.xlu0 %v8368_v12, %s8837_s26 }
 0xb9f   :  { %8364 = vrot.lane.b32.xlu1 %v8363_v0, %s8837_s26 }
 0xba2   :  { %8384 = vrot.lane.b32.xlu0 %v8363_v0, %s8840_s27 }
 0xba3   :  { %8374 = vrot.lane.b32.xlu1 %v8363_v0, %s8836_s5 }
 0xba6   :  { %2553 = vrot.lane.b32.xlu0 %v9535_v17, %s8841_s28 }
 0xba7   :  { %8379 = vrot.lane.b32.xlu1 %v8368_v12, %s8836_s5 }
 0xbaa   :  { %2651 = vrot.lane.b32.xlu0 %v9540_v41, %s8841_s28 }
 0xbab   :  { %8389 = vrot.lane.b32.xlu1 %v8368_v12, %s8840_s27 }
 0xbaf   :  { %2602 = vrot.lane.b32.xlu1 %v9545_v42, %s8841_s28 }
 0xbb3   :  { %2700 = vrot.lane.b32.xlu1 %v9549_v37, %s8841_s28 }
 0xc10   :  { %v8370_v29 = vpop.permute.xlu0 %8369 }
 0xc11   :  { %v8365_v14 = vpop.permute.xlu1 %8364  ;;  %v8372_v38 = vunpack.i.h.bf16 %v8370_v29  ;;  %v8371_v63 = vunpack.i.l.bf16 %v8370_v29 }
 0xc12   :  { %v8367_v43 = vunpack.i.h.bf16 %v8365_v14  ;;  %v8366_v1 = vunpack.i.l.bf16 %v8365_v14 }
 0xc13   :  { %v9561_v16 = vpack.c.bf16 %v8372_v38, %v8372_v38  ;;  %v9563_v15 = vpack.c.bf16 %v8371_v63, %v8371_v63 }
 0xc14   :  { %v9553_v39 = vpack.c.bf16 %v8367_v43, %v8367_v43  ;;  %v9555_v57 = vpack.c.bf16 %v8366_v1, %v8366_v1  ;;  %v8385_v47 = vpop.permute.xlu0 %8384 }
 0xc15   :  { %v8375_v2 = vpop.permute.xlu1 %8374  ;;  %v8387_v5 = vunpack.i.h.bf16 %v8385_v47  ;;  %v8386_v53 = vunpack.i.l.bf16 %v8385_v47 }
 0xc16   :  { %2798 = vrot.lane.b32.xlu1 %v9553_v39, %s8841_s28  ;;  %2749 = vrot.lane.b32.xlu0 %v9555_v57, %s8841_s28  ;;  %v8377_v3 = vunpack.i.h.bf16 %v8375_v2  ;;  %v8376_v49 = vunpack.i.l.bf16 %v8375_v2 }
 0xc17   :  { %v9591_v33 = vpack.c.bf16 %v8387_v5, %v8387_v5  ;;  %v9595_v24 = vpack.c.bf16 %v8386_v53, %v8386_v53 }
 0xc18   :  { %v2554_v50 = vpop.permute.xlu0 %2553  ;;  %v9570_v59 = vpack.c.bf16 %v8377_v3, %v8377_v3  ;;  %v9572_v20 = vpack.c.bf16 %v8376_v49, %v8376_v49 }
 0xc19   :  { %v2559_v51 = vsel %vm211_vm2, %v2554_v50, 0  ;;  %v8380_v52 = vpop.permute.xlu1 %8379 }
 0xc1a   :  { %2896 = vrot.lane.b32.xlu1 %v9561_v16, %s8841_s28  ;;  %2847 = vrot.lane.b32.xlu0 %v9563_v15, %s8841_s28  ;;  %v8382_v22 = vunpack.i.h.bf16 %v8380_v52  ;;  %v8381_v60 = vunpack.i.l.bf16 %v8380_v52 }
 0xc1b   :  { %7840 = vmatpush3.bf16.xpose.msra.mxu0 %v2559_v51 }
 0xc1c   :  { %7851 = vmatprep.subr.bf16.mxu0 %v8838_v23  ;;  %v2652_v4 = vpop.permute.xlu0 %2651  ;;  %v9579_v31 = vpack.c.bf16 %v8382_v22, %v8382_v22  ;;  %v9581_v61 = vpack.c.bf16 %v8381_v60, %v8381_v60 }
 0xc1d   :  { %v8390_v56 = vpop.permute.xlu1 %8389  ;;  %v2657_v62 = vsel %vm211_vm2, %v2652_v4, 0 }
 0xc1e   :  { %2994 = vrot.lane.b32.xlu1 %v9570_v59, %s8841_s28  ;;  %2945 = vrot.lane.b32.xlu0 %v9572_v20, %s8841_s28  ;;  %v8392_v11 = vunpack.i.h.bf16 %v8390_v56  ;;  %v8391_v40 = vunpack.i.l.bf16 %v8390_v56 }
 0xc20   :  { %v9603_v18 = vpack.c.bf16 %v8392_v11, %v8392_v11  ;;  %v9605_v54 = vpack.c.bf16 %v8391_v40, %v8391_v40 }
 0xc21   :  { %v2603_v8 = vpop.permute.xlu1 %2602 }
 0xc22   :  { %v2608_v6 = vsel %vm211_vm2, %v2603_v8, 0  ;;  %7842 = vmatmul.mubr.msk.bf16.vlgmr.msra.gmra.mrb[76].mxu0 %vm211_vm2, %v9535_v17  ;;  %3092 = vrot.lane.b32.xlu1 %v9579_v31, %s8841_s28 }
 0xc23   :  { %3043 = vrot.lane.b32.xlu0 %v9581_v61, %s8841_s28  ;;  %7852 = vmatpush3.bf16.xpose.msra.mxu0 %v2657_v62 }
 0xc24   :  { %7846 = vmatpush3.bf16.xpose.msra.mxu1 %v2608_v6  ;;  %7853 = vmatprep.mubr.msk.bf16.mxu0 %vm8839_vm1, %v8838_v23 }
 0xc25   :  { %7857 = vmatprep.subr.bf16.mxu1 %v8838_v23  ;;  %7863 = vmatprep.subr.bf16.mxu0 %v8838_v23  ;;  %v2701_v19 = vpop.permute.xlu1 %2700 }
 0xc26   :  { %3190 = vrot.lane.b32.xlu1 %v9591_v33, %s8841_s28  ;;  %v2706_v27 = vsel %vm211_vm2, %v2701_v19, 0 }
 0xc27   :  { %3141 = vrot.lane.b32.xlu0 %v9595_v24, %s8841_s28 }
 0xc2a   :  { %7854 = vmatmul.mubr.msk.bf16.vlgmr.msra.gmra.mrb[80].mxu0 %vm211_vm2, %v9540_v41  ;;  %3288 = vrot.lane.b32.xlu1 %v9603_v18, %s8841_s28 }
 0xc2b   :  { %7848 = vmatmul.mubr.msk.bf16.vlgmr.msra.gmra.mrb[72].mxu1 %vm211_vm2, %v9545_v42  ;;  %3239 = vrot.lane.b32.xlu0 %v9605_v54, %s8841_s28 }
 0xc2c   :  { %7858 = vmatpush3.bf16.xpose.msra.mxu1 %v2706_v27  ;;  %7859 = vmatprep.mubr.msk.bf16.mxu1 %vm8839_vm1, %v8838_v23 }
 0xc2d   :  { %7869 = vmatprep.subr.bf16.mxu1 %v8838_v23  ;;  %7865 = vmatprep.mubr.msk.bf16.mxu0 %vm8839_vm1, %v8838_v23 }
 0xc2e   :  { %3528 = vrot.lane.b32.xlu1 %v9535_v17, %s8842_s29 }
 0xc2f   :  { %3576 = vrot.lane.b32.xlu0 %v9545_v42, %s8842_s29 }
 0xc32   :  { %3624 = vrot.lane.b32.xlu1 %v9540_v41, %s8842_s29 }
 0xc33   :  { %7860 = vmatmul.mubr.msk.bf16.vlgmr.msra.gmra.mrb[76].mxu1 %vm211_vm2, %v9549_v37  ;;  %3672 = vrot.lane.b32.xlu0 %v9549_v37, %s8842_s29 }
 0xc34   :  { %7871 = vmatprep.mubr.msk.bf16.mxu1 %vm8839_vm1, %v8838_v23 }
 0xc36   :  { %3720 = vrot.lane.b32.xlu1 %v9555_v57, %s8842_s29 }
 0xc37   :  { %3864 = vrot.lane.b32.xlu0 %v9561_v16, %s8842_s29 }
 0xc3a   :  { %3816 = vrot.lane.b32.xlu1 %v9563_v15, %s8842_s29 }
 0xc3b   :  { %3768 = vrot.lane.b32.xlu0 %v9553_v39, %s8842_s29 }
 0xc3e   :  { %3912 = vrot.lane.b32.xlu1 %v9572_v20, %s8842_s29 }
 0xc88   :  { %v2799_v28 = vpop.permute.xlu1 %2798  ;;  %v2750_v46 = vpop.permute.xlu0 %2749 }
 0xc89   :  { %v2804_v32 = vsel %vm211_vm2, %v2799_v28, 0  ;;  %v2755_v13 = vsel %vm211_vm2, %v2750_v46, 0 }
 0xc8a   :  { %7864 = vmatpush3.bf16.xpose.msra.mxu0 %v2755_v13  ;;  %7870 = vmatpush3.bf16.xpose.msra.mxu1 %v2804_v32 }
 0xc8b   :  { %7875 = vmatprep.subr.bf16.mxu0 %v8838_v23  ;;  %7881 = vmatprep.subr.bf16.mxu1 %v8838_v23 }
 0xc8c   :  { %v2897_v36 = vpop.permute.xlu1 %2896  ;;  %v2848_v34 = vpop.permute.xlu0 %2847 }
 0xc8d   :  { %v2902_v12 = vsel %vm211_vm2, %v2897_v36, 0  ;;  %v2853_v0 = vsel %vm211_vm2, %v2848_v34, 0 }
 0xc90   :  { %v2995_v17 = vpop.permute.xlu1 %2994  ;;  %v2946_v41 = vpop.permute.xlu0 %2945 }
 0xc91   :  { %7866 = vmatmul.mubr.msk.bf16.vlgmr.msra.gmra.mrb[84].mxu0 %vm211_vm2, %v9555_v57  ;;  %7872 = vmatmul.mubr.msk.bf16.vlgmr.msra.gmra.mrb[80].mxu1 %vm211_vm2, %v9553_v39  ;;  %v3000_v42 = vsel %vm211_vm2, %v2995_v17, 0  ;;  %v2951_v37 = vsel %vm211_vm2, %v2946_v41, 0 }
 0xc92   :  { %7876 = vmatpush3.bf16.xpose.msra.mxu0 %v2853_v0  ;;  %7882 = vmatpush3.bf16.xpose.msra.mxu1 %v2902_v12 }
 0xc93   :  { %7883 = vmatprep.mubr.msk.bf16.mxu1 %vm8839_vm1, %v8838_v23  ;;  %7877 = vmatprep.mubr.msk.bf16.mxu0 %vm8839_vm1, %v8838_v23 }
 0xc94   :  { %7887 = vmatprep.subr.bf16.mxu0 %v8838_v23  ;;  %7893 = vmatprep.subr.bf16.mxu1 %v8838_v23  ;;  %v3093_v29 = vpop.permute.xlu1 %3092 }
 0xc95   :  { %v3044_v14 = vpop.permute.xlu0 %3043  ;;  %v3098_v43 = vsel %vm211_vm2, %v3093_v29, 0 }
 0xc96   :  { %v3049_v1 = vsel %vm211_vm2, %v3044_v14, 0 }
 0xc98   :  { %v3191_v38 = vpop.permute.xlu1 %3190 }
 0xc99   :  { %7878 = vmatmul.mubr.msk.bf16.vlgmr.msra.gmra.mrb[88].mxu0 %vm211_vm2, %v9563_v15  ;;  %7884 = vmatmul.mubr.msk.bf16.vlgmr.msra.gmra.mrb[84].mxu1 %vm211_vm2, %v9561_v16  ;;  %v3142_v63 = vpop.permute.xlu0 %3141  ;;  %v3196_v39 = vsel %vm211_vm2, %v3191_v38, 0 }
 0xc9a   :  { %7888 = vmatpush3.bf16.xpose.msra.mxu0 %v2951_v37  ;;  %7894 = vmatpush3.bf16.xpose.msra.mxu1 %v3000_v42  ;;  %v3147_v57 = vsel %vm211_vm2, %v3142_v63, 0 }
 0xc9b   :  { %7895 = vmatprep.mubr.msk.bf16.mxu1 %vm8839_vm1, %v8838_v23  ;;  %7889 = vmatprep.mubr.msk.bf16.mxu0 %vm8839_vm1, %v8838_v23 }
 0xc9c   :  { %7899 = vmatprep.subr.bf16.mxu0 %v8838_v23  ;;  %7905 = vmatprep.subr.bf16.mxu1 %v8838_v23  ;;  %v3289_v47 = vpop.permute.xlu1 %3288 }
 0xc9d   :  { %v3240_v2 = vpop.permute.xlu0 %3239  ;;  %v3294_v16 = vsel %vm211_vm2, %v3289_v47, 0 }
 0xc9e   :  { %v3245_v15 = vsel %vm211_vm2, %v3240_v2, 0 }
 0xca0   :  { %v3529_v3 = vpop.permute.xlu1 %3528 }
 0xca1   :  { %7890 = vmatmul.mubr.msk.bf16.vlgmr.msra.gmra.mrb[92].mxu0 %vm211_vm2, %v9572_v20  ;;  %7896 = vmatmul.mubr.msk.bf16.vlgmr.msra.gmra.mrb[88].mxu1 %vm211_vm2, %v9570_v59  ;;  %v3577_v49 = vpop.permute.xlu0 %3576  ;;  %v3534_v50 = vsel %vm1190_vm3, %v3529_v3, 0 }
 0xca2   :  { %7900 = vmatpush3.bf16.xpose.msra.mxu0 %v3049_v1  ;;  %7906 = vmatpush3.bf16.xpose.msra.mxu1 %v3098_v43  ;;  %v3582_v51 = vsel %vm1190_vm3, %v3577_v49, 0 }
 0xca3   :  { %7907 = vmatprep.mubr.msk.bf16.mxu1 %vm8839_vm1, %v8838_v23  ;;  %7901 = vmatprep.mubr.msk.bf16.mxu0 %vm8839_vm1, %v8838_v23 }
 0xca4   :  { %7911 = vmatprep.subr.bf16.mxu0 %v8838_v23  ;;  %7917 = vmatprep.subr.bf16.mxu1 %v8838_v23 }
 0xca9   :  { %7902 = vmatmul.mubr.msk.bf16.vlgmr.msra.gmra.mrb[96].mxu0 %vm211_vm2, %v9581_v61  ;;  %7908 = vmatmul.mubr.msk.bf16.vlgmr.msra.gmra.mrb[92].mxu1 %vm211_vm2, %v9579_v31 }
 0xcaa   :  { %7912 = vmatpush3.bf16.xpose.msra.mxu0 %v3147_v57  ;;  %7918 = vmatpush3.bf16.xpose.msra.mxu1 %v3196_v39 }
 0xcab   :  { %7919 = vmatprep.mubr.msk.bf16.mxu1 %vm8839_vm1, %v8838_v23  ;;  %7913 = vmatprep.mubr.msk.bf16.mxu0 %vm8839_vm1, %v8838_v23 }
 0xcac   :  { %7923 = vmatprep.subr.bf16.mxu0 %v8838_v23  ;;  %7929 = vmatprep.subr.bf16.mxu1 %v8838_v23 }
 0xcb1   :  { %7914 = vmatmul.mubr.msk.bf16.vlgmr.msra.gmra.mrb[100].mxu0 %vm211_vm2, %v9595_v24  ;;  %7920 = vmatmul.mubr.msk.bf16.vlgmr.msra.gmra.mrb[96].mxu1 %vm211_vm2, %v9591_v33 }
 0xcb2   :  { %7924 = vmatpush3.bf16.xpose.msra.mxu0 %v3245_v15  ;;  %7930 = vmatpush3.bf16.xpose.msra.mxu1 %v3294_v16 }
 0xcb3   :  { %7925 = vmatprep.mubr.msk.bf16.mxu0 %vm8839_vm1, %v8838_v23  ;;  %7931 = vmatprep.mubr.msk.bf16.mxu1 %vm8839_vm1, %v8838_v23 }
 0xcb4   :  { %7935 = vmatprep.subr.bf16.mxu0 %v8838_v23  ;;  %7941 = vmatprep.subr.bf16.mxu1 %v8838_v23 }
 0xcb9   :  { %7926 = vmatmul.mubr.msk.bf16.vlgmr.msra.gmra.mrb[104].mxu0 %vm211_vm2, %v9605_v54  ;;  %7932 = vmatmul.mubr.msk.bf16.vlgmr.msra.gmra.mrb[100].mxu1 %vm211_vm2, %v9603_v18 }
 0xcba   :  { %7936 = vmatpush3.bf16.msra.mxu0 %v3534_v50  ;;  %7942 = vmatpush3.bf16.msra.mxu1 %v3582_v51 }
 0xcbb   :  { %7943 = vmatprep.mubr.msk.bf16.mxu1 %vm8839_vm1, %v8838_v23  ;;  %7953 = vmatprep.subr.bf16.mxu1 %v8838_v23 }
 0xcbc   :  { %7937 = vmatprep.mubr.msk.bf16.mxu0 %vm8839_vm1, %v8838_v23  ;;  %7947 = vmatprep.subr.bf16.mxu0 %v8838_v23 }
 0xcf5   :  { %v9719_v52 = vpop.f32.mrb[76].mxu0 }
 0xcf6   :  { %v7843_v20 = vpop.f32.mrb[77].mxu0  ;;  %v3336_v22 = vsel %vm211_vm2, %v9719_v52, -inf }
 0xcf7   :  { %3337 = vmax.xlane.f32.xlu0 %v3336_v22  ;;  %v2598_v60 = vpop.f32.mrb[78].mxu0 }
 0xcf8   :  { %v7844_v56 = vpop.f32.mrb[79].mxu0 }
 0xcfd   :  { %v9723_v4 = vpop.f32.mrb[80].mxu0 }
 0xcfe   :  { %v9725_v5 = vpop.f32.mrb[72].mxu1  ;;  %v7855_v53 = vpop.f32.mrb[81].mxu0  ;;  %v3342_v8 = vsel %vm211_vm2, %v9723_v4, -inf }
 0xcff   :  { %v7849_v62 = vpop.f32.mrb[73].mxu1  ;;  %3343 = vmax.xlane.f32.xlu0 %v3342_v8  ;;  %v2696_v6 = vpop.f32.mrb[82].mxu0  ;;  %v3339_v11 = vsel %vm211_vm2, %v9725_v5, -inf }
 0xd00   :  { %v2647_v40 = vpop.f32.mrb[74].mxu1  ;;  %3340 = vmax.xlane.f32.xlu1 %v3339_v11  ;;  %v7856_v19 = vpop.f32.mrb[83].mxu0 }
 0xd01   :  { %v7850_v27 = vpop.f32.mrb[75].mxu1 }
 0xd06   :  { %v9731_v28 = vpop.f32.mrb[76].mxu1 }
 0xd07   :  { %v7861_v46 = vpop.f32.mrb[77].mxu1  ;;  %v3345_v32 = vsel %vm211_vm2, %v9731_v28, -inf }
 0xd08   :  { %v2745_v13 = vpop.f32.mrb[78].mxu1  ;;  %3346 = vmax.xlane.f32.xlu0 %v3345_v32 }
 0xd09   :  { %v7862_v36 = vpop.f32.mrb[79].mxu1 }
 0xd64   :  { %v9735_v34 = vpop.f32.mrb[84].mxu0  ;;  %v9737_v12 = vpop.f32.mrb[80].mxu1 }
 0xd65   :  { %v7867_v0 = vpop.f32.mrb[85].mxu0  ;;  %v7873_v17 = vpop.f32.mrb[81].mxu1  ;;  %v3351_v41 = vsel %vm211_vm2, %v9737_v12, -inf  ;;  %v3348_v42 = vsel %vm211_vm2, %v9735_v34, -inf }
 0xd66   :  { %v2843_v37 = vpop.f32.mrb[82].mxu1  ;;  %3352 = vmax.xlane.f32.xlu0 %v3351_v41  ;;  %3349 = vmax.xlane.f32.xlu1 %v3348_v42  ;;  %v2794_v29 = vpop.f32.mrb[86].mxu0 }
 0xd67   :  { %v7868_v14 = vpop.f32.mrb[87].mxu0  ;;  %v7874_v43 = vpop.f32.mrb[83].mxu1 }
 0xd6c   :  { %v9743_v1 = vpop.f32.mrb[88].mxu0  ;;  %v9745_v38 = vpop.f32.mrb[84].mxu1 }
 0xd6d   :  { %v7879_v63 = vpop.f32.mrb[89].mxu0  ;;  %v7885_v39 = vpop.f32.mrb[85].mxu1  ;;  %v3357_v57 = vsel %vm211_vm2, %v9745_v38, -inf  ;;  %v3354_v47 = vsel %vm211_vm2, %v9743_v1, -inf }
 0xd6e   :  { %v2941_v2 = vpop.f32.mrb[86].mxu1  ;;  %3358 = vmax.xlane.f32.xlu0 %v3357_v57  ;;  %3355 = vmax.xlane.f32.xlu1 %v3354_v47  ;;  %v2892_v16 = vpop.f32.mrb[90].mxu0 }
 0xd6f   :  { %v7880_v15 = vpop.f32.mrb[91].mxu0  ;;  %v7886_v3 = vpop.f32.mrb[87].mxu1 }
 0xd74   :  { %v9751_v49 = vpop.f32.mrb[92].mxu0  ;;  %v9753_v50 = vpop.f32.mrb[88].mxu1 }
 0xd75   :  { %v7891_v51 = vpop.f32.mrb[93].mxu0  ;;  %v7897_v20 = vpop.f32.mrb[89].mxu1  ;;  %v3363_v22 = vsel %vm211_vm2, %v9753_v50, -inf  ;;  %v3360_v60 = vsel %vm211_vm2, %v9751_v49, -inf }
 0xd76   :  { %v3039_v56 = vpop.f32.mrb[90].mxu1  ;;  %3364 = vmax.xlane.f32.xlu0 %v3363_v22  ;;  %3361 = vmax.xlane.f32.xlu1 %v3360_v60  ;;  %v2990_v53 = vpop.f32.mrb[94].mxu0 }
 0xd77   :  { %v7892_v8 = vpop.f32.mrb[95].mxu0  ;;  %v7898_v62 = vpop.f32.mrb[91].mxu1 }
 0xd78   :  { %v9783_v53 = vpop.permute.xlu1 %3624  ;;  %v9785_v8 = vpop.permute.xlu0 %3672 }
 0xd7c   :  { %v9759_v6 = vpop.f32.mrb[96].mxu0  ;;  %v9761_v11 = vpop.f32.mrb[92].mxu1 }
 0xd7d   :  { %v7903_v40 = vpop.f32.mrb[97].mxu0  ;;  %v7909_v19 = vpop.f32.mrb[93].mxu1  ;;  %v3369_v27 = vsel %vm211_vm2, %v9761_v11, -inf  ;;  %v3366_v46 = vsel %vm211_vm2, %v9759_v6, -inf }
 0xd7e   :  { %v3137_v32 = vpop.f32.mrb[94].mxu1  ;;  %3370 = vmax.xlane.f32.xlu0 %v3369_v27  ;;  %3367 = vmax.xlane.f32.xlu1 %v3366_v46  ;;  %v3088_v13 = vpop.f32.mrb[98].mxu0 }
 0xd7f   :  { %v7904_v36 = vpop.f32.mrb[99].mxu0  ;;  %v7910_v0 = vpop.f32.mrb[95].mxu1 }
 0xd80   :  { %v9787_v62 = vpop.permute.xlu1 %3720  ;;  %v9789_v40 = vpop.permute.xlu0 %3864 }
 0xd84   :  { %v9767_v17 = vpop.f32.mrb[100].mxu0  ;;  %v9769_v41 = vpop.f32.mrb[96].mxu1 }
 0xd85   :  { %v7915_v42 = vpop.f32.mrb[101].mxu0  ;;  %v3372_v37 = vsel %vm211_vm2, %v9767_v17, -inf  ;;  %v7921_v29 = vpop.f32.mrb[97].mxu1  ;;  %v3375_v14 = vsel %vm211_vm2, %v9769_v41, -inf }
 0xd86   :  { %3373 = vmax.xlane.f32.xlu1 %v3372_v37  ;;  %v3186_v43 = vpop.f32.mrb[102].mxu0  ;;  %v3235_v63 = vpop.f32.mrb[98].mxu1  ;;  %3376 = vmax.xlane.f32.xlu0 %v3375_v14 }
 0xd87   :  { %v7916_v39 = vpop.f32.mrb[103].mxu0  ;;  %v7922_v57 = vpop.f32.mrb[99].mxu1 }
 0xd88   :  { %v9791_v19 = vpop.permute.xlu1 %3816  ;;  %v9795_v27 = vpop.permute.xlu0 %3768 }
 0xd8c   :  { %v9775_v47 = vpop.f32.mrb[100].mxu1  ;;  %v9777_v2 = vpop.f32.mrb[104].mxu0 }
 0xd8d   :  { %v3381_v16 = vsel %vm211_vm2, %v9775_v47, -inf  ;;  %v7927_v15 = vpop.f32.mrb[105].mxu0  ;;  %v7933_v3 = vpop.f32.mrb[101].mxu1  ;;  %v3378_v51 = vsel %vm211_vm2, %v9777_v2, -inf }
 0xd8e   :  { %3382 = vmax.xlane.f32.xlu0 %v3381_v16  ;;  %v3333_v20 = vpop.f32.mrb[102].mxu1  ;;  %3379 = vmax.xlane.f32.xlu1 %v3378_v51  ;;  %v3284_v22 = vpop.f32.mrb[106].mxu0 }
 0xd8f   :  { %v7928_v60 = vpop.f32.mrb[107].mxu0  ;;  %v7934_v56 = vpop.f32.mrb[103].mxu1 }
 0xd90   :  { %v9801_v46 = vpop.permute.xlu1 %3912  ;;  %v3338_v32 = vpop.xlane.xlu0 %3337 }
 0xd94   :  { %v3344_v13 = vpop.xlane.xlu0 %3343  ;;  %v3341_v36 = vpop.xlane.xlu1 %3340 }
 0xd95   :  { %v3385_v0 = vsub.f32 %v9725_v5, %v3341_v36 }
 0xd97   :  { %v3402_v37 = vmul.f32 1.442695, %v3385_v0 }
 0xd98   :  { %v3347_v42 = vpop.xlane.xlu0 %3346 }
 0xd99   :  { %v3387_v29 = vsub.f32 %v9731_v28, %v3347_v42  ;;  %8593 = vpow2.f32 %v3402_v37 }
 0xd9b   :  { %v3406_v14 = vmul.f32 1.442695, %v3387_v29 }
 0xd9d   :  { %8595 = vpow2.f32 %v3406_v14 }
 0xd9f   :  { %4008 = vrot.lane.b32.xlu1 %v9581_v61, %s8842_s29  ;;  %v3384_v61 = vsub.f32 %v9719_v52, %v3338_v32 }
 0xda1   :  { %v3400_v43 = vmul.f32 1.442695, %v3384_v61 }
 0xda3   :  { %4056 = vrot.lane.b32.xlu1 %v9579_v31, %s8842_s29  ;;  %v3386_v31 = vsub.f32 %v9723_v4, %v3344_v13  ;;  %8597 = vpow2.f32 %v3400_v43  ;;  %v9807_v63 = vpop.eup %8593 }
 0xda4   :  { %3960 = vrot.lane.b32.xlu0 %v9570_v59, %s8842_s29  ;;  %v3435_v5 = vsel %vm211_vm2, %v9807_v63, 0.0 }
 0xda5   :  { %v3404_v59 = vmul.f32 1.442695, %v3386_v31 }
 0xda7   :  { %8599 = vpow2.f32 %v3404_v59  ;;  %v9811_v39 = vpop.eup %8595 }
 0xda8   :  { %v3441_v52 = vsel %vm211_vm2, %v9811_v39, 0.0 }
 0xdad   :  { %v9813_v28 = vpop.eup %8597 }
 0xdae   :  { %v3432_v4 = vsel %vm211_vm2, %v9813_v28, 0.0 }
 0xdb1   :  { %v9819_v57 = vpop.eup %8599 }
 0xdb2   :  { %v3438_v16 = vsel %vm211_vm2, %v9819_v57, 0.0 }
 0xdc3   :  { %3436 = vadd.xlane.f32.xlu0 %v3435_v5 }
 0xdc7   :  { %3442 = vadd.xlane.f32.xlu0 %v3441_v52  ;;  %3433 = vadd.xlane.f32.xlu1 %v3432_v4 }
 0xdcb   :  { %3439 = vadd.xlane.f32.xlu1 %v3438_v16 }
 0xdf3   :  { %v3350_v15 = vpop.xlane.xlu1 %3349  ;;  %v3353_v3 = vpop.xlane.xlu0 %3352 }
 0xdf4   :  { %v3388_v51 = vsub.f32 %v9735_v34, %v3350_v15  ;;  %v3389_v20 = vsub.f32 %v9737_v12, %v3353_v3 }
 0xdf6   :  { %v3408_v22 = vmul.f32 1.442695, %v3388_v51  ;;  %v3410_v60 = vmul.f32 1.442695, %v3389_v20 }
 0xdf8   :  { %8601 = vpow2.f32 %v3408_v22 }
 0xdf9   :  { %8603 = vpow2.f32 %v3410_v60 }
 0xdfb   :  { %v3356_v56 = vpop.xlane.xlu1 %3355  ;;  %v3359_v32 = vpop.xlane.xlu0 %3358 }
 0xdfc   :  { %v3390_v13 = vsub.f32 %v9743_v1, %v3356_v56  ;;  %v3391_v36 = vsub.f32 %v9745_v38, %v3359_v32 }
 0xdfe   :  { %v3412_v0 = vmul.f32 1.442695, %v3390_v13  ;;  %v3414_v42 = vmul.f32 1.442695, %v3391_v36 }
 0xe00   :  { %8605 = vpow2.f32 %v3412_v0 }
 0xe01   :  { %8607 = vpow2.f32 %v3414_v42 }
 0xe02   :  { %v9827_v37 = vpop.eup %8601 }
 0xe03   :  { %v9829_v29 = vpop.eup %8603  ;;  %v3362_v34 = vpop.xlane.xlu1 %3361  ;;  %v3444_v61 = vsel %vm211_vm2, %v9827_v37, 0.0 }
 0xe04   :  { %v3365_v12 = vpop.xlane.xlu0 %3364  ;;  %v3392_v14 = vsub.f32 %v9751_v49, %v3362_v34  ;;  %3445 = vadd.xlane.f32.xlu1 %v3444_v61  ;;  %v3447_v1 = vsel %vm211_vm2, %v9829_v29, 0.0 }
 0xe05   :  { %v3393_v43 = vsub.f32 %v9753_v50, %v3365_v12  ;;  %3448 = vadd.xlane.f32.xlu0 %v3447_v1 }
 0xe06   :  { %v3416_v38 = vmul.f32 1.442695, %v3392_v14 }
 0xe07   :  { %v3418_v31 = vmul.f32 1.442695, %v3393_v43 }
 0xe08   :  { %8609 = vpow2.f32 %v3416_v38 }
 0xe09   :  { %8611 = vpow2.f32 %v3418_v31 }
 0xe0a   :  { %v9837_v59 = vpop.eup %8605 }
 0xe0b   :  { %v9839_v5 = vpop.eup %8607  ;;  %v3368_v52 = vpop.xlane.xlu1 %3367  ;;  %v3450_v49 = vsel %vm211_vm2, %v9837_v59, 0.0 }
 0xe0c   :  { %v3371_v4 = vpop.xlane.xlu0 %3370  ;;  %v3394_v50 = vsub.f32 %v9759_v6, %v3368_v52  ;;  %3451 = vadd.xlane.f32.xlu1 %v3450_v49  ;;  %v3453_v15 = vsel %vm211_vm2, %v9839_v5, 0.0 }
 0xe0d   :  { %v3395_v16 = vsub.f32 %v9761_v11, %v3371_v4  ;;  %3454 = vadd.xlane.f32.xlu0 %v3453_v15 }
 0xe0e   :  { %v3420_v3 = vmul.f32 1.442695, %v3394_v50 }
 0xe0f   :  { %v3422_v51 = vmul.f32 1.442695, %v3395_v16 }
 0xe10   :  { %8613 = vpow2.f32 %v3420_v3 }
 0xe11   :  { %8615 = vpow2.f32 %v3422_v51 }
 0xe12   :  { %v9847_v20 = vpop.eup %8609 }
 0xe13   :  { %v9849_v22 = vpop.eup %8611  ;;  %v3456_v60 = vsel %vm211_vm2, %v9847_v20, 0.0  ;;  %v3374_v36 = vpop.xlane.xlu1 %3373 }
 0xe14   :  { %3457 = vadd.xlane.f32.xlu1 %v3456_v60  ;;  %v3459_v6 = vsel %vm211_vm2, %v9849_v22, 0.0  ;;  %v3377_v0 = vpop.xlane.xlu0 %3376  ;;  %v3396_v42 = vsub.f32 %v9767_v17, %v3374_v36 }
 0xe15   :  { %3460 = vadd.xlane.f32.xlu0 %v3459_v6  ;;  %v3397_v34 = vsub.f32 %v9769_v41, %v3377_v0 }
 0xe16   :  { %v3424_v14 = vmul.f32 1.442695, %v3396_v42 }
 0xe17   :  { %v3426_v1 = vmul.f32 1.442695, %v3397_v34  ;;  %v3678_v34 = vsel %vm1190_vm3, %v9785_v8, 0 }
 0xe18   :  { %8617 = vpow2.f32 %v3424_v14 }
 0xe19   :  { %8619 = vpow2.f32 %v3426_v1 }
 0xe1a   :  { %v9855_v11 = vpop.eup %8613 }
 0xe1b   :  { %v9857_v56 = vpop.eup %8615  ;;  %v3462_v32 = vsel %vm211_vm2, %v9855_v11, 0.0  ;;  %v3380_v12 = vpop.xlane.xlu1 %3379 }
 0xe1c   :  { %3463 = vadd.xlane.f32.xlu1 %v3462_v32  ;;  %v3465_v13 = vsel %vm211_vm2, %v9857_v56, 0.0  ;;  %v3383_v61 = vpop.xlane.xlu0 %3382  ;;  %v3398_v43 = vsub.f32 %v9777_v2, %v3380_v12 }
 0xe1d   :  { %3466 = vadd.xlane.f32.xlu0 %v3465_v13  ;;  %v3399_v38 = vsub.f32 %v9775_v47, %v3383_v61 }
 0xe1e   :  { %v3428_v31 = vmul.f32 1.442695, %v3398_v43  ;;  %v3630_v43 = vsel %vm1190_vm3, %v9783_v53, 0  ;;  %v3726_v53 = vsel %vm1190_vm3, %v9787_v62, 0 }
 0xe20   :  { %8621 = vpow2.f32 %v3428_v31  ;;  %v9873_v52 = vpop.permute.xlu0 %3960 }
 0xe22   :  { %v9875_v17 = vpop.eup %8617 }
 0xe23   :  { %v9877_v41 = vpop.eup %8619  ;;  %v3468_v2 = vsel %vm211_vm2, %v9875_v17, 0.0 }
 0xe24   :  { %v3471_v50 = vsel %vm211_vm2, %v9877_v41, 0.0 }
 0xe2a   :  { %v9881_v49 = vpop.eup %8621 }
 0xe2b   :  { %v3474_v3 = vsel %vm211_vm2, %v9881_v49, 0.0 }
 0xe2d   :  { %4152 = vrot.lane.b32.xlu1 %v9591_v33, %s8842_s29  ;;  %v3430_v33 = vmul.f32 1.442695, %v3399_v38 }
 0xe2f   :  { %8623 = vpow2.f32 %v3430_v33 }
 0xe33   :  { %4104 = vrot.lane.b32.xlu0 %v9595_v24, %s8842_s29  ;;  %v9871_v24 = vpop.permute.xlu1 %4008 }
 0xe37   :  { %v9883_v47 = vpop.permute.xlu1 %4056 }
 0xe39   :  { %v9887_v16 = vpop.eup %8623 }
 0xe3a   :  { %v3477_v60 = vsel %vm211_vm2, %v9887_v16, 0.0 }
 0xe50   :  { %v3437_v4 = vpop.xlane.xlu0 %3436 }
 0xe51   :  { %8625 = vrcp.f32 %v3437_v4  ;;  %3469 = vadd.xlane.f32.xlu1 %v3468_v2 }
 0xe52   :  { %3472 = vadd.xlane.f32.xlu0 %v3471_v50  ;;  %v3822_v50 = vsel %vm1190_vm3, %v9791_v19, 0 }
 0xe54   :  { %v3443_v15 = vpop.xlane.xlu0 %3442  ;;  %v3434_v51 = vpop.xlane.xlu1 %3433 }
 0xe55   :  { %8627 = vrcp.f32 %v3443_v15  ;;  %3475 = vadd.xlane.f32.xlu1 %v3474_v3  ;;  %v3870_v3 = vsel %vm1190_vm3, %v9789_v40, 0 }
 0xe56   :  { %8629 = vrcp.f32 %v3434_v51  ;;  %3478 = vadd.xlane.f32.xlu0 %v3477_v60 }
 0xe58   :  { %v3440_v6 = vpop.xlane.xlu1 %3439 }
 0xe59   :  { %8631 = vrcp.f32 %v3440_v6 }
 0xe5b   :  { %v8626_v32 = vpop.eup %8625 }
 0xe5c   :  { %v3497_v13 = vmul.f32 %v8626_v32, %v9807_v63  ;;  %v3918_v32 = vsel %vm1190_vm3, %v9801_v46, 0 }
 0xe5e   :  { %v3513_v36 = vpack.c.bf16 %v3497_v13, %v3497_v13 }
 0xe5f   :  { %v8628_v0 = vpop.eup %8627 }
 0xe60   :  { %v8630_v42 = vpop.eup %8629  ;;  %7944 = vmatmul.mubr.msk.bf16.vlgmr.msra.gmra.mrb[104].mxu1 %vm211_vm2, %v3513_v36  ;;  %v3499_v61 = vmul.f32 %v8628_v0, %v9811_v39  ;;  %v3774_v39 = vsel %vm1190_vm3, %v9795_v27, 0  ;;  %v3966_v36 = vsel %vm1190_vm3, %v9873_v52, 0 }
 0xe61   :  { %7954 = vmatpush3.bf16.msra.mxu1 %v3678_v34  ;;  %v3496_v12 = vmul.f32 %v8630_v42, %v9813_v28  ;;  %7955 = vmatprep.mubr.msk.bf16.mxu1 %vm8839_vm1, %v8838_v23 }
 0xe62   :  { %7965 = vmatprep.subr.bf16.mxu1 %v8838_v23  ;;  %v3515_v8 = vpack.c.bf16 %v3499_v61, %v3499_v61  ;;  %v4062_v61 = vsel %vm1190_vm3, %v9883_v47, 0 }
 0xe63   :  { %v3512_v14 = vpack.c.bf16 %v3496_v12, %v3496_v12  ;;  %v8632_v63 = vpop.eup %8631  ;;  %v4014_v12 = vsel %vm1190_vm3, %v9871_v24, 0 }
 0xe64   :  { %v3498_v28 = vmul.f32 %v8632_v63, %v9819_v57 }
 0xe65   :  { %7938 = vmatmul.mubr.msk.bf16.vlgmr.msra.gmra.mrb[108].mxu0 %vm211_vm2, %v3512_v14 }
 0xe66   :  { %7948 = vmatpush3.bf16.msra.mxu0 %v3630_v43  ;;  %4248 = vrot.lane.b32.xlu1 %v9603_v18, %s8842_s29  ;;  %v3514_v18 = vpack.c.bf16 %v3498_v28, %v3498_v28 }
 0xe67   :  { %7949 = vmatprep.mubr.msk.bf16.mxu0 %vm8839_vm1, %v8838_v23  ;;  %7959 = vmatprep.subr.bf16.mxu0 %v8838_v23 }
 0xe68   :  { %7956 = vmatmul.mubr.msk.bf16.vlgmr.msra.gmra.mrb[108].mxu1 %vm211_vm2, %v3515_v8 }
 0xe69   :  { %7966 = vmatpush3.bf16.msra.mxu1 %v3774_v39  ;;  %7967 = vmatprep.mubr.msk.bf16.mxu1 %vm8839_vm1, %v8838_v23 }
 0xe6a   :  { %7977 = vmatprep.subr.bf16.mxu1 %v8838_v23 }
 0xe6c   :  { %4200 = vrot.lane.b32.xlu0 %v9605_v54, %s8842_s29 }
 0xe6d   :  { %7950 = vmatmul.mubr.msk.bf16.vlgmr.msra.gmra.mrb[112].mxu0 %vm211_vm2, %v3514_v18 }
 0xe6e   :  { %7960 = vmatpush3.bf16.msra.mxu0 %v3726_v53  ;;  %7961 = vmatprep.mubr.msk.bf16.mxu0 %vm8839_vm1, %v8838_v23 }
 0xe6f   :  { %7971 = vmatprep.subr.bf16.mxu0 %v8838_v23 }
 0xe91   :  { %v3446_v27 = vpop.xlane.xlu1 %3445 }
 0xe92   :  { %8633 = vrcp.f32 %v3446_v27  ;;  %v3449_v57 = vpop.xlane.xlu0 %3448 }
 0xe93   :  { %8635 = vrcp.f32 %v3449_v57 }
 0xe99   :  { %v3452_v1 = vpop.xlane.xlu1 %3451 }
 0xe9a   :  { %8637 = vrcp.f32 %v3452_v1  ;;  %v3455_v38 = vpop.xlane.xlu0 %3454 }
 0xe9b   :  { %8639 = vrcp.f32 %v3455_v38 }
 0xe9c   :  { %v8634_v54 = vpop.eup %8633 }
 0xe9d   :  { %v8636_v31 = vpop.eup %8635  ;;  %v3500_v62 = vmul.f32 %v8634_v54, %v9827_v37 }
 0xe9e   :  { %v3501_v33 = vmul.f32 %v8636_v31, %v9829_v29 }
 0xe9f   :  { %v3516_v4 = vpack.c.bf16 %v3500_v62, %v3500_v62 }
 0xea0   :  { %v3517_v2 = vpack.c.bf16 %v3501_v33, %v3501_v33 }
 0xea1   :  { %7962 = vmatmul.mubr.msk.bf16.vlgmr.msra.gmra.mrb[116].mxu0 %vm211_vm2, %v3516_v4  ;;  %v3458_v15 = vpop.xlane.xlu1 %3457 }
 0xea2   :  { %7972 = vmatpush3.bf16.msra.mxu0 %v3822_v50  ;;  %8641 = vrcp.f32 %v3458_v15  ;;  %7968 = vmatmul.mubr.msk.bf16.vlgmr.msra.gmra.mrb[112].mxu1 %vm211_vm2, %v3517_v2  ;;  %v3461_v51 = vpop.xlane.xlu0 %3460 }
 0xea3   :  { %7978 = vmatpush3.bf16.msra.mxu1 %v3870_v3  ;;  %8643 = vrcp.f32 %v3461_v51  ;;  %7973 = vmatprep.mubr.msk.bf16.mxu0 %vm8839_vm1, %v8838_v23 }
 0xea4   :  { %v8638_v37 = vpop.eup %8637  ;;  %7979 = vmatprep.mubr.msk.bf16.mxu1 %vm8839_vm1, %v8838_v23  ;;  %7983 = vmatprep.subr.bf16.mxu0 %v8838_v23 }
 0xea5   :  { %v8640_v19 = vpop.eup %8639  ;;  %7989 = vmatprep.subr.bf16.mxu1 %v8838_v23  ;;  %v3502_v40 = vmul.f32 %v8638_v37, %v9837_v59 }
 0xea6   :  { %v3503_v29 = vmul.f32 %v8640_v19, %v9839_v5 }
 0xea7   :  { %v3518_v60 = vpack.c.bf16 %v3502_v40, %v3502_v40 }
 0xea8   :  { %v3519_v6 = vpack.c.bf16 %v3503_v29, %v3503_v29 }
 0xea9   :  { %7974 = vmatmul.mubr.msk.bf16.vlgmr.msra.gmra.mrb[120].mxu0 %vm211_vm2, %v3518_v60  ;;  %v3464_v13 = vpop.xlane.xlu1 %3463 }
 0xeaa   :  { %7984 = vmatpush3.bf16.msra.mxu0 %v3918_v32  ;;  %8645 = vrcp.f32 %v3464_v13  ;;  %7980 = vmatmul.mubr.msk.bf16.vlgmr.msra.gmra.mrb[116].mxu1 %vm211_vm2, %v3519_v6  ;;  %v3467_v0 = vpop.xlane.xlu0 %3466 }
 0xeab   :  { %7990 = vmatpush3.bf16.msra.mxu1 %v3966_v36  ;;  %8647 = vrcp.f32 %v3467_v0  ;;  %7985 = vmatprep.mubr.msk.bf16.mxu0 %vm8839_vm1, %v8838_v23 }
 0xeac   :  { %v8642_v59 = vpop.eup %8641  ;;  %7991 = vmatprep.mubr.msk.bf16.mxu1 %vm8839_vm1, %v8838_v23  ;;  %7995 = vmatprep.subr.bf16.mxu0 %v8838_v23 }
 0xead   :  { %v8644_v46 = vpop.eup %8643  ;;  %8001 = vmatprep.subr.bf16.mxu1 %v8838_v23  ;;  %v3504_v5 = vmul.f32 %v8642_v59, %v9847_v20  ;;  %v4153_v63 = vpop.permute.xlu1 %4152 }
 0xeae   :  { %v3505_v52 = vmul.f32 %v8644_v46, %v9849_v22  ;;  %v4105_v14 = vpop.permute.xlu0 %4104  ;;  %v4158_v39 = vsel %vm1190_vm3, %v4153_v63, 0 }
 0xeaf   :  { %v3520_v42 = vpack.c.bf16 %v3504_v5, %v3504_v5  ;;  %v4110_v28 = vsel %vm1190_vm3, %v4105_v14, 0 }
 0xeb0   :  { %v3521_v34 = vpack.c.bf16 %v3505_v52, %v3505_v52 }
 0xeb1   :  { %7986 = vmatmul.mubr.msk.bf16.vlgmr.msra.gmra.mrb[124].mxu0 %vm211_vm2, %v3520_v42 }
 0xeb2   :  { %7992 = vmatmul.mubr.msk.bf16.vlgmr.msra.gmra.mrb[120].mxu1 %vm211_vm2, %v3521_v34  ;;  %7996 = vmatpush3.bf16.msra.mxu0 %v4014_v12 }
 0xeb3   :  { %8002 = vmatpush3.bf16.msra.mxu1 %v4062_v61  ;;  %7997 = vmatprep.mubr.msk.bf16.mxu0 %vm8839_vm1, %v8838_v23 }
 0xeb4   :  { %v8646_v20 = vpop.eup %8645  ;;  %8003 = vmatprep.mubr.msk.bf16.mxu1 %vm8839_vm1, %v8838_v23  ;;  %8007 = vmatprep.subr.bf16.mxu0 %v8838_v23 }
 0xeb5   :  { %v8648_v22 = vpop.eup %8647  ;;  %8013 = vmatprep.subr.bf16.mxu1 %v8838_v23  ;;  %v3506_v24 = vmul.f32 %v8646_v20, %v9855_v11 }
 0xeb6   :  { %v3507_v47 = vmul.f32 %v8648_v22, %v9857_v56 }
 0xeb7   :  { %v3522_v43 = vpack.c.bf16 %v3506_v24, %v3506_v24 }
 0xeb8   :  { %v3523_v8 = vpack.c.bf16 %v3507_v47, %v3507_v47 }
 0xeb9   :  { %7998 = vmatmul.mubr.msk.bf16.vlgmr.msra.gmra.mrb[128].mxu0 %vm211_vm2, %v3522_v43 }
 0xeba   :  { %8004 = vmatmul.mubr.msk.bf16.vlgmr.msra.gmra.mrb[124].mxu1 %vm211_vm2, %v3523_v8  ;;  %8008 = vmatpush3.bf16.msra.mxu0 %v4110_v28 }
 0xebb   :  { %8014 = vmatpush3.bf16.msra.mxu1 %v4158_v39  ;;  %8009 = vmatprep.mubr.msk.bf16.mxu0 %vm8839_vm1, %v8838_v23 }
 0xebc   :  { %8015 = vmatprep.mubr.msk.bf16.mxu1 %vm8839_vm1, %v8838_v23  ;;  %8019 = vmatprep.subr.bf16.mxu0 %v8838_v23 }
 0xebd   :  { %8025 = vmatprep.subr.bf16.mxu1 %v8838_v23 }
 0xede   :  { %v3470_v11 = vpop.xlane.xlu1 %3469 }
 0xedf   :  { %8649 = vrcp.f32 %v3470_v11  ;;  %v3473_v56 = vpop.xlane.xlu0 %3472 }
 0xee0   :  { %8651 = vrcp.f32 %v3473_v56 }
 0xee2   :  { %v3476_v18 = vpop.xlane.xlu1 %3475 }
 0xee3   :  { %8653 = vrcp.f32 %v3476_v18  ;;  %v3479_v53 = vpop.xlane.xlu0 %3478 }
 0xee4   :  { %8655 = vrcp.f32 %v3479_v53 }
 0xee6   :  { %v4249_v31 = vpop.permute.xlu1 %4248 }
 0xee7   :  { %v4201_v38 = vpop.permute.xlu0 %4200  ;;  %v4254_v15 = vsel %vm1190_vm3, %v4249_v31, 0 }
 0xee8   :  { %v4206_v50 = vsel %vm1190_vm3, %v4201_v38, 0 }
 0xee9   :  { %v8650_v27 = vpop.eup %8649 }
 0xeea   :  { %v8652_v57 = vpop.eup %8651  ;;  %v3508_v1 = vmul.f32 %v8650_v27, %v9875_v17 }
 0xeeb   :  { %v3509_v54 = vmul.f32 %v8652_v57, %v9877_v41 }
 0xeec   :  { %v3524_v62 = vpack.c.bf16 %v3508_v1, %v3508_v1 }
 0xeed   :  { %v8654_v33 = vpop.eup %8653  ;;  %v3525_v4 = vpack.c.bf16 %v3509_v54, %v3509_v54 }
 0xeee   :  { %v8656_v2 = vpop.eup %8655  ;;  %8010 = vmatmul.mubr.msk.bf16.vlgmr.msra.gmra.mrb[132].mxu0 %vm211_vm2, %v3524_v62  ;;  %v3510_v17 = vmul.f32 %v8654_v33, %v9881_v49 }
 0xeef   :  { %8016 = vmatmul.mubr.msk.bf16.vlgmr.msra.gmra.mrb[128].mxu1 %vm211_vm2, %v3525_v4  ;;  %8020 = vmatpush3.bf16.msra.mxu0 %v4206_v50  ;;  %v3511_v41 = vmul.f32 %v8656_v2, %v9887_v16 }
 0xef0   :  { %8026 = vmatpush3.bf16.msra.mxu1 %v4254_v15  ;;  %8021 = vmatprep.mubr.msk.bf16.mxu0 %vm8839_vm1, %v8838_v23  ;;  %v3526_v3 = vpack.c.bf16 %v3510_v17, %v3510_v17 }
 0xef1   :  { %8027 = vmatprep.mubr.msk.bf16.mxu1 %vm8839_vm1, %v8838_v23  ;;  %v3527_v51 = vpack.c.bf16 %v3511_v41, %v3511_v41 }
 0xef6   :  { %8022 = vmatmul.mubr.msk.bf16.vlgmr.msra.gmra.mrb[136].mxu0 %vm211_vm2, %v3526_v3 }
 0xef7   :  { %8028 = vmatmul.mubr.msk.bf16.vlgmr.msra.gmra.mrb[132].mxu1 %vm211_vm2, %v3527_v51 }
 0xf33   :  { %v9993_v37 = vpop.f32.mrb[104].mxu1 }
 0xf34   :  { %v7945_v19 = vpop.f32.mrb[105].mxu1 }
 0xf35   :  { %v3621_v40 = vpop.f32.mrb[106].mxu1 }
 0xf36   :  { %v7946_v29 = vpop.f32.mrb[107].mxu1 }
 0xf37   :  { %v8495_v29 = vld [vmem:[%s10707_s2 + $0x10] sm:$0xff]  }
 0xf38   :  { %v9995_v60 = vpop.f32.mrb[108].mxu0  ;;  %8031 = vmatprep.subr.bf16.mxu0 %v8495_v29 }
 0xf39   :  { %v7939_v6 = vpop.f32.mrb[109].mxu0  ;;  %8032 = vmatpush3.bf16.msra.mxu0 %v8495_v29 }
 0xf3a   :  { %v3573_v49 = vpop.f32.mrb[110].mxu0  ;;  %v8496_v6 = vld [vmem:[%s10707_s2 + $0x18] sm:$0xff]  }
 0xf3b   :  { %v7940_v32 = vpop.f32.mrb[111].mxu0  ;;  %v9997_v13 = vpop.f32.mrb[108].mxu1  ;;  %8033 = vmatprep.subr.bf16.mxu0 %v8496_v6 }
 0xf3c   :  { %v7957_v36 = vpop.f32.mrb[109].mxu1 }
 0xf3d   :  { %v3717_v16 = vpop.f32.mrb[110].mxu1  ;;  %8034 = vmatpush3.bf16.msra.mxu0 %v8496_v6 }
 0xf3e   :  { %v7958_v0 = vpop.f32.mrb[111].mxu1 }
 0xf40   :  { %v9999_v59 = vpop.f32.mrb[112].mxu0 }
 0xf41   :  { %v7951_v46 = vpop.f32.mrb[113].mxu0 }
 0xf42   :  { %v3669_v5 = vpop.f32.mrb[114].mxu0 }
 0xf43   :  { %v7952_v52 = vpop.f32.mrb[115].mxu0 }
 0xf74   :  { %v3762_v42 = vpop.f32.mrb[116].mxu0 }
 0xf75   :  { %v3810_v34 = vpop.f32.mrb[112].mxu1  ;;  %v7963_v12 = vpop.f32.mrb[117].mxu0 }
 0xf76   :  { %v8393_v61 = vpack.i.bf16 %v3810_v34, %v3762_v42  ;;  %v7969_v20 = vpop.f32.mrb[113].mxu1  ;;  %v3765_v22 = vpop.f32.mrb[118].mxu0 }
 0xf77   :  { %v3813_v24 = vpop.f32.mrb[114].mxu1  ;;  %v7964_v14 = vpop.f32.mrb[119].mxu0 }
 0xf78   :  { %8394 = vrot.lane.b32.xlu0 %v8393_v61, %s8834_s8  ;;  %v7970_v47 = vpop.f32.mrb[115].mxu1 }
 0xf7c   :  { %v3858_v63 = vpop.f32.mrb[120].mxu0 }
 0xf7d   :  { %v3906_v43 = vpop.f32.mrb[116].mxu1  ;;  %v7975_v8 = vpop.f32.mrb[121].mxu0 }
 0xf7e   :  { %v8398_v28 = vpack.i.bf16 %v3906_v43, %v3858_v63  ;;  %v7981_v39 = vpop.f32.mrb[117].mxu1  ;;  %v3861_v11 = vpop.f32.mrb[122].mxu0 }
 0xf7f   :  { %v3909_v56 = vpop.f32.mrb[118].mxu1  ;;  %v7976_v18 = vpop.f32.mrb[123].mxu0 }
 0xf80   :  { %8399 = vrot.lane.b32.xlu1 %v8398_v28, %s8834_s8  ;;  %v7982_v53 = vpop.f32.mrb[119].mxu1 }
 0xf84   :  { %v3954_v27 = vpop.f32.mrb[124].mxu0 }
 0xf85   :  { %v4002_v57 = vpop.f32.mrb[120].mxu1  ;;  %v7987_v1 = vpop.f32.mrb[125].mxu0 }
 0xf86   :  { %v8403_v38 = vpack.i.bf16 %v4002_v57, %v3954_v27  ;;  %v7993_v54 = vpop.f32.mrb[121].mxu1  ;;  %v3957_v31 = vpop.f32.mrb[126].mxu0 }
 0xf87   :  { %v4005_v62 = vpop.f32.mrb[122].mxu1  ;;  %v7988_v33 = vpop.f32.mrb[127].mxu0 }
 0xf88   :  { %8404 = vrot.lane.b32.xlu0 %v8403_v38, %s8843_s30  ;;  %v7994_v4 = vpop.f32.mrb[123].mxu1 }
 0xf8c   :  { %v4050_v2 = vpop.f32.mrb[128].mxu0 }
 0xf8d   :  { %v4098_v50 = vpop.f32.mrb[124].mxu1  ;;  %v7999_v15 = vpop.f32.mrb[129].mxu0 }
 0xf8e   :  { %v8408_v17 = vpack.i.bf16 %v4098_v50, %v4050_v2  ;;  %v8005_v41 = vpop.f32.mrb[125].mxu1  ;;  %v4053_v3 = vpop.f32.mrb[130].mxu0 }
 0xf8f   :  { %v4101_v51 = vpop.f32.mrb[126].mxu1  ;;  %v8000_v19 = vpop.f32.mrb[131].mxu0 }
 0xf90   :  { %8409 = vrot.lane.b32.xlu1 %v8408_v17, %s8843_s30  ;;  %v8006_v40 = vpop.f32.mrb[127].mxu1 }
 0xfc1   :  { %v4146_v49 = vpop.f32.mrb[132].mxu0 }
 0xfc2   :  { %v4194_v32 = vpop.f32.mrb[128].mxu1  ;;  %v8011_v36 = vpop.f32.mrb[133].mxu0 }
 0xfc3   :  { %v8413_v16 = vpack.i.bf16 %v4194_v32, %v4146_v49  ;;  %v8017_v0 = vpop.f32.mrb[129].mxu1  ;;  %v4149_v46 = vpop.f32.mrb[134].mxu0  ;;  %v10031_v36 = vld [vmem:[#allocation5 + $0x8] sm:$0xff] }
 0xfc4   :  { %v4197_v5 = vpop.f32.mrb[130].mxu1  ;;  %v8012_v52 = vpop.f32.mrb[135].mxu0 }
 0xfc5   :  { %8414 = vrot.lane.b32.xlu0 %v8413_v16, %s8844_s12  ;;  %v8018_v42 = vpop.f32.mrb[131].mxu1 }
 0xfc9   :  { %v4242_v34 = vpop.f32.mrb[136].mxu0 }
 0xfca   :  { %v4290_v12 = vpop.f32.mrb[132].mxu1  ;;  %v8023_v61 = vpop.f32.mrb[137].mxu0 }
 0xfcb   :  { %v8418_v20 = vpack.i.bf16 %v4290_v12, %v4242_v34  ;;  %v8029_v22 = vpop.f32.mrb[133].mxu1  ;;  %v4245_v24 = vpop.f32.mrb[138].mxu0 }
 0xfcc   :  { %v4293_v14 = vpop.f32.mrb[134].mxu1  ;;  %v8024_v47 = vpop.f32.mrb[139].mxu0 }
 0xfcd   :  { %v8030_v63 = vpop.f32.mrb[135].mxu1  ;;  %8419 = vrot.lane.b32.xlu1 %v8418_v20, %s8844_s12 }
 0xfea   :  { %v8395_v43 = vpop.permute.xlu0 %8394 }
 0xfeb   :  { %v8397_v28 = vunpack.i.h.bf16 %v8395_v43  ;;  %v8396_v39 = vunpack.i.l.bf16 %v8395_v43 }
 0xfed   :  { %v4345_v27 = vsel %vm211_vm2, %v9993_v37, %v8397_v28  ;;  %v4344_v57 = vsel %vm211_vm2, %v9995_v60, %v8396_v39 }
 0xff2   :  { %v8400_v18 = vpop.permute.xlu1 %8399 }
 0xff3   :  { %v8402_v50 = vunpack.i.h.bf16 %v8400_v18  ;;  %v8401_v15 = vunpack.i.l.bf16 %v8400_v18 }
 0xff5   :  { %v4347_v60 = vsel %vm211_vm2, %v9997_v13, %v8402_v50  ;;  %v4346_v3 = vsel %vm211_vm2, %v9999_v59, %v8401_v15  ;;  %v4361_v13 = vrot.slane %v10031_v36, %v9430_v26  ;;  %v8499_v50 = vld [vmem:[%s10709_s4 + $0x20] sm:$0xff]   ;;  %v8500_v15 = vld [vmem:[%s10709_s4 + $0x28] sm:$0xff]  }
 0xff6   :  { %8047 = vmatprep.subr.bf16.mxu0 %v8499_v50 }
 0xffa   :  { %v8405_v8 = vpop.permute.xlu0 %8404 }
 0xffb   :  { %v8407_v11 = vunpack.i.h.bf16 %v8405_v8  ;;  %v8406_v56 = vunpack.i.l.bf16 %v8405_v8 }
 0xffd   :  { %v4348_v54 = vsel %vm2006_vm4, %v4344_v57, %v8406_v56  ;;  %v4349_v31 = vsel %vm2006_vm4, %v4345_v27, %v8407_v11 }
0x1002   :  { %v8410_v62 = vpop.permute.xlu1 %8409 }
0x1003   :  { %v8412_v17 = vunpack.i.h.bf16 %v8410_v62  ;;  %v8411_v41 = vunpack.i.l.bf16 %v8410_v62 }
0x1005   :  { %v4351_v40 = vsel %vm2006_vm4, %v4347_v60, %v8412_v17  ;;  %v4350_v29 = vsel %vm2006_vm4, %v4346_v3, %v8411_v41 }
0x1037   :  { %v8415_v53 = vpop.permute.xlu0 %8414 }
0x1038   :  { %v8417_v1 = vunpack.i.h.bf16 %v8415_v53  ;;  %v8416_v38 = vunpack.i.l.bf16 %v8415_v53 }
0x103a   :  { %v4352_v33 = vsel %vm2011_vm5, %v4348_v54, %v8416_v38  ;;  %v4353_v4 = vsel %vm2011_vm5, %v4349_v31, %v8417_v1 }
0x103b   :  { %v4356_v2 = vpack.c.bf16 %v4353_v4, %v4352_v33  ;;  %v8497_v4 = vld [vmem:[%s10708_s3 + $0x10] sm:$0xff]  }
0x103c   :  { %8039 = vmatprep.subr.bf16.mxu1 %v8497_v4 }
0x103d   :  { %8035 = vmatprep.mubr.msk.bf16.mxu0 %vm96_vm0, %v4356_v2  ;;  %8040 = vmatpush3.bf16.msra.mxu1 %v8497_v4  ;;  %v8498_v2 = vld [vmem:[%s10708_s3 + $0x18] sm:$0xff]   ;;  %v4583_v4 = vrot.slane %v10031_v36, %v9485_v55 }
0x103e   :  { %8041 = vmatprep.subr.bf16.mxu1 %v8498_v2 }
0x103f   :  { %v8420_v37 = vpop.permute.xlu1 %8419 }
0x1040   :  { %v8422_v51 = vunpack.i.h.bf16 %v8420_v37  ;;  %v8421_v19 = vunpack.i.l.bf16 %v8420_v37 }
0x1041   :  { %8042 = vmatpush3.bf16.msra.mxu1 %v8498_v2 }
0x1042   :  { %v4355_v6 = vsel %vm2011_vm5, %v4351_v40, %v8422_v51  ;;  %v4354_v49 = vsel %vm2011_vm5, %v4350_v29, %v8421_v19 }
0x1043   :  { %v4357_v32 = vpack.c.bf16 %v4355_v6, %v4354_v49 }
0x1045   :  { %8036 = vmatmul.mubr.msk.bf16.vlgmr.msra.gmra.mrb[140].mxu0 %vm96_vm0, %v4357_v32 }
0x1046   :  { %8048 = vmatpush3.bf16.msra.mxu0 %v8499_v50 }
0x1047   :  { %8049 = vmatprep.subr.bf16.mxu0 %v8500_v15 }
0x104a   :  { %8050 = vmatpush3.bf16.msra.mxu0 %v8500_v15 }
0x1118   :  { %v8037_v16 = vpop.f32.mrb[140].mxu0 }
0x1119   :  { %v4414_v59 = vpop.f32.mrb[141].mxu0  ;;  %v4423_v0 = vadd.f32 %v8037_v16, %v4361_v13 }
0x111a   :  { %v4415_v46 = vadd.f32 %v4414_v59, %v4361_v13  ;;  %v8038_v5 = vpop.f32.mrb[142].mxu0 }
0x111b   :  { %v4417_v52 = vpop.f32.mrb[143].mxu0  ;;  %v4431_v12 = vadd.f32 %v4423_v0, %v9521_v25  ;;  %v4426_v61 = vadd.f32 %v8038_v5, %v4361_v13 }
0x111c   :  { %v4429_v42 = vadd.f32 %v4415_v46, %v9514_v44  ;;  %v4418_v34 = vadd.f32 %v4417_v52, %v4361_v13  ;;  %v4488_v13 = vrot.slane %v10031_v36, %v9457_v35  ;;  %v4496_v52 = vrot.slane %v10031_v36, %v9462_v48 }
0x111d   :  { %v4432_v14 = vadd.f32 %v4426_v61, %v9523_v30  ;;  %v4439_v47 = vsel %vm96_vm0, %v4431_v12, 0.0 }
0x111e   :  { %v4430_v20 = vadd.f32 %v4418_v34, %v9516_v7  ;;  %v4433_v22 = vsel %vm96_vm0, %v4429_v42, 0.0 }
0x111f   :  { %4434 = vadd.xlane.f32.xlu0 %v4433_v22  ;;  %v4442_v63 = vsel %vm96_vm0, %v4432_v14, 0.0 }
0x1120   :  { %v4436_v24 = vsel %vm96_vm0, %v4430_v20, 0.0 }
0x1121   :  { %4437 = vadd.xlane.f32.xlu1 %v4436_v24 }
0x1123   :  { %4440 = vadd.xlane.f32.xlu0 %v4439_v47 }
0x1127   :  { %4443 = vadd.xlane.f32.xlu0 %v4442_v63 }
0x11ac   :  { %v4435_v44 = vpop.xlane.xlu0 %4434 }
0x11ad   :  { %v4445_v43 = vmul.f32 0.03125, %v4435_v44 }
0x11ae   :  { %v4438_v25 = vpop.xlane.xlu1 %4437 }
0x11af   :  { %v4449_v8 = vsub.f32 %v4429_v42, %v4445_v43  ;;  %v4446_v28 = vmul.f32 0.03125, %v4438_v25 }
0x11b0   :  { %v4441_v7 = vpop.xlane.xlu0 %4440 }
0x11b1   :  { %v4450_v39 = vsub.f32 %v4430_v20, %v4446_v28  ;;  %v4447_v11 = vmul.f32 0.03125, %v4441_v7  ;;  %v4453_v56 = vmul.f32 %v4449_v8, %v4449_v8  ;;  %v8502_v28 = vld [vmem:[%s10709_s4 + $0x38] sm:$0xff]   ;;  %v4506_v7 = vrot.slane %v10031_v36, %v9476_v45 }
0x11b3   :  { %v4451_v18 = vsub.f32 %v4431_v12, %v4447_v11  ;;  %v4457_v53 = vsel %vm96_vm0, %v4453_v56, 0.0  ;;  %v4454_v27 = vmul.f32 %v4450_v39, %v4450_v39 }
0x11b4   :  { %4458 = vadd.xlane.f32.xlu1 %v4457_v53  ;;  %v4444_v30 = vpop.xlane.xlu0 %4443 }
0x11b5   :  { %v4448_v57 = vmul.f32 0.03125, %v4444_v30  ;;  %v4460_v1 = vsel %vm96_vm0, %v4454_v27, 0.0  ;;  %v4455_v38 = vmul.f32 %v4451_v18, %v4451_v18 }
0x11b6   :  { %4461 = vadd.xlane.f32.xlu0 %v4460_v1 }
0x11b7   :  { %v4452_v54 = vsub.f32 %v4432_v14, %v4448_v57  ;;  %v4463_v31 = vsel %vm96_vm0, %v4455_v38, 0.0 }
0x11b8   :  { %4464 = vadd.xlane.f32.xlu1 %v4463_v31 }
0x11b9   :  { %v4456_v62 = vmul.f32 %v4452_v54, %v4452_v54 }
0x11bb   :  { %v4466_v33 = vsel %vm96_vm0, %v4456_v62, 0.0 }
0x11bc   :  { %4467 = vadd.xlane.f32.xlu0 %v4466_v33 }
0x1241   :  { %v4459_v17 = vpop.xlane.xlu1 %4458 }
0x1242   :  { %v4469_v41 = vmul.f32 0.03125, %v4459_v17 }
0x1243   :  { %v4462_v37 = vpop.xlane.xlu0 %4461 }
0x1244   :  { %v4473_v60 = vadd.f32 1e-05, %v4469_v41  ;;  %v4470_v3 = vmul.f32 0.03125, %v4462_v37 }
0x1245   :  { %v4465_v51 = vpop.xlane.xlu1 %4464 }
0x1246   :  { %8657 = vrsqrt.f32 %v4473_v60  ;;  %v4474_v19 = vadd.f32 1e-05, %v4470_v3  ;;  %v4471_v40 = vmul.f32 0.03125, %v4465_v51 }
0x1248   :  { %8659 = vrsqrt.f32 %v4474_v19  ;;  %v4475_v29 = vadd.f32 1e-05, %v4471_v40 }
0x1249   :  { %v4468_v6 = vpop.xlane.xlu0 %4467 }
0x124a   :  { %8661 = vrsqrt.f32 %v4475_v29  ;;  %v4472_v49 = vmul.f32 0.03125, %v4468_v6 }
0x124c   :  { %v4476_v32 = vadd.f32 1e-05, %v4472_v49 }
0x124e   :  { %8663 = vrsqrt.f32 %v4476_v32 }
0x1250   :  { %v8658_v16 = vpop.eup %8657 }
0x1251   :  { %v4481_v59 = vmul.f32 %v8658_v16, %v4449_v8  ;;  %v8501_v8 = vld [vmem:[%s10709_s4 + $0x30] sm:$0xff]  }
0x1252   :  { %v8660_v0 = vpop.eup %8659  ;;  %8051 = vmatprep.subr.bf16.mxu0 %v8501_v8 }
0x1253   :  { %v4482_v46 = vmul.f32 %v8660_v0, %v4450_v39  ;;  %v4489_v5 = vmul.f32 %v4488_v13, %v4481_v59  ;;  %8052 = vmatpush3.bf16.msra.mxu0 %v8501_v8 }
0x1254   :  { %v8662_v42 = vpop.eup %8661  ;;  %8053 = vmatprep.subr.bf16.mxu0 %v8502_v28 }
0x1255   :  { %v4483_v34 = vmul.f32 %v8662_v42, %v4451_v18  ;;  %v4490_v12 = vmul.f32 %v4488_v13, %v4482_v46  ;;  %v4497_v61 = vadd.f32 %v4496_v52, %v4489_v5 }
0x1257   :  { %v4498_v20 = vadd.f32 %v4496_v52, %v4490_v12  ;;  %v4491_v24 = vmul.f32 %v4488_v13, %v4483_v34  ;;  %8054 = vmatpush3.bf16.msra.mxu0 %v8502_v28  ;;  %v8503_v28 = vld [vmem:[%s10706_s1 + $0x20] sm:$0xff]  }
0x1258   :  { %v8664_v22 = vpop.eup %8663  ;;  %8073 = vmatprep.subr.bf16.mxu0 %v8838_v23  ;;  %8059 = vmatprep.subr.bf16.mxu1 %v8503_v28 }
0x1259   :  { %v4484_v14 = vmul.f32 %v8664_v22, %v4452_v54  ;;  %v4501_v47 = vpack.c.bf16 %v4498_v20, %v4497_v61  ;;  %v4499_v44 = vadd.f32 %v4496_v52, %v4491_v24 }
0x125b   :  { %v4492_v63 = vmul.f32 %v4488_v13, %v4484_v14  ;;  %8043 = vmatprep.mubr.msk.bf16.mxu1 %vm96_vm0, %v4501_v47 }
0x125d   :  { %v4500_v43 = vadd.f32 %v4496_v52, %v4492_v63 }
0x125f   :  { %v4502_v25 = vpack.c.bf16 %v4500_v43, %v4499_v44 }
0x1261   :  { %8044 = vmatmul.mubr.msk.bf16.vlgmr.msra.gmra.mrb[136].mxu1 %vm96_vm0, %v4502_v25 }
0x1262   :  { %8060 = vmatpush3.bf16.msra.mxu1 %v8503_v28 }
0x1334   :  { %v8045_v39 = vpop.f32.mrb[136].mxu1 }
0x1335   :  { %v4568_v11 = vadd.f32 %v8045_v39, %v4506_v7  ;;  %v4559_v56 = vpop.f32.mrb[137].mxu1 }
0x1336   :  { %v4560_v18 = vadd.f32 %v4559_v56, %v4506_v7  ;;  %v8046_v53 = vpop.f32.mrb[138].mxu1 }
0x1337   :  { %v4571_v27 = vadd.f32 %v8046_v53, %v4506_v7  ;;  %v4562_v30 = vpop.f32.mrb[139].mxu1  ;;  %v4576_v1 = vmax.f32 %v4568_v11, 0.0 }
0x1338   :  { %v4563_v57 = vadd.f32 %v4562_v30, %v4506_v7  ;;  %v4574_v54 = vmax.f32 %v4560_v18, 0.0  ;;  %v8504_v7 = vld [vmem:[%s10706_s1 + $0x28] sm:$0xff]  }
0x1339   :  { %v4577_v38 = vmax.f32 %v4571_v27, 0.0  ;;  %8061 = vmatprep.subr.bf16.mxu1 %v8504_v7 }
0x133a   :  { %v4575_v31 = vmax.f32 %v4563_v57, 0.0  ;;  %8062 = vmatpush3.bf16.msra.mxu1 %v8504_v7 }
0x133b   :  { %v4579_v62 = vpack.c.bf16 %v4577_v38, %v4576_v1  ;;  %8067 = vmatprep.subr.bf16.mxu1 %v8838_v23 }
0x133c   :  { %v4578_v33 = vpack.c.bf16 %v4575_v31, %v4574_v54 }
0x133e   :  { %8055 = vmatprep.mubr.msk.bf16.mxu0 %vm2269_vm6, %v4578_v33 }
0x133f   :  { %8056 = vmatmul.mubr.msk.bf16.vlgmr.msra.gmra.mrb[144].mxu0 %vm2269_vm6, %v4579_v62  ;;  %v4722_v62 = vrot.slane %v10031_v36, %v9505_v58 }
0x1340   :  { %8075 = vmatprep.mubr.msk.bf16.mxu0 %vm8839_vm1, %v8838_v23 }
0x1412   :  { %v8057_v2 = vpop.f32.mrb[144].mxu0 }
0x1413   :  { %v4648_v50 = vpop.f32.mrb[145].mxu0  ;;  %v4657_v15 = vadd.f32 %v8057_v2, %v4583_v4 }
0x1414   :  { %v4649_v17 = vadd.f32 %v4648_v50, %v4583_v4  ;;  %v8058_v41 = vpop.f32.mrb[146].mxu0 }
0x1415   :  { %v4651_v37 = vpop.f32.mrb[147].mxu0  ;;  %v4660_v3 = vadd.f32 %v8058_v41, %v4583_v4  ;;  %v4665_v19 = vadd.f32 %v4657_v15, %v4499_v44 }
0x1416   :  { %v4663_v60 = vadd.f32 %v4649_v17, %v4497_v61  ;;  %v4652_v51 = vadd.f32 %v4651_v37, %v4583_v4  ;;  %v4730_v17 = vrot.slane %v10031_v36, %v9510_v21 }
0x1417   :  { %v4666_v6 = vadd.f32 %v4660_v3, %v4500_v43  ;;  %v4673_v32 = vsel %vm96_vm0, %v4665_v19, 0.0 }
0x1418   :  { %v4664_v40 = vadd.f32 %v4652_v51, %v4498_v20  ;;  %v4667_v29 = vsel %vm96_vm0, %v4663_v60, 0.0 }
0x1419   :  { %4668 = vadd.xlane.f32.xlu1 %v4667_v29  ;;  %v4676_v13 = vsel %vm96_vm0, %v4666_v6, 0.0 }
0x141a   :  { %v4670_v49 = vsel %vm96_vm0, %v4664_v40, 0.0 }
0x141b   :  { %4671 = vadd.xlane.f32.xlu0 %v4670_v49 }
0x141d   :  { %4674 = vadd.xlane.f32.xlu1 %v4673_v32 }
0x141f   :  { %4677 = vadd.xlane.f32.xlu0 %v4676_v13 }
0x14a6   :  { %v4669_v16 = vpop.xlane.xlu1 %4668 }
0x14a7   :  { %v4679_v59 = vmul.f32 0.03125, %v4669_v16  ;;  %v4760_v16 = vld [vmem:[#allocation5 + $0x10] sm:$0xff] }
0x14a8   :  { %v4672_v0 = vpop.xlane.xlu0 %4671 }
0x14a9   :  { %v4683_v46 = vsub.f32 %v4663_v60, %v4679_v59  ;;  %v4680_v5 = vmul.f32 0.03125, %v4672_v0  ;;  %v4766_v59 = vrot.slane %v4760_v16, %v8920_v10 }
0x14aa   :  { %v4675_v52 = vpop.xlane.xlu1 %4674 }
0x14ab   :  { %v4684_v42 = vsub.f32 %v4664_v40, %v4680_v5  ;;  %v4681_v34 = vmul.f32 0.03125, %v4675_v52  ;;  %v4687_v12 = vmul.f32 %v4683_v46, %v4683_v46 }
0x14ac   :  { %v4678_v61 = vpop.xlane.xlu0 %4677 }
0x14ad   :  { %v4685_v20 = vsub.f32 %v4665_v19, %v4681_v34  ;;  %v4682_v22 = vmul.f32 0.03125, %v4678_v61  ;;  %v4691_v24 = vsel %vm96_vm0, %v4687_v12, 0.0  ;;  %v4688_v14 = vmul.f32 %v4684_v42, %v4684_v42 }
0x14ae   :  { %4692 = vadd.xlane.f32.xlu1 %v4691_v24 }
0x14af   :  { %v4686_v47 = vsub.f32 %v4666_v6, %v4682_v22  ;;  %v4694_v63 = vsel %vm96_vm0, %v4688_v14, 0.0  ;;  %v4689_v44 = vmul.f32 %v4685_v20, %v4685_v20 }
0x14b0   :  { %4695 = vadd.xlane.f32.xlu0 %v4694_v63 }
0x14b1   :  { %v4697_v43 = vsel %vm96_vm0, %v4689_v44, 0.0  ;;  %v4690_v25 = vmul.f32 %v4686_v47, %v4686_v47 }
0x14b2   :  { %4698 = vadd.xlane.f32.xlu1 %v4697_v43 }
0x14b3   :  { %v4700_v8 = vsel %vm96_vm0, %v4690_v25, 0.0 }
0x14b4   :  { %4701 = vadd.xlane.f32.xlu0 %v4700_v8 }
0x153b   :  { %v4693_v39 = vpop.xlane.xlu1 %4692 }
0x153c   :  { %v4703_v11 = vmul.f32 0.03125, %v4693_v39 }
0x153d   :  { %v4696_v56 = vpop.xlane.xlu0 %4695 }
0x153e   :  { %v4707_v18 = vadd.f32 1e-05, %v4703_v11  ;;  %v4704_v53 = vmul.f32 0.03125, %v4696_v56 }
0x153f   :  { %v4699_v27 = vpop.xlane.xlu1 %4698 }
0x1540   :  { %8665 = vrsqrt.f32 %v4707_v18  ;;  %v4708_v30 = vadd.f32 1e-05, %v4704_v53  ;;  %v4705_v57 = vmul.f32 0.03125, %v4699_v27 }
0x1541   :  { %v4702_v1 = vpop.xlane.xlu0 %4701 }
0x1542   :  { %8667 = vrsqrt.f32 %v4708_v30  ;;  %v4709_v38 = vadd.f32 1e-05, %v4705_v57  ;;  %v4706_v54 = vmul.f32 0.03125, %v4702_v1 }
0x1544   :  { %8669 = vrsqrt.f32 %v4709_v38  ;;  %v4710_v31 = vadd.f32 1e-05, %v4706_v54 }
0x1546   :  { %8671 = vrsqrt.f32 %v4710_v31 }
0x154a   :  { %v8666_v33 = vpop.eup %8665 }
0x154b   :  { %v4715_v4 = vmul.f32 %v8666_v33, %v4683_v46 }
0x154c   :  { %v8668_v2 = vpop.eup %8667 }
0x154d   :  { %v4716_v50 = vmul.f32 %v8668_v2, %v4684_v42  ;;  %v4723_v15 = vmul.f32 %v4722_v62, %v4715_v4 }
0x154e   :  { %v8670_v41 = vpop.eup %8669 }
0x154f   :  { %v4717_v37 = vmul.f32 %v8670_v41, %v4685_v20  ;;  %v4724_v60 = vmul.f32 %v4722_v62, %v4716_v50  ;;  %v10099_v40 = vadd.f32 %v4730_v17, %v4723_v15 }
0x1550   :  { %v8672_v3 = vpop.eup %8671 }
0x1551   :  { %v4725_v51 = vmul.f32 %v4722_v62, %v4717_v37  ;;  %v4718_v19 = vmul.f32 %v8672_v3, %v4686_v47  ;;  %v10101_v29 = vadd.f32 %v4730_v17, %v4724_v60 }
0x1553   :  { %v4726_v6 = vmul.f32 %v4722_v62, %v4718_v19  ;;  %v4761_v49 = vpack.c.bf16 %v10101_v29, %v10099_v40  ;;  %v10106_v32 = vadd.f32 %v4730_v17, %v4725_v51 }
0x1555   :  { %8063 = vmatprep.mubr.msk.bf16.mxu1 %vm96_vm0, %v4761_v49  ;;  %v10108_v13 = vadd.f32 %v4730_v17, %v4726_v6 }
0x1557   :  { %v4762_v36 = vpack.c.bf16 %v10108_v13, %v10106_v32 }
0x1559   :  { %8064 = vmatmul.mubr.msk.bf16.vlgmr.msra.gmra.mrb[140].mxu1 %vm96_vm0, %v4762_v36 }
0x155a   :  { %8069 = vmatprep.mubr.msk.bf16.mxu1 %vm8839_vm1, %v8838_v23 }
0x162c   :  { %v8065_v0 = vpop.f32.mrb[140].mxu1 }
0x162d   :  { %v4819_v46 = vpop.f32.mrb[141].mxu1  ;;  %v4828_v52 = vadd.f32 %v8065_v0, %v4766_v59 }
0x162e   :  { %v8066_v5 = vpop.f32.mrb[142].mxu1  ;;  %v4820_v12 = vadd.f32 %v4819_v46, %v4766_v59 }
0x162f   :  { %v4831_v42 = vadd.f32 %v8066_v5, %v4766_v59  ;;  %v4822_v34 = vpop.f32.mrb[143].mxu1  ;;  %v10125_v10 = vpack.c.bf16 %v4828_v52, %v4828_v52 }
0x1630   :  { %v4823_v61 = vadd.f32 %v4822_v34, %v4766_v59  ;;  %v10120_v24 = vpack.c.bf16 %v4820_v12, %v4820_v12 }
0x1631   :  { %v8428_v20 = vpack.i.bf16 %v4831_v42, %v4828_v52  ;;  %v10134_v47 = vpack.c.bf16 %v4831_v42, %v4831_v42 }
0x1632   :  { %v8423_v22 = vpack.i.bf16 %v4823_v61, %v4820_v12  ;;  %v10130_v14 = vpack.c.bf16 %v4823_v61, %v4823_v61 }
0x1633   :  { %8429 = vrot.lane.b32.xlu0 %v8428_v20, %s8837_s26 }
0x1634   :  { %8424 = vrot.lane.b32.xlu1 %v8423_v22, %s8837_s26 }
0x1637   :  { %8444 = vrot.lane.b32.xlu0 %v8423_v22, %s8840_s27 }
0x1638   :  { %8434 = vrot.lane.b32.xlu1 %v8423_v22, %s8836_s5 }
0x163b   :  { %4891 = vrot.lane.b32.xlu0 %v10120_v24, %s8841_s28 }
0x163c   :  { %8439 = vrot.lane.b32.xlu1 %v8428_v20, %s8836_s5 }
0x163f   :  { %4989 = vrot.lane.b32.xlu0 %v10125_v10, %s8841_s28 }
0x1640   :  { %8449 = vrot.lane.b32.xlu1 %v8428_v20, %s8840_s27 }
0x1644   :  { %4940 = vrot.lane.b32.xlu1 %v10130_v14, %s8841_s28 }
0x1648   :  { %5038 = vrot.lane.b32.xlu1 %v10134_v47, %s8841_s28 }
0x16a5   :  { %v8430_v63 = vpop.permute.xlu0 %8429 }
0x16a6   :  { %v8425_v44 = vpop.permute.xlu1 %8424  ;;  %v8432_v8 = vunpack.i.h.bf16 %v8430_v63  ;;  %v8431_v28 = vunpack.i.l.bf16 %v8430_v63 }
0x16a7   :  { %v8427_v43 = vunpack.i.h.bf16 %v8425_v44  ;;  %v8426_v25 = vunpack.i.l.bf16 %v8425_v44 }
0x16a8   :  { %v10146_v18 = vpack.c.bf16 %v8432_v8, %v8432_v8  ;;  %v10148_v53 = vpack.c.bf16 %v8431_v28, %v8431_v28 }
0x16a9   :  { %v10138_v7 = vpack.c.bf16 %v8427_v43, %v8427_v43  ;;  %v10140_v39 = vpack.c.bf16 %v8426_v25, %v8426_v25  ;;  %v8445_v11 = vpop.permute.xlu0 %8444 }
0x16aa   :  { %v8435_v56 = vpop.permute.xlu1 %8434  ;;  %v8447_v50 = vunpack.i.h.bf16 %v8445_v11  ;;  %v8446_v17 = vunpack.i.l.bf16 %v8445_v11 }
0x16ab   :  { %5136 = vrot.lane.b32.xlu1 %v10138_v7, %s8841_s28  ;;  %5087 = vrot.lane.b32.xlu0 %v10140_v39, %s8841_s28  ;;  %v8437_v27 = vunpack.i.h.bf16 %v8435_v56  ;;  %v8436_v30 = vunpack.i.l.bf16 %v8435_v56 }
0x16ac   :  { %v10176_v51 = vpack.c.bf16 %v8447_v50, %v8447_v50  ;;  %v10180_v6 = vpack.c.bf16 %v8446_v17, %v8446_v17 }
0x16ad   :  { %v4892_v57 = vpop.permute.xlu0 %4891  ;;  %v10155_v54 = vpack.c.bf16 %v8437_v27, %v8437_v27  ;;  %v10157_v31 = vpack.c.bf16 %v8436_v30, %v8436_v30 }
0x16ae   :  { %v4897_v1 = vsel %vm211_vm2, %v4892_v57, 0  ;;  %v8440_v38 = vpop.permute.xlu1 %8439 }
0x16af   :  { %5234 = vrot.lane.b32.xlu1 %v10146_v18, %s8841_s28  ;;  %5185 = vrot.lane.b32.xlu0 %v10148_v53, %s8841_s28  ;;  %v8442_v62 = vunpack.i.h.bf16 %v8440_v38  ;;  %v8441_v33 = vunpack.i.l.bf16 %v8440_v38 }
0x16b0   :  { %8068 = vmatpush3.bf16.xpose.msra.mxu1 %v4897_v1 }
0x16b1   :  { %8079 = vmatprep.subr.bf16.mxu1 %v8838_v23  ;;  %v4990_v2 = vpop.permute.xlu0 %4989  ;;  %v10164_v15 = vpack.c.bf16 %v8442_v62, %v8442_v62  ;;  %v10166_v41 = vpack.c.bf16 %v8441_v33, %v8441_v33 }
0x16b2   :  { %v8450_v4 = vpop.permute.xlu1 %8449  ;;  %v4995_v60 = vsel %vm211_vm2, %v4990_v2, 0 }
0x16b3   :  { %5332 = vrot.lane.b32.xlu1 %v10155_v54, %s8841_s28  ;;  %5283 = vrot.lane.b32.xlu0 %v10157_v31, %s8841_s28  ;;  %v8452_v19 = vunpack.i.h.bf16 %v8450_v4  ;;  %v8451_v49 = vunpack.i.l.bf16 %v8450_v4 }
0x16b5   :  { %v10188_v36 = vpack.c.bf16 %v8452_v19, %v8452_v19  ;;  %v10190_v59 = vpack.c.bf16 %v8451_v49, %v8451_v49 }
0x16b6   :  { %v4941_v37 = vpop.permute.xlu1 %4940 }
0x16b7   :  { %v4946_v3 = vsel %vm211_vm2, %v4941_v37, 0  ;;  %8070 = vmatmul.mubr.msk.bf16.vlgmr.msra.gmra.mrb[144].mxu1 %vm211_vm2, %v10120_v24  ;;  %5430 = vrot.lane.b32.xlu1 %v10164_v15, %s8841_s28 }
0x16b8   :  { %5381 = vrot.lane.b32.xlu0 %v10166_v41, %s8841_s28  ;;  %8080 = vmatpush3.bf16.xpose.msra.mxu1 %v4995_v60 }
0x16b9   :  { %8074 = vmatpush3.bf16.xpose.msra.mxu0 %v4946_v3  ;;  %8081 = vmatprep.mubr.msk.bf16.mxu1 %vm8839_vm1, %v8838_v23 }
0x16ba   :  { %8085 = vmatprep.subr.bf16.mxu0 %v8838_v23  ;;  %8091 = vmatprep.subr.bf16.mxu1 %v8838_v23  ;;  %v5039_v16 = vpop.permute.xlu1 %5038 }
0x16bb   :  { %5528 = vrot.lane.b32.xlu1 %v10176_v51, %s8841_s28  ;;  %v5044_v0 = vsel %vm211_vm2, %v5039_v16, 0 }
0x16bc   :  { %5479 = vrot.lane.b32.xlu0 %v10180_v6, %s8841_s28 }
0x16bf   :  { %8082 = vmatmul.mubr.msk.bf16.vlgmr.msra.gmra.mrb[148].mxu1 %vm211_vm2, %v10125_v10  ;;  %5626 = vrot.lane.b32.xlu1 %v10188_v36, %s8841_s28 }
0x16c0   :  { %8076 = vmatmul.mubr.msk.bf16.vlgmr.msra.gmra.mrb[148].mxu0 %vm211_vm2, %v10130_v14  ;;  %5577 = vrot.lane.b32.xlu0 %v10190_v59, %s8841_s28 }
0x16c1   :  { %8086 = vmatpush3.bf16.xpose.msra.mxu0 %v5044_v0  ;;  %8087 = vmatprep.mubr.msk.bf16.mxu0 %vm8839_vm1, %v8838_v23 }
0x16c2   :  { %8097 = vmatprep.subr.bf16.mxu0 %v8838_v23  ;;  %8093 = vmatprep.mubr.msk.bf16.mxu1 %vm8839_vm1, %v8838_v23 }
0x16c3   :  { %5866 = vrot.lane.b32.xlu1 %v10120_v24, %s8842_s29 }
0x16c4   :  { %5914 = vrot.lane.b32.xlu0 %v10130_v14, %s8842_s29 }
0x16c7   :  { %5962 = vrot.lane.b32.xlu1 %v10125_v10, %s8842_s29 }
0x16c8   :  { %8088 = vmatmul.mubr.msk.bf16.vlgmr.msra.gmra.mrb[152].mxu0 %vm211_vm2, %v10134_v47  ;;  %6010 = vrot.lane.b32.xlu0 %v10134_v47, %s8842_s29 }
0x16c9   :  { %8099 = vmatprep.mubr.msk.bf16.mxu0 %vm8839_vm1, %v8838_v23 }
0x16cb   :  { %6058 = vrot.lane.b32.xlu1 %v10140_v39, %s8842_s29 }
0x16cc   :  { %6202 = vrot.lane.b32.xlu0 %v10146_v18, %s8842_s29 }
0x16cf   :  { %6154 = vrot.lane.b32.xlu1 %v10148_v53, %s8842_s29 }
0x16d0   :  { %6106 = vrot.lane.b32.xlu0 %v10138_v7, %s8842_s29 }
0x16d3   :  { %6250 = vrot.lane.b32.xlu1 %v10157_v31, %s8842_s29 }
0x171d   :  { %v5137_v46 = vpop.permute.xlu1 %5136  ;;  %v5088_v5 = vpop.permute.xlu0 %5087 }
0x171e   :  { %v5142_v52 = vsel %vm211_vm2, %v5137_v46, 0  ;;  %v5093_v42 = vsel %vm211_vm2, %v5088_v5, 0 }
0x171f   :  { %8092 = vmatpush3.bf16.xpose.msra.mxu1 %v5093_v42  ;;  %8098 = vmatpush3.bf16.xpose.msra.mxu0 %v5142_v52 }
0x1720   :  { %8103 = vmatprep.subr.bf16.mxu1 %v8838_v23  ;;  %8109 = vmatprep.subr.bf16.mxu0 %v8838_v23 }
0x1721   :  { %v5235_v34 = vpop.permute.xlu1 %5234  ;;  %v5186_v12 = vpop.permute.xlu0 %5185 }
0x1722   :  { %v5240_v61 = vsel %vm211_vm2, %v5235_v34, 0  ;;  %v5191_v20 = vsel %vm211_vm2, %v5186_v12, 0 }
0x1725   :  { %v5333_v22 = vpop.permute.xlu1 %5332  ;;  %v5284_v24 = vpop.permute.xlu0 %5283 }
0x1726   :  { %8094 = vmatmul.mubr.msk.bf16.vlgmr.msra.gmra.mrb[152].mxu1 %vm211_vm2, %v10140_v39  ;;  %8100 = vmatmul.mubr.msk.bf16.vlgmr.msra.gmra.mrb[156].mxu0 %vm211_vm2, %v10138_v7  ;;  %v5338_v10 = vsel %vm211_vm2, %v5333_v22, 0  ;;  %v5289_v14 = vsel %vm211_vm2, %v5284_v24, 0 }
0x1727   :  { %8104 = vmatpush3.bf16.xpose.msra.mxu1 %v5191_v20  ;;  %8110 = vmatpush3.bf16.xpose.msra.mxu0 %v5240_v61 }
0x1728   :  { %8111 = vmatprep.mubr.msk.bf16.mxu0 %vm8839_vm1, %v8838_v23  ;;  %8105 = vmatprep.mubr.msk.bf16.mxu1 %vm8839_vm1, %v8838_v23 }
0x1729   :  { %8115 = vmatprep.subr.bf16.mxu1 %v8838_v23  ;;  %8121 = vmatprep.subr.bf16.mxu0 %v8838_v23  ;;  %v5431_v47 = vpop.permute.xlu1 %5430 }
0x172a   :  { %v5382_v63 = vpop.permute.xlu0 %5381  ;;  %v5436_v44 = vsel %vm211_vm2, %v5431_v47, 0 }
0x172b   :  { %v5387_v43 = vsel %vm211_vm2, %v5382_v63, 0 }
0x172d   :  { %v5529_v25 = vpop.permute.xlu1 %5528 }
0x172e   :  { %8106 = vmatmul.mubr.msk.bf16.vlgmr.msra.gmra.mrb[156].mxu1 %vm211_vm2, %v10148_v53  ;;  %8112 = vmatmul.mubr.msk.bf16.vlgmr.msra.gmra.mrb[160].mxu0 %vm211_vm2, %v10146_v18  ;;  %v5480_v8 = vpop.permute.xlu0 %5479  ;;  %v5534_v28 = vsel %vm211_vm2, %v5529_v25, 0 }
0x172f   :  { %8116 = vmatpush3.bf16.xpose.msra.mxu1 %v5289_v14  ;;  %8122 = vmatpush3.bf16.xpose.msra.mxu0 %v5338_v10  ;;  %v5485_v7 = vsel %vm211_vm2, %v5480_v8, 0 }
0x1730   :  { %8123 = vmatprep.mubr.msk.bf16.mxu0 %vm8839_vm1, %v8838_v23  ;;  %8117 = vmatprep.mubr.msk.bf16.mxu1 %vm8839_vm1, %v8838_v23 }
0x1731   :  { %8127 = vmatprep.subr.bf16.mxu1 %v8838_v23  ;;  %8133 = vmatprep.subr.bf16.mxu0 %v8838_v23  ;;  %v5627_v39 = vpop.permute.xlu1 %5626 }
0x1732   :  { %v5578_v11 = vpop.permute.xlu0 %5577  ;;  %v5632_v56 = vsel %vm211_vm2, %v5627_v39, 0 }
0x1733   :  { %v5583_v18 = vsel %vm211_vm2, %v5578_v11, 0 }
0x1735   :  { %v5867_v53 = vpop.permute.xlu1 %5866 }
0x1736   :  { %8118 = vmatmul.mubr.msk.bf16.vlgmr.msra.gmra.mrb[160].mxu1 %vm211_vm2, %v10157_v31  ;;  %8124 = vmatmul.mubr.msk.bf16.vlgmr.msra.gmra.mrb[164].mxu0 %vm211_vm2, %v10155_v54  ;;  %v5915_v27 = vpop.permute.xlu0 %5914  ;;  %v5872_v30 = vsel %vm1190_vm3, %v5867_v53, 0 }
0x1737   :  { %8128 = vmatpush3.bf16.xpose.msra.mxu1 %v5387_v43  ;;  %8134 = vmatpush3.bf16.xpose.msra.mxu0 %v5436_v44  ;;  %v5920_v57 = vsel %vm1190_vm3, %v5915_v27, 0 }
0x1738   :  { %8135 = vmatprep.mubr.msk.bf16.mxu0 %vm8839_vm1, %v8838_v23  ;;  %8129 = vmatprep.mubr.msk.bf16.mxu1 %vm8839_vm1, %v8838_v23 }
0x1739   :  { %8139 = vmatprep.subr.bf16.mxu1 %v8838_v23  ;;  %8145 = vmatprep.subr.bf16.mxu0 %v8838_v23 }
0x173e   :  { %8130 = vmatmul.mubr.msk.bf16.vlgmr.msra.gmra.mrb[164].mxu1 %vm211_vm2, %v10166_v41  ;;  %8136 = vmatmul.mubr.msk.bf16.vlgmr.msra.gmra.mrb[168].mxu0 %vm211_vm2, %v10164_v15 }
0x173f   :  { %8140 = vmatpush3.bf16.xpose.msra.mxu1 %v5485_v7  ;;  %8146 = vmatpush3.bf16.xpose.msra.mxu0 %v5534_v28 }
0x1740   :  { %8147 = vmatprep.mubr.msk.bf16.mxu0 %vm8839_vm1, %v8838_v23  ;;  %8141 = vmatprep.mubr.msk.bf16.mxu1 %vm8839_vm1, %v8838_v23 }
0x1741   :  { %8151 = vmatprep.subr.bf16.mxu1 %v8838_v23  ;;  %8157 = vmatprep.subr.bf16.mxu0 %v8838_v23 }
0x1746   :  { %8142 = vmatmul.mubr.msk.bf16.vlgmr.msra.gmra.mrb[168].mxu1 %vm211_vm2, %v10180_v6  ;;  %8148 = vmatmul.mubr.msk.bf16.vlgmr.msra.gmra.mrb[172].mxu0 %vm211_vm2, %v10176_v51 }
0x1747   :  { %8152 = vmatpush3.bf16.xpose.msra.mxu1 %v5583_v18  ;;  %8158 = vmatpush3.bf16.xpose.msra.mxu0 %v5632_v56 }
0x1748   :  { %8153 = vmatprep.mubr.msk.bf16.mxu1 %vm8839_vm1, %v8838_v23  ;;  %8159 = vmatprep.mubr.msk.bf16.mxu0 %vm8839_vm1, %v8838_v23 }
0x1749   :  { %8163 = vmatprep.subr.bf16.mxu1 %v8838_v23  ;;  %8169 = vmatprep.subr.bf16.mxu0 %v8838_v23 }
0x174e   :  { %8154 = vmatmul.mubr.msk.bf16.vlgmr.msra.gmra.mrb[172].mxu1 %vm211_vm2, %v10190_v59  ;;  %8160 = vmatmul.mubr.msk.bf16.vlgmr.msra.gmra.mrb[176].mxu0 %vm211_vm2, %v10188_v36 }
0x174f   :  { %8164 = vmatpush3.bf16.msra.mxu1 %v5872_v30  ;;  %8170 = vmatpush3.bf16.msra.mxu0 %v5920_v57 }
0x1750   :  { %8171 = vmatprep.mubr.msk.bf16.mxu0 %vm8839_vm1, %v8838_v23  ;;  %8181 = vmatprep.subr.bf16.mxu0 %v8838_v23 }
0x1751   :  { %8165 = vmatprep.mubr.msk.bf16.mxu1 %vm8839_vm1, %v8838_v23  ;;  %8175 = vmatprep.subr.bf16.mxu1 %v8838_v23 }
0x178a   :  { %v10304_v1 = vpop.f32.mrb[144].mxu1 }
0x178b   :  { %v8071_v38 = vpop.f32.mrb[145].mxu1  ;;  %v5674_v31 = vsel %vm211_vm2, %v10304_v1, -inf }
0x178c   :  { %5675 = vmax.xlane.f32.xlu0 %v5674_v31  ;;  %v4936_v62 = vpop.f32.mrb[146].mxu1 }
0x178d   :  { %v8072_v33 = vpop.f32.mrb[147].mxu1 }
0x1792   :  { %v10308_v4 = vpop.f32.mrb[148].mxu1 }
0x1793   :  { %v10310_v2 = vpop.f32.mrb[148].mxu0  ;;  %v8083_v50 = vpop.f32.mrb[149].mxu1  ;;  %v5680_v17 = vsel %vm211_vm2, %v10308_v4, -inf }
0x1794   :  { %v8077_v37 = vpop.f32.mrb[149].mxu0  ;;  %5681 = vmax.xlane.f32.xlu0 %v5680_v17  ;;  %v5034_v60 = vpop.f32.mrb[150].mxu1  ;;  %v5677_v3 = vsel %vm211_vm2, %v10310_v2, -inf }
0x1795   :  { %v4985_v19 = vpop.f32.mrb[150].mxu0  ;;  %5678 = vmax.xlane.f32.xlu1 %v5677_v3  ;;  %v8084_v49 = vpop.f32.mrb[151].mxu1 }
0x1796   :  { %v8078_v16 = vpop.f32.mrb[151].mxu0 }
0x179b   :  { %v10316_v0 = vpop.f32.mrb[152].mxu0 }
0x179c   :  { %v8089_v46 = vpop.f32.mrb[153].mxu0  ;;  %v5683_v5 = vsel %vm211_vm2, %v10316_v0, -inf }
0x179d   :  { %v5083_v52 = vpop.f32.mrb[154].mxu0  ;;  %5684 = vmax.xlane.f32.xlu0 %v5683_v5 }
0x179e   :  { %v8090_v42 = vpop.f32.mrb[155].mxu0 }
0x17f9   :  { %v10320_v34 = vpop.f32.mrb[152].mxu1  ;;  %v10322_v12 = vpop.f32.mrb[156].mxu0 }
0x17fa   :  { %v8095_v61 = vpop.f32.mrb[153].mxu1  ;;  %v8101_v20 = vpop.f32.mrb[157].mxu0  ;;  %v5689_v22 = vsel %vm211_vm2, %v10322_v12, -inf  ;;  %v5686_v24 = vsel %vm211_vm2, %v10320_v34, -inf }
0x17fb   :  { %v5181_v10 = vpop.f32.mrb[158].mxu0  ;;  %5690 = vmax.xlane.f32.xlu0 %v5689_v22  ;;  %5687 = vmax.xlane.f32.xlu1 %v5686_v24  ;;  %v5132_v14 = vpop.f32.mrb[154].mxu1 }
0x17fc   :  { %v8096_v47 = vpop.f32.mrb[155].mxu1  ;;  %v8102_v63 = vpop.f32.mrb[159].mxu0 }
0x1801   :  { %v10328_v44 = vpop.f32.mrb[156].mxu1  ;;  %v10330_v43 = vpop.f32.mrb[160].mxu0 }
0x1802   :  { %v8107_v25 = vpop.f32.mrb[157].mxu1  ;;  %v8113_v8 = vpop.f32.mrb[161].mxu0  ;;  %v5695_v28 = vsel %vm211_vm2, %v10330_v43, -inf  ;;  %v5692_v7 = vsel %vm211_vm2, %v10328_v44, -inf }
0x1803   :  { %v5279_v39 = vpop.f32.mrb[162].mxu0  ;;  %5696 = vmax.xlane.f32.xlu0 %v5695_v28  ;;  %5693 = vmax.xlane.f32.xlu1 %v5692_v7  ;;  %v5230_v11 = vpop.f32.mrb[158].mxu1 }
0x1804   :  { %v8108_v56 = vpop.f32.mrb[159].mxu1  ;;  %v8114_v18 = vpop.f32.mrb[163].mxu0 }
0x1809   :  { %v10336_v53 = vpop.f32.mrb[160].mxu1  ;;  %v10338_v27 = vpop.f32.mrb[164].mxu0 }
0x180a   :  { %v8119_v30 = vpop.f32.mrb[161].mxu1  ;;  %v8125_v57 = vpop.f32.mrb[165].mxu0  ;;  %v5701_v38 = vsel %vm211_vm2, %v10338_v27, -inf  ;;  %v5698_v31 = vsel %vm211_vm2, %v10336_v53, -inf }
0x180b   :  { %v5377_v62 = vpop.f32.mrb[166].mxu0  ;;  %5702 = vmax.xlane.f32.xlu0 %v5701_v38  ;;  %5699 = vmax.xlane.f32.xlu1 %v5698_v31  ;;  %v5328_v33 = vpop.f32.mrb[162].mxu1 }
0x180c   :  { %v8120_v50 = vpop.f32.mrb[163].mxu1  ;;  %v8126_v17 = vpop.f32.mrb[167].mxu0 }
0x180d   :  { %v10368_v62 = vpop.permute.xlu1 %5962  ;;  %v10370_v33 = vpop.permute.xlu0 %6010 }
0x1811   :  { %v10344_v37 = vpop.f32.mrb[164].mxu1  ;;  %v10346_v60 = vpop.f32.mrb[168].mxu0 }
0x1812   :  { %v8131_v3 = vpop.f32.mrb[165].mxu1  ;;  %v8137_v19 = vpop.f32.mrb[169].mxu0  ;;  %v5707_v49 = vsel %vm211_vm2, %v10346_v60, -inf  ;;  %v5704_v16 = vsel %vm211_vm2, %v10344_v37, -inf }
0x1813   :  { %v5475_v46 = vpop.f32.mrb[170].mxu0  ;;  %5708 = vmax.xlane.f32.xlu0 %v5707_v49  ;;  %5705 = vmax.xlane.f32.xlu1 %v5704_v16  ;;  %v5426_v5 = vpop.f32.mrb[166].mxu1 }
0x1814   :  { %v8132_v52 = vpop.f32.mrb[167].mxu1  ;;  %v8138_v42 = vpop.f32.mrb[171].mxu0 }
0x1815   :  { %v10372_v50 = vpop.permute.xlu1 %6058  ;;  %v10374_v17 = vpop.permute.xlu0 %6202 }
0x1819   :  { %v10352_v61 = vpop.f32.mrb[168].mxu1  ;;  %v10354_v20 = vpop.f32.mrb[172].mxu0 }
0x181a   :  { %v8143_v22 = vpop.f32.mrb[169].mxu1  ;;  %v5710_v24 = vsel %vm211_vm2, %v10352_v61, -inf  ;;  %v8149_v10 = vpop.f32.mrb[173].mxu0  ;;  %v5713_v14 = vsel %vm211_vm2, %v10354_v20, -inf }
0x181b   :  { %5711 = vmax.xlane.f32.xlu1 %v5710_v24  ;;  %v5524_v47 = vpop.f32.mrb[170].mxu1  ;;  %v5573_v63 = vpop.f32.mrb[174].mxu0  ;;  %5714 = vmax.xlane.f32.xlu0 %v5713_v14 }
0x181c   :  { %v8144_v25 = vpop.f32.mrb[171].mxu1  ;;  %v8150_v8 = vpop.f32.mrb[175].mxu0 }
0x181d   :  { %v10376_v3 = vpop.permute.xlu1 %6154  ;;  %v10380_v19 = vpop.permute.xlu0 %6106 }
0x1821   :  { %v10360_v28 = vpop.f32.mrb[176].mxu0  ;;  %v10362_v7 = vpop.f32.mrb[172].mxu1 }
0x1822   :  { %v5719_v39 = vsel %vm211_vm2, %v10360_v28, -inf  ;;  %v8155_v11 = vpop.f32.mrb[173].mxu1  ;;  %v8161_v56 = vpop.f32.mrb[177].mxu0  ;;  %v5716_v18 = vsel %vm211_vm2, %v10362_v7, -inf }
0x1823   :  { %5720 = vmax.xlane.f32.xlu0 %v5719_v39  ;;  %v5671_v30 = vpop.f32.mrb[178].mxu0  ;;  %5717 = vmax.xlane.f32.xlu1 %v5716_v18  ;;  %v5622_v57 = vpop.f32.mrb[174].mxu1 }
0x1824   :  { %v8156_v38 = vpop.f32.mrb[175].mxu1  ;;  %v8162_v31 = vpop.f32.mrb[179].mxu0 }
0x1825   :  { %v10386_v49 = vpop.permute.xlu1 %6250  ;;  %v5676_v16 = vpop.xlane.xlu0 %5675 }
0x1829   :  { %v5682_v46 = vpop.xlane.xlu0 %5681  ;;  %v5679_v5 = vpop.xlane.xlu1 %5678 }
0x182a   :  { %v5723_v52 = vsub.f32 %v10310_v2, %v5679_v5 }
0x182c   :  { %v5740_v22 = vmul.f32 1.442695, %v5723_v52 }
0x182d   :  { %v5685_v42 = vpop.xlane.xlu0 %5684 }
0x182e   :  { %v5725_v24 = vsub.f32 %v10316_v0, %v5685_v42  ;;  %8673 = vpow2.f32 %v5740_v22 }
0x1830   :  { %v5744_v10 = vmul.f32 1.442695, %v5725_v24 }
0x1832   :  { %8675 = vpow2.f32 %v5744_v10 }
0x1834   :  { %6346 = vrot.lane.b32.xlu1 %v10166_v41, %s8842_s29  ;;  %v5722_v41 = vsub.f32 %v10304_v1, %v5676_v16 }
0x1836   :  { %v5738_v14 = vmul.f32 1.442695, %v5722_v41 }
0x1838   :  { %6394 = vrot.lane.b32.xlu1 %v10164_v15, %s8842_s29  ;;  %v5724_v15 = vsub.f32 %v10308_v4, %v5682_v46  ;;  %8677 = vpow2.f32 %v5738_v14  ;;  %v10392_v47 = vpop.eup %8673 }
0x1839   :  { %6298 = vrot.lane.b32.xlu0 %v10155_v54, %s8842_s29  ;;  %v5773_v2 = vsel %vm211_vm2, %v10392_v47, 0.0 }
0x183a   :  { %v5742_v54 = vmul.f32 1.442695, %v5724_v15 }
0x183c   :  { %8679 = vpow2.f32 %v5742_v54  ;;  %v10396_v63 = vpop.eup %8675 }
0x183d   :  { %v5779_v1 = vsel %vm211_vm2, %v10396_v63, 0.0 }
0x1842   :  { %v10398_v0 = vpop.eup %8677 }
0x1843   :  { %v5770_v4 = vsel %vm211_vm2, %v10398_v0, 0.0 }
0x1846   :  { %v10404_v25 = vpop.eup %8679 }
0x1847   :  { %v5776_v8 = vsel %vm211_vm2, %v10404_v25, 0.0 }
0x1858   :  { %5774 = vadd.xlane.f32.xlu0 %v5773_v2 }
0x185c   :  { %5780 = vadd.xlane.f32.xlu0 %v5779_v1  ;;  %5771 = vadd.xlane.f32.xlu1 %v5770_v4 }
0x1860   :  { %5777 = vadd.xlane.f32.xlu1 %v5776_v8 }
0x1888   :  { %v5688_v39 = vpop.xlane.xlu1 %5687  ;;  %v5691_v11 = vpop.xlane.xlu0 %5690 }
0x1889   :  { %v5726_v56 = vsub.f32 %v10320_v34, %v5688_v39  ;;  %v5727_v18 = vsub.f32 %v10322_v12, %v5691_v11 }
0x188b   :  { %v5746_v30 = vmul.f32 1.442695, %v5726_v56  ;;  %v5748_v57 = vmul.f32 1.442695, %v5727_v18 }
0x188d   :  { %8681 = vpow2.f32 %v5746_v30 }
0x188e   :  { %8683 = vpow2.f32 %v5748_v57 }
0x1890   :  { %v5694_v38 = vpop.xlane.xlu1 %5693  ;;  %v5697_v31 = vpop.xlane.xlu0 %5696 }
0x1891   :  { %v5728_v16 = vsub.f32 %v10328_v44, %v5694_v38  ;;  %v5729_v46 = vsub.f32 %v10330_v43, %v5697_v31 }
0x1893   :  { %v5750_v5 = vmul.f32 1.442695, %v5728_v16  ;;  %v5752_v52 = vmul.f32 1.442695, %v5729_v46 }
0x1895   :  { %8685 = vpow2.f32 %v5750_v5 }
0x1896   :  { %8687 = vpow2.f32 %v5752_v52 }
0x1897   :  { %v10412_v42 = vpop.eup %8681 }
0x1898   :  { %v10414_v22 = vpop.eup %8683  ;;  %v5700_v34 = vpop.xlane.xlu1 %5699  ;;  %v5782_v24 = vsel %vm211_vm2, %v10412_v42, 0.0 }
0x1899   :  { %v5703_v12 = vpop.xlane.xlu0 %5702  ;;  %v5730_v41 = vsub.f32 %v10336_v53, %v5700_v34  ;;  %5783 = vadd.xlane.f32.xlu1 %v5782_v24  ;;  %v5785_v44 = vsel %vm211_vm2, %v10414_v22, 0.0 }
0x189a   :  { %v5731_v10 = vsub.f32 %v10338_v27, %v5703_v12  ;;  %5786 = vadd.xlane.f32.xlu0 %v5785_v44 }
0x189b   :  { %v5754_v43 = vmul.f32 1.442695, %v5730_v41 }
0x189c   :  { %v5756_v14 = vmul.f32 1.442695, %v5731_v10 }
0x189d   :  { %8689 = vpow2.f32 %v5754_v43 }
0x189e   :  { %8691 = vpow2.f32 %v5756_v14 }
0x189f   :  { %v10422_v15 = vpop.eup %8685 }
0x18a0   :  { %v10424_v54 = vpop.eup %8687  ;;  %v5706_v2 = vpop.xlane.xlu1 %5705  ;;  %v5788_v53 = vsel %vm211_vm2, %v10422_v15, 0.0 }
0x18a1   :  { %v5709_v1 = vpop.xlane.xlu0 %5708  ;;  %v5732_v27 = vsub.f32 %v10344_v37, %v5706_v2  ;;  %5789 = vadd.xlane.f32.xlu1 %v5788_v53  ;;  %v5791_v8 = vsel %vm211_vm2, %v10424_v54, 0.0 }
0x18a2   :  { %v5733_v4 = vsub.f32 %v10346_v60, %v5709_v1  ;;  %5792 = vadd.xlane.f32.xlu0 %v5791_v8 }
0x18a3   :  { %v5758_v39 = vmul.f32 1.442695, %v5732_v27 }
0x18a4   :  { %v5760_v11 = vmul.f32 1.442695, %v5733_v4 }
0x18a5   :  { %8693 = vpow2.f32 %v5758_v39 }
0x18a6   :  { %8695 = vpow2.f32 %v5760_v11 }
0x18a7   :  { %v10432_v56 = vpop.eup %8689 }
0x18a8   :  { %v10434_v18 = vpop.eup %8691  ;;  %v5794_v30 = vsel %vm211_vm2, %v10432_v56, 0.0  ;;  %v5712_v16 = vpop.xlane.xlu1 %5711 }
0x18a9   :  { %5795 = vadd.xlane.f32.xlu1 %v5794_v30  ;;  %v5797_v37 = vsel %vm211_vm2, %v10434_v18, 0.0  ;;  %v5715_v46 = vpop.xlane.xlu0 %5714  ;;  %v5734_v5 = vsub.f32 %v10352_v61, %v5712_v16 }
0x18aa   :  { %5798 = vadd.xlane.f32.xlu0 %v5797_v37  ;;  %v5735_v52 = vsub.f32 %v10354_v20, %v5715_v46 }
0x18ab   :  { %v5762_v24 = vmul.f32 1.442695, %v5734_v5  ;;  %v6016_v5 = vsel %vm1190_vm3, %v10370_v33, 0 }
0x18ac   :  { %v5764_v10 = vmul.f32 1.442695, %v5735_v52 }
0x18ad   :  { %8697 = vpow2.f32 %v5762_v24  ;;  %v5968_v24 = vsel %vm1190_vm3, %v10368_v62, 0  ;;  %v6064_v62 = vsel %vm1190_vm3, %v10372_v50, 0 }
0x18ae   :  { %8699 = vpow2.f32 %v5764_v10 }
0x18af   :  { %v10440_v60 = vpop.eup %8693 }
0x18b0   :  { %v10442_v57 = vpop.eup %8695  ;;  %v5800_v38 = vsel %vm211_vm2, %v10440_v60, 0.0  ;;  %v5718_v34 = vpop.xlane.xlu1 %5717 }
0x18b1   :  { %5801 = vadd.xlane.f32.xlu1 %v5800_v38  ;;  %v5803_v31 = vsel %vm211_vm2, %v10442_v57, 0.0  ;;  %v5721_v12 = vpop.xlane.xlu0 %5720  ;;  %v5736_v41 = vsub.f32 %v10362_v7, %v5718_v34 }
0x18b2   :  { %5804 = vadd.xlane.f32.xlu0 %v5803_v31  ;;  %v5737_v44 = vsub.f32 %v10360_v28, %v5721_v12 }
0x18b3   :  { %v5766_v43 = vmul.f32 1.442695, %v5736_v41 }
0x18b5   :  { %8701 = vpow2.f32 %v5766_v43  ;;  %v10458_v14 = vpop.permute.xlu0 %6298 }
0x18b7   :  { %v10460_v61 = vpop.eup %8697 }
0x18b8   :  { %v10462_v20 = vpop.eup %8699  ;;  %v5806_v7 = vsel %vm211_vm2, %v10460_v61, 0.0 }
0x18b9   :  { %v5809_v53 = vsel %vm211_vm2, %v10462_v20, 0.0 }
0x18bf   :  { %v10466_v1 = vpop.eup %8701 }
0x18c0   :  { %v5812_v8 = vsel %vm211_vm2, %v10466_v1, 0.0 }
0x18c2   :  { %6490 = vrot.lane.b32.xlu1 %v10176_v51, %s8842_s29  ;;  %v5768_v51 = vmul.f32 1.442695, %v5737_v44 }
0x18c4   :  { %8703 = vpow2.f32 %v5768_v51 }
0x18c8   :  { %6442 = vrot.lane.b32.xlu0 %v10180_v6, %s8842_s29  ;;  %v10456_v6 = vpop.permute.xlu1 %6346 }
0x18cc   :  { %v10468_v28 = vpop.permute.xlu1 %6394 }
0x18ce   :  { %v10472_v27 = vpop.eup %8703 }
0x18cf   :  { %v5815_v11 = vsel %vm211_vm2, %v10472_v27, 0.0 }
0x18e5   :  { %v5775_v2 = vpop.xlane.xlu0 %5774 }
0x18e6   :  { %8705 = vrcp.f32 %v5775_v2  ;;  %5807 = vadd.xlane.f32.xlu1 %v5806_v7  ;;  %v6160_v7 = vsel %vm1190_vm3, %v10376_v3, 0 }
0x18e7   :  { %5810 = vadd.xlane.f32.xlu0 %v5809_v53 }
0x18e9   :  { %v5781_v4 = vpop.xlane.xlu0 %5780  ;;  %v5772_v39 = vpop.xlane.xlu1 %5771 }
0x18ea   :  { %8707 = vrcp.f32 %v5781_v4  ;;  %5813 = vadd.xlane.f32.xlu1 %v5812_v8  ;;  %v6208_v4 = vsel %vm1190_vm3, %v10374_v17, 0 }
0x18eb   :  { %8709 = vrcp.f32 %v5772_v39  ;;  %5816 = vadd.xlane.f32.xlu0 %v5815_v11 }
0x18ed   :  { %v5778_v30 = vpop.xlane.xlu1 %5777 }
0x18ee   :  { %8711 = vrcp.f32 %v5778_v30  ;;  %v6256_v30 = vsel %vm1190_vm3, %v10386_v49, 0 }
0x18f0   :  { %v8706_v37 = vpop.eup %8705 }
0x18f1   :  { %v5835_v38 = vmul.f32 %v8706_v37, %v10392_v47 }
0x18f3   :  { %v5851_v31 = vpack.c.bf16 %v5835_v38, %v5835_v38  ;;  %v6304_v38 = vsel %vm1190_vm3, %v10458_v14, 0 }
0x18f4   :  { %v8708_v16 = vpop.eup %8707 }
0x18f5   :  { %v8710_v46 = vpop.eup %8709  ;;  %8172 = vmatmul.mubr.msk.bf16.vlgmr.msra.gmra.mrb[180].mxu0 %vm211_vm2, %v5851_v31  ;;  %v5837_v34 = vmul.f32 %v8708_v16, %v10396_v63  ;;  %v6112_v63 = vsel %vm1190_vm3, %v10380_v19, 0 }
0x18f6   :  { %v5834_v52 = vmul.f32 %v8710_v46, %v10398_v0  ;;  %8182 = vmatpush3.bf16.msra.mxu0 %v6016_v5  ;;  %8183 = vmatprep.mubr.msk.bf16.mxu0 %vm8839_vm1, %v8838_v23  ;;  %v6352_v5 = vsel %vm1190_vm3, %v10456_v6, 0 }
0x18f7   :  { %8193 = vmatprep.subr.bf16.mxu0 %v8838_v23  ;;  %v5853_v33 = vpack.c.bf16 %v5837_v34, %v5837_v34 }
0x18f8   :  { %v5850_v12 = vpack.c.bf16 %v5834_v52, %v5834_v52  ;;  %v8712_v47 = vpop.eup %8711  ;;  %v6400_v52 = vsel %vm1190_vm3, %v10468_v28, 0 }
0x18f9   :  { %v5836_v0 = vmul.f32 %v8712_v47, %v10404_v25 }
0x18fa   :  { %8166 = vmatmul.mubr.msk.bf16.vlgmr.msra.gmra.mrb[176].mxu1 %vm211_vm2, %v5850_v12 }
0x18fb   :  { %8176 = vmatpush3.bf16.msra.mxu1 %v5968_v24  ;;  %6586 = vrot.lane.b32.xlu1 %v10188_v36, %s8842_s29  ;;  %v5852_v36 = vpack.c.bf16 %v5836_v0, %v5836_v0 }
0x18fc   :  { %8177 = vmatprep.mubr.msk.bf16.mxu1 %vm8839_vm1, %v8838_v23  ;;  %8187 = vmatprep.subr.bf16.mxu1 %v8838_v23 }
0x18fd   :  { %8184 = vmatmul.mubr.msk.bf16.vlgmr.msra.gmra.mrb[184].mxu0 %vm211_vm2, %v5853_v33 }
0x18fe   :  { %8194 = vmatpush3.bf16.msra.mxu0 %v6112_v63  ;;  %8195 = vmatprep.mubr.msk.bf16.mxu0 %vm8839_vm1, %v8838_v23 }
0x18ff   :  { %8205 = vmatprep.subr.bf16.mxu0 %v8838_v23 }
0x1901   :  { %6538 = vrot.lane.b32.xlu0 %v10190_v59, %s8842_s29 }
0x1902   :  { %8178 = vmatmul.mubr.msk.bf16.vlgmr.msra.gmra.mrb[180].mxu1 %vm211_vm2, %v5852_v36 }
0x1903   :  { %8188 = vmatpush3.bf16.msra.mxu1 %v6064_v62  ;;  %8189 = vmatprep.mubr.msk.bf16.mxu1 %vm8839_vm1, %v8838_v23 }
0x1904   :  { %8199 = vmatprep.subr.bf16.mxu1 %v8838_v23 }
0x1926   :  { %v5784_v19 = vpop.xlane.xlu1 %5783 }
0x1927   :  { %8713 = vrcp.f32 %v5784_v19  ;;  %v5787_v25 = vpop.xlane.xlu0 %5786 }
0x1928   :  { %8715 = vrcp.f32 %v5787_v25 }
0x192e   :  { %v5790_v41 = vpop.xlane.xlu1 %5789 }
0x192f   :  { %8717 = vrcp.f32 %v5790_v41  ;;  %v5793_v10 = vpop.xlane.xlu0 %5792 }
0x1930   :  { %8719 = vrcp.f32 %v5793_v10 }
0x1931   :  { %v8714_v59 = vpop.eup %8713 }
0x1932   :  { %v8716_v44 = vpop.eup %8715  ;;  %v5838_v50 = vmul.f32 %v8714_v59, %v10412_v42 }
0x1933   :  { %v5839_v43 = vmul.f32 %v8716_v44, %v10414_v22 }
0x1934   :  { %v5854_v51 = vpack.c.bf16 %v5838_v50, %v5838_v50 }
0x1935   :  { %v5855_v2 = vpack.c.bf16 %v5839_v43, %v5839_v43 }
0x1936   :  { %8190 = vmatmul.mubr.msk.bf16.vlgmr.msra.gmra.mrb[184].mxu1 %vm211_vm2, %v5854_v51  ;;  %v5796_v53 = vpop.xlane.xlu1 %5795 }
0x1937   :  { %8200 = vmatpush3.bf16.msra.mxu1 %v6160_v7  ;;  %8721 = vrcp.f32 %v5796_v53  ;;  %8196 = vmatmul.mubr.msk.bf16.vlgmr.msra.gmra.mrb[188].mxu0 %vm211_vm2, %v5855_v2  ;;  %v5799_v8 = vpop.xlane.xlu0 %5798 }
0x1938   :  { %8206 = vmatpush3.bf16.msra.mxu0 %v6208_v4  ;;  %8723 = vrcp.f32 %v5799_v8  ;;  %8201 = vmatprep.mubr.msk.bf16.mxu1 %vm8839_vm1, %v8838_v23 }
0x1939   :  { %v8718_v42 = vpop.eup %8717  ;;  %8207 = vmatprep.mubr.msk.bf16.mxu0 %vm8839_vm1, %v8838_v23  ;;  %8211 = vmatprep.subr.bf16.mxu1 %v8838_v23 }
0x193a   :  { %v8720_v3 = vpop.eup %8719  ;;  %v5840_v22 = vmul.f32 %v8718_v42, %v10422_v15  ;;  %8217 = vmatprep.subr.bf16.mxu0 %v8838_v23 }
0x193b   :  { %v5841_v17 = vmul.f32 %v8720_v3, %v10424_v54 }
0x193c   :  { %v5856_v39 = vpack.c.bf16 %v5840_v22, %v5840_v22 }
0x193d   :  { %v5857_v11 = vpack.c.bf16 %v5841_v17, %v5841_v17 }
0x193e   :  { %8202 = vmatmul.mubr.msk.bf16.vlgmr.msra.gmra.mrb[188].mxu1 %vm211_vm2, %v5856_v39  ;;  %v5802_v37 = vpop.xlane.xlu1 %5801 }
0x193f   :  { %8212 = vmatpush3.bf16.msra.mxu1 %v6256_v30  ;;  %8725 = vrcp.f32 %v5802_v37  ;;  %8208 = vmatmul.mubr.msk.bf16.vlgmr.msra.gmra.mrb[192].mxu0 %vm211_vm2, %v5857_v11  ;;  %v5805_v15 = vpop.xlane.xlu0 %5804 }
0x1940   :  { %8218 = vmatpush3.bf16.msra.mxu0 %v6304_v38  ;;  %8727 = vrcp.f32 %v5805_v15  ;;  %8213 = vmatprep.mubr.msk.bf16.mxu1 %vm8839_vm1, %v8838_v23 }
0x1941   :  { %v8722_v54 = vpop.eup %8721  ;;  %8219 = vmatprep.mubr.msk.bf16.mxu0 %vm8839_vm1, %v8838_v23  ;;  %8223 = vmatprep.subr.bf16.mxu1 %v8838_v23 }
0x1942   :  { %v8724_v49 = vpop.eup %8723  ;;  %v5842_v31 = vmul.f32 %v8722_v54, %v10432_v56  ;;  %8229 = vmatprep.subr.bf16.mxu0 %v8838_v23  ;;  %v6491_v12 = vpop.permute.xlu1 %6490 }
0x1943   :  { %v5843_v14 = vmul.f32 %v8724_v49, %v10434_v18  ;;  %v6443_v34 = vpop.permute.xlu0 %6442  ;;  %v6496_v0 = vsel %vm1190_vm3, %v6491_v12, 0 }
0x1944   :  { %v5858_v16 = vpack.c.bf16 %v5842_v31, %v5842_v31  ;;  %v6448_v33 = vsel %vm1190_vm3, %v6443_v34, 0 }
0x1945   :  { %v5859_v46 = vpack.c.bf16 %v5843_v14, %v5843_v14 }
0x1946   :  { %8214 = vmatmul.mubr.msk.bf16.vlgmr.msra.gmra.mrb[192].mxu1 %vm211_vm2, %v5858_v16 }
0x1947   :  { %8220 = vmatmul.mubr.msk.bf16.vlgmr.msra.gmra.mrb[196].mxu0 %vm211_vm2, %v5859_v46  ;;  %8224 = vmatpush3.bf16.msra.mxu1 %v6352_v5 }
0x1948   :  { %8230 = vmatpush3.bf16.msra.mxu0 %v6400_v52  ;;  %8225 = vmatprep.mubr.msk.bf16.mxu1 %vm8839_vm1, %v8838_v23 }
0x1949   :  { %v8726_v56 = vpop.eup %8725  ;;  %8231 = vmatprep.mubr.msk.bf16.mxu0 %vm8839_vm1, %v8838_v23  ;;  %8235 = vmatprep.subr.bf16.mxu1 %v8838_v23 }
0x194a   :  { %v8728_v18 = vpop.eup %8727  ;;  %v5844_v6 = vmul.f32 %v8726_v56, %v10440_v60  ;;  %8241 = vmatprep.subr.bf16.mxu0 %v8838_v23 }
0x194b   :  { %v5845_v28 = vmul.f32 %v8728_v18, %v10442_v57 }
0x194c   :  { %v5860_v47 = vpack.c.bf16 %v5844_v6, %v5844_v6 }
0x194d   :  { %v5861_v24 = vpack.c.bf16 %v5845_v28, %v5845_v28 }
0x194e   :  { %8226 = vmatmul.mubr.msk.bf16.vlgmr.msra.gmra.mrb[196].mxu1 %vm211_vm2, %v5860_v47 }
0x194f   :  { %8232 = vmatmul.mubr.msk.bf16.vlgmr.msra.gmra.mrb[200].mxu0 %vm211_vm2, %v5861_v24  ;;  %8236 = vmatpush3.bf16.msra.mxu1 %v6448_v33 }
0x1950   :  { %8242 = vmatpush3.bf16.msra.mxu0 %v6496_v0  ;;  %8237 = vmatprep.mubr.msk.bf16.mxu1 %vm8839_vm1, %v8838_v23 }
0x1951   :  { %8243 = vmatprep.mubr.msk.bf16.mxu0 %vm8839_vm1, %v8838_v23  ;;  %8247 = vmatprep.subr.bf16.mxu1 %v8838_v23 }
0x1952   :  { %8253 = vmatprep.subr.bf16.mxu0 %v8838_v23 }
0x1973   :  { %v5808_v60 = vpop.xlane.xlu1 %5807 }
0x1974   :  { %8729 = vrcp.f32 %v5808_v60  ;;  %v5811_v57 = vpop.xlane.xlu0 %5810 }
0x1975   :  { %8731 = vrcp.f32 %v5811_v57 }
0x1977   :  { %v5814_v63 = vpop.xlane.xlu1 %5813 }
0x1978   :  { %8733 = vrcp.f32 %v5814_v63  ;;  %v5817_v36 = vpop.xlane.xlu0 %5816 }
0x1979   :  { %8735 = vrcp.f32 %v5817_v36 }
0x197b   :  { %v6587_v59 = vpop.permute.xlu1 %6586 }
0x197c   :  { %v6539_v10 = vpop.permute.xlu0 %6538  ;;  %v6592_v7 = vsel %vm1190_vm3, %v6587_v59, 0 }
0x197d   :  { %v6544_v2 = vsel %vm1190_vm3, %v6539_v10, 0 }
0x197e   :  { %v8730_v62 = vpop.eup %8729 }
0x197f   :  { %v8732_v19 = vpop.eup %8731  ;;  %v5846_v25 = vmul.f32 %v8730_v62, %v10460_v61 }
0x1980   :  { %v5847_v41 = vmul.f32 %v8732_v19, %v10462_v20 }
0x1981   :  { %v5862_v44 = vpack.c.bf16 %v5846_v25, %v5846_v25 }
0x1982   :  { %v8734_v50 = vpop.eup %8733  ;;  %v5863_v43 = vpack.c.bf16 %v5847_v41, %v5847_v41 }
0x1983   :  { %v8736_v51 = vpop.eup %8735  ;;  %8238 = vmatmul.mubr.msk.bf16.vlgmr.msra.gmra.mrb[200].mxu1 %vm211_vm2, %v5862_v44  ;;  %v5848_v53 = vmul.f32 %v8734_v50, %v10466_v1 }
0x1984   :  { %8244 = vmatmul.mubr.msk.bf16.vlgmr.msra.gmra.mrb[204].mxu0 %vm211_vm2, %v5863_v43  ;;  %8248 = vmatpush3.bf16.msra.mxu1 %v6544_v2  ;;  %v5849_v61 = vmul.f32 %v8736_v51, %v10472_v27 }
0x1985   :  { %8254 = vmatpush3.bf16.msra.mxu0 %v6592_v7  ;;  %8249 = vmatprep.mubr.msk.bf16.mxu1 %vm8839_vm1, %v8838_v23  ;;  %v5864_v20 = vpack.c.bf16 %v5848_v53, %v5848_v53 }
0x1986   :  { %8255 = vmatprep.mubr.msk.bf16.mxu0 %vm8839_vm1, %v8838_v23  ;;  %v5865_v4 = vpack.c.bf16 %v5849_v61, %v5849_v61 }
0x198b   :  { %8250 = vmatmul.mubr.msk.bf16.vlgmr.msra.gmra.mrb[204].mxu1 %vm211_vm2, %v5864_v20 }
0x198c   :  { %8256 = vmatmul.mubr.msk.bf16.vlgmr.msra.gmra.mrb[208].mxu0 %vm211_vm2, %v5865_v4 }
0x19c8   :  { %v10578_v8 = vpop.f32.mrb[180].mxu0 }
0x19c9   :  { %v8173_v42 = vpop.f32.mrb[181].mxu0 }
0x19ca   :  { %v5959_v3 = vpop.f32.mrb[182].mxu0  ;;  %v8505_v42 = vld [vmem:[%s10707_s2 + $0x20] sm:$0xff]  }
0x19cb   :  { %v8174_v1 = vpop.f32.mrb[183].mxu0  ;;  %8259 = vmatprep.subr.bf16.mxu1 %v8505_v42  ;;  %v8506_v3 = vld [vmem:[%s10707_s2 + $0x28] sm:$0xff]  }
0x19cc   :  { %8260 = vmatpush3.bf16.msra.mxu1 %v8505_v42 }
0x19cd   :  { %v10580_v22 = vpop.f32.mrb[176].mxu1  ;;  %8261 = vmatprep.subr.bf16.mxu1 %v8506_v3 }
0x19ce   :  { %v8167_v17 = vpop.f32.mrb[177].mxu1 }
0x19cf   :  { %v5911_v39 = vpop.f32.mrb[178].mxu1 }
0x19d0   :  { %v8168_v11 = vpop.f32.mrb[179].mxu1  ;;  %v10582_v27 = vpop.f32.mrb[184].mxu0  ;;  %8262 = vmatpush3.bf16.msra.mxu1 %v8506_v3 }
0x19d1   :  { %v8185_v30 = vpop.f32.mrb[185].mxu0 }
0x19d2   :  { %v6055_v23 = vpop.f32.mrb[186].mxu0 }
0x19d3   :  { %v8186_v37 = vpop.f32.mrb[187].mxu0 }
0x19d5   :  { %v10584_v38 = vpop.f32.mrb[180].mxu1 }
0x19d6   :  { %v8179_v15 = vpop.f32.mrb[181].mxu1 }
0x19d7   :  { %v6007_v54 = vpop.f32.mrb[182].mxu1 }
0x19d8   :  { %v8180_v49 = vpop.f32.mrb[183].mxu1 }
0x1a09   :  { %v6100_v31 = vpop.f32.mrb[184].mxu1 }
0x1a0a   :  { %v6148_v14 = vpop.f32.mrb[188].mxu0  ;;  %v8191_v16 = vpop.f32.mrb[185].mxu1 }
0x1a0b   :  { %v8453_v46 = vpack.i.bf16 %v6148_v14, %v6100_v31  ;;  %v8197_v5 = vpop.f32.mrb[189].mxu0  ;;  %v6103_v52 = vpop.f32.mrb[186].mxu1 }
0x1a0c   :  { %v6151_v56 = vpop.f32.mrb[190].mxu0  ;;  %v8192_v18 = vpop.f32.mrb[187].mxu1 }
0x1a0d   :  { %8454 = vrot.lane.b32.xlu0 %v8453_v46, %s8834_s8  ;;  %v8198_v6 = vpop.f32.mrb[191].mxu0 }
0x1a11   :  { %v6196_v28 = vpop.f32.mrb[188].mxu1 }
0x1a12   :  { %v6244_v34 = vpop.f32.mrb[192].mxu0  ;;  %v8203_v12 = vpop.f32.mrb[189].mxu1 }
0x1a13   :  { %v8458_v47 = vpack.i.bf16 %v6244_v34, %v6196_v28  ;;  %v8209_v24 = vpop.f32.mrb[193].mxu0  ;;  %v6199_v33 = vpop.f32.mrb[190].mxu1 }
0x1a14   :  { %v6247_v0 = vpop.f32.mrb[194].mxu0  ;;  %v8204_v60 = vpop.f32.mrb[191].mxu1 }
0x1a15   :  { %8459 = vrot.lane.b32.xlu1 %v8458_v47, %s8834_s8  ;;  %v8210_v57 = vpop.f32.mrb[195].mxu0 }
0x1a19   :  { %v6292_v63 = vpop.f32.mrb[192].mxu1 }
0x1a1a   :  { %v6340_v36 = vpop.f32.mrb[196].mxu0  ;;  %v8215_v62 = vpop.f32.mrb[193].mxu1 }
0x1a1b   :  { %v8463_v19 = vpack.i.bf16 %v6340_v36, %v6292_v63  ;;  %v8221_v25 = vpop.f32.mrb[197].mxu0  ;;  %v6295_v41 = vpop.f32.mrb[194].mxu1 }
0x1a1c   :  { %v6343_v10 = vpop.f32.mrb[198].mxu0  ;;  %v8216_v59 = vpop.f32.mrb[195].mxu1 }
0x1a1d   :  { %8464 = vrot.lane.b32.xlu0 %v8463_v19, %s8843_s30  ;;  %v8222_v44 = vpop.f32.mrb[199].mxu0 }
0x1a21   :  { %v6388_v50 = vpop.f32.mrb[196].mxu1 }
0x1a22   :  { %v6436_v43 = vpop.f32.mrb[200].mxu0  ;;  %v8227_v51 = vpop.f32.mrb[197].mxu1 }
0x1a23   :  { %v8468_v2 = vpack.i.bf16 %v6436_v43, %v6388_v50  ;;  %v8233_v7 = vpop.f32.mrb[201].mxu0  ;;  %v6391_v53 = vpop.f32.mrb[198].mxu1 }
0x1a24   :  { %v6439_v61 = vpop.f32.mrb[202].mxu0  ;;  %v8228_v20 = vpop.f32.mrb[199].mxu1 }
0x1a25   :  { %8469 = vrot.lane.b32.xlu1 %v8468_v2, %s8843_s30  ;;  %v8234_v4 = vpop.f32.mrb[203].mxu0 }
0x1a56   :  { %v6484_v1 = vpop.f32.mrb[200].mxu1 }
0x1a57   :  { %v6532_v17 = vpop.f32.mrb[204].mxu0  ;;  %v8239_v39 = vpop.f32.mrb[201].mxu1 }
0x1a58   :  { %v8473_v11 = vpack.i.bf16 %v6532_v17, %v6484_v1  ;;  %v8245_v30 = vpop.f32.mrb[205].mxu0  ;;  %v6487_v23 = vpop.f32.mrb[202].mxu1  ;;  %v10616_v1 = vld [vmem:[#allocation5 + $0x10] sm:$0xff] }
0x1a59   :  { %v6535_v37 = vpop.f32.mrb[206].mxu0  ;;  %v8240_v15 = vpop.f32.mrb[203].mxu1 }
0x1a5a   :  { %8474 = vrot.lane.b32.xlu0 %v8473_v11, %s8844_s12  ;;  %v8246_v54 = vpop.f32.mrb[207].mxu0 }
0x1a5e   :  { %v6580_v49 = vpop.f32.mrb[204].mxu1 }
0x1a5f   :  { %v6628_v31 = vpop.f32.mrb[208].mxu0  ;;  %v8251_v14 = vpop.f32.mrb[205].mxu1 }
0x1a60   :  { %v8478_v16 = vpack.i.bf16 %v6628_v31, %v6580_v49  ;;  %v8257_v46 = vpop.f32.mrb[209].mxu0  ;;  %v6583_v5 = vpop.f32.mrb[206].mxu1 }
0x1a61   :  { %v6631_v52 = vpop.f32.mrb[210].mxu0  ;;  %v8252_v56 = vpop.f32.mrb[207].mxu1 }
0x1a62   :  { %v8258_v18 = vpop.f32.mrb[211].mxu0  ;;  %8479 = vrot.lane.b32.xlu1 %v8478_v16, %s8844_s12 }
0x1a7f   :  { %v8455_v6 = vpop.permute.xlu0 %8454 }
0x1a80   :  { %v8457_v34 = vunpack.i.h.bf16 %v8455_v6  ;;  %v8456_v12 = vunpack.i.l.bf16 %v8455_v6 }
0x1a82   :  { %v6683_v60 = vsel %vm211_vm2, %v10578_v8, %v8457_v34  ;;  %v6682_v57 = vsel %vm211_vm2, %v10580_v22, %v8456_v12 }
0x1a87   :  { %v8460_v33 = vpop.permute.xlu1 %8459 }
0x1a88   :  { %v8462_v44 = vunpack.i.h.bf16 %v8460_v33  ;;  %v8461_v50 = vunpack.i.l.bf16 %v8460_v33 }
0x1a8a   :  { %v6685_v22 = vsel %vm211_vm2, %v10582_v27, %v8462_v44  ;;  %v6684_v2 = vsel %vm211_vm2, %v10584_v38, %v8461_v50  ;;  %v6699_v27 = vrot.slane %v10616_v1, %v9430_v26 }
0x1a8f   :  { %v8465_v28 = vpop.permute.xlu0 %8464 }
0x1a90   :  { %v8467_v47 = vunpack.i.h.bf16 %v8465_v28  ;;  %v8466_v24 = vunpack.i.l.bf16 %v8465_v28 }
0x1a92   :  { %v6686_v62 = vsel %vm2006_vm4, %v6682_v57, %v8466_v24  ;;  %v6687_v19 = vsel %vm2006_vm4, %v6683_v60, %v8467_v47 }
0x1a97   :  { %v8470_v25 = vpop.permute.xlu1 %8469 }
0x1a98   :  { %v8472_v43 = vunpack.i.h.bf16 %v8470_v25  ;;  %v8471_v51 = vunpack.i.l.bf16 %v8470_v25  ;;  %v8508_v25 = vld [vmem:[%s10708_s3 + $0x28] sm:$0xff]  }
0x1a9a   :  { %v6689_v61 = vsel %vm2006_vm4, %v6685_v22, %v8472_v43  ;;  %v6688_v20 = vsel %vm2006_vm4, %v6684_v2, %v8471_v51 }
0x1acc   :  { %v8475_v0 = vpop.permute.xlu0 %8474 }
0x1acd   :  { %v8477_v63 = vunpack.i.h.bf16 %v8475_v0  ;;  %v8476_v36 = vunpack.i.l.bf16 %v8475_v0 }
0x1acf   :  { %v6690_v41 = vsel %vm2011_vm5, %v6686_v62, %v8476_v36  ;;  %v6691_v10 = vsel %vm2011_vm5, %v6687_v19, %v8477_v63  ;;  %v8507_v19 = vld [vmem:[%s10708_s3 + $0x20] sm:$0xff]  }
0x1ad0   :  { %v6694_v59 = vpack.c.bf16 %v6691_v10, %v6690_v41  ;;  %8267 = vmatprep.subr.bf16.mxu0 %v8507_v19  ;;  %v8509_v41 = vld [vmem:[%s10709_s4 + $0x40] sm:$0xff]   ;;  %v8510_v10 = vld [vmem:[%s10709_s4 + $0x48] sm:$0xff]  }
0x1ad1   :  { %8268 = vmatpush3.bf16.msra.mxu0 %v8507_v19  ;;  %8275 = vmatprep.subr.bf16.mxu1 %v8509_v41 }
0x1ad2   :  { %8263 = vmatprep.mubr.msk.bf16.mxu1 %vm96_vm0, %v6694_v59  ;;  %8269 = vmatprep.subr.bf16.mxu0 %v8508_v25 }
0x1ad4   :  { %v8480_v8 = vpop.permute.xlu1 %8479 }
0x1ad5   :  { %v8482_v7 = vunpack.i.h.bf16 %v8480_v8  ;;  %v8481_v53 = vunpack.i.l.bf16 %v8480_v8  ;;  %8270 = vmatpush3.bf16.msra.mxu0 %v8508_v25 }
0x1ad7   :  { %v6693_v4 = vsel %vm2011_vm5, %v6689_v61, %v8482_v7  ;;  %v6692_v42 = vsel %vm2011_vm5, %v6688_v20, %v8481_v53 }
0x1ad8   :  { %v6695_v3 = vpack.c.bf16 %v6693_v4, %v6692_v42  ;;  %v6826_v4 = vrot.slane %v10616_v1, %v9457_v35 }
0x1ada   :  { %8264 = vmatmul.mubr.msk.bf16.vlgmr.msra.gmra.mrb[208].mxu1 %vm96_vm0, %v6695_v3 }
0x1adb   :  { %8276 = vmatpush3.bf16.msra.mxu1 %v8509_v41 }
0x1adc   :  { %8277 = vmatprep.subr.bf16.mxu1 %v8510_v10 }
0x1adf   :  { %8278 = vmatpush3.bf16.msra.mxu1 %v8510_v10 }
0x1bad   :  { %v8265_v17 = vpop.f32.mrb[208].mxu1 }
0x1bae   :  { %v6752_v38 = vpop.f32.mrb[209].mxu1  ;;  %v6761_v39 = vadd.f32 %v8265_v17, %v6699_v27 }
0x1baf   :  { %v6753_v11 = vadd.f32 %v6752_v38, %v6699_v27  ;;  %v8266_v30 = vpop.f32.mrb[210].mxu1 }
0x1bb0   :  { %v6755_v23 = vpop.f32.mrb[211].mxu1  ;;  %v6769_v54 = vadd.f32 %v6761_v39, %v10106_v32  ;;  %v6764_v49 = vadd.f32 %v8266_v30, %v6699_v27  ;;  %v6834_v39 = vrot.slane %v10616_v1, %v9462_v48  ;;  %v8511_v48 = vld [vmem:[%s10709_s4 + $0x50] sm:$0xff]  }
0x1bb1   :  { %v6767_v37 = vadd.f32 %v6753_v11, %v10099_v40  ;;  %v6756_v15 = vadd.f32 %v6755_v23, %v6699_v27  ;;  %8279 = vmatprep.subr.bf16.mxu1 %v8511_v48 }
0x1bb2   :  { %v6770_v26 = vadd.f32 %v6764_v49, %v10108_v13  ;;  %v6777_v46 = vsel %vm96_vm0, %v6769_v54, 0.0  ;;  %8280 = vmatpush3.bf16.msra.mxu1 %v8511_v48 }
0x1bb3   :  { %v6768_v31 = vadd.f32 %v6756_v15, %v10101_v29  ;;  %v6771_v14 = vsel %vm96_vm0, %v6767_v37, 0.0 }
0x1bb4   :  { %6772 = vadd.xlane.f32.xlu0 %v6771_v14  ;;  %v6780_v5 = vsel %vm96_vm0, %v6770_v26, 0.0 }
0x1bb5   :  { %v6774_v16 = vsel %vm96_vm0, %v6768_v31, 0.0 }
0x1bb6   :  { %6775 = vadd.xlane.f32.xlu1 %v6774_v16 }
0x1bb8   :  { %6778 = vadd.xlane.f32.xlu0 %v6777_v46 }
0x1bbc   :  { %6781 = vadd.xlane.f32.xlu0 %v6780_v5  ;;  %v8512_v5 = vld [vmem:[%s10709_s4 + $0x58] sm:$0xff]   ;;  %s8845_s4 = smov 32  }
0x1bbd   :  { %8281 = vmatprep.subr.bf16.mxu1 %v8512_v5 }
0x1bbe   :  { %8282 = vmatpush3.bf16.msra.mxu1 %v8512_v5 }
0x1c41   :  { %v6773_v40 = vpop.xlane.xlu0 %6772 }
0x1c42   :  { %v6783_v52 = vmul.f32 0.03125, %v6773_v40  ;;  %v6844_v40 = vrot.slane %v10616_v1, %v9476_v45  ;;  %v6921_v45 = vrot.slane %v10616_v1, %v9485_v55 }
0x1c43   :  { %v6776_v32 = vpop.xlane.xlu1 %6775 }
0x1c44   :  { %v6787_v56 = vsub.f32 %v6767_v37, %v6783_v52  ;;  %v6784_v18 = vmul.f32 0.03125, %v6776_v32 }
0x1c45   :  { %v6779_v29 = vpop.xlane.xlu0 %6778 }
0x1c46   :  { %v6788_v6 = vsub.f32 %v6768_v31, %v6784_v18  ;;  %v6785_v28 = vmul.f32 0.03125, %v6779_v29  ;;  %v6791_v34 = vmul.f32 %v6787_v56, %v6787_v56 }
0x1c48   :  { %v6789_v12 = vsub.f32 %v6769_v54, %v6785_v28  ;;  %v6795_v47 = vsel %vm96_vm0, %v6791_v34, 0.0  ;;  %v6792_v24 = vmul.f32 %v6788_v6, %v6788_v6 }
0x1c49   :  { %6796 = vadd.xlane.f32.xlu1 %v6795_v47  ;;  %v6782_v13 = vpop.xlane.xlu0 %6781 }
0x1c4a   :  { %v6786_v33 = vmul.f32 0.03125, %v6782_v13  ;;  %v6798_v0 = vsel %vm96_vm0, %v6792_v24, 0.0  ;;  %v6793_v60 = vmul.f32 %v6789_v12, %v6789_v12 }
0x1c4b   :  { %6799 = vadd.xlane.f32.xlu0 %v6798_v0 }
0x1c4c   :  { %v6790_v57 = vsub.f32 %v6770_v26, %v6786_v33  ;;  %v6801_v63 = vsel %vm96_vm0, %v6793_v60, 0.0 }
0x1c4d   :  { %6802 = vadd.xlane.f32.xlu1 %v6801_v63 }
0x1c4e   :  { %v6794_v36 = vmul.f32 %v6790_v57, %v6790_v57 }
0x1c50   :  { %v6804_v62 = vsel %vm96_vm0, %v6794_v36, 0.0 }
0x1c51   :  { %6805 = vadd.xlane.f32.xlu0 %v6804_v62 }
0x1cd6   :  { %v6797_v59 = vpop.xlane.xlu1 %6796 }
0x1cd7   :  { %v6807_v44 = vmul.f32 0.03125, %v6797_v59 }
0x1cd8   :  { %v6800_v50 = vpop.xlane.xlu0 %6799 }
0x1cd9   :  { %v6811_v43 = vadd.f32 1e-05, %v6807_v44  ;;  %v6808_v51 = vmul.f32 0.03125, %v6800_v50 }
0x1cda   :  { %v6803_v8 = vpop.xlane.xlu1 %6802 }
0x1cdb   :  { %8737 = vrsqrt.f32 %v6811_v43  ;;  %v6812_v22 = vadd.f32 1e-05, %v6808_v51  ;;  %v6809_v2 = vmul.f32 0.03125, %v6803_v8 }
0x1cdd   :  { %8739 = vrsqrt.f32 %v6812_v22  ;;  %v6813_v7 = vadd.f32 1e-05, %v6809_v2 }
0x1cde   :  { %v6806_v53 = vpop.xlane.xlu0 %6805 }
0x1cdf   :  { %8741 = vrsqrt.f32 %v6813_v7  ;;  %v6810_v61 = vmul.f32 0.03125, %v6806_v53 }
0x1ce1   :  { %v6814_v20 = vadd.f32 1e-05, %v6810_v61 }
0x1ce3   :  { %8743 = vrsqrt.f32 %v6814_v20 }
0x1ce5   :  { %v8738_v42 = vpop.eup %8737 }
0x1ce6   :  { %v6819_v3 = vmul.f32 %v8738_v42, %v6787_v56 }
0x1ce7   :  { %v8740_v27 = vpop.eup %8739 }
0x1ce8   :  { %v6820_v17 = vmul.f32 %v8740_v27, %v6788_v6  ;;  %v6827_v38 = vmul.f32 %v6826_v4, %v6819_v3 }
0x1ce9   :  { %v8742_v11 = vpop.eup %8741 }
0x1cea   :  { %v6821_v30 = vmul.f32 %v8742_v11, %v6789_v12  ;;  %v6828_v23 = vmul.f32 %v6826_v4, %v6820_v17  ;;  %v6835_v37 = vadd.f32 %v6834_v39, %v6827_v38 }
0x1cec   :  { %v6836_v15 = vadd.f32 %v6834_v39, %v6828_v23  ;;  %v6829_v49 = vmul.f32 %v6826_v4, %v6821_v30 }
0x1ced   :  { %v8744_v54 = vpop.eup %8743 }
0x1cee   :  { %v6822_v31 = vmul.f32 %v8744_v54, %v6790_v57  ;;  %v6839_v14 = vpack.c.bf16 %v6836_v15, %v6835_v37  ;;  %v6837_v35 = vadd.f32 %v6834_v39, %v6829_v49 }
0x1cf0   :  { %v6830_v16 = vmul.f32 %v6826_v4, %v6822_v31  ;;  %8271 = vmatprep.mubr.msk.bf16.mxu0 %vm96_vm0, %v6839_v14 }
0x1cf2   :  { %v6838_v26 = vadd.f32 %v6834_v39, %v6830_v16 }
0x1cf4   :  { %v6840_v46 = vpack.c.bf16 %v6838_v26, %v6837_v35 }
0x1cf6   :  { %8272 = vmatmul.mubr.msk.bf16.vlgmr.msra.gmra.mrb[212].mxu0 %vm96_vm0, %v6840_v46 }
0x1dc9   :  { %v8273_v52 = vpop.f32.mrb[212].mxu0 }
0x1dca   :  { %v6906_v32 = vadd.f32 %v8273_v52, %v6844_v40  ;;  %v6897_v56 = vpop.f32.mrb[213].mxu0 }
0x1dcb   :  { %v6898_v18 = vadd.f32 %v6897_v56, %v6844_v40  ;;  %v8274_v29 = vpop.f32.mrb[214].mxu0 }
0x1dcc   :  { %v6909_v6 = vadd.f32 %v8274_v29, %v6844_v40  ;;  %v6900_v28 = vpop.f32.mrb[215].mxu0  ;;  %v6914_v12 = vmax.f32 %v6906_v32, 0.0 }
0x1dcd   :  { %v6901_v34 = vadd.f32 %v6900_v28, %v6844_v40  ;;  %v6912_v24 = vmax.f32 %v6898_v18, 0.0  ;;  %v7060_v18 = vrot.slane %v10616_v1, %v9505_v58  ;;  %v7068_v28 = vrot.slane %v10616_v1, %v9510_v21 }
0x1dce   :  { %v6915_v47 = vmax.f32 %v6909_v6, 0.0 }
0x1dcf   :  { %v6913_v13 = vmax.f32 %v6901_v34, 0.0 }
0x1dd0   :  { %v6917_v33 = vpack.c.bf16 %v6915_v47, %v6914_v12 }
0x1dd1   :  { %v6916_v0 = vpack.c.bf16 %v6913_v13, %v6912_v24 }
0x1dd3   :  { %8283 = vmatprep.mubr.msk.bf16.mxu1 %vm2269_vm6, %v6916_v0 }
0x1dd4   :  { %8284 = vmatmul.mubr.msk.bf16.vlgmr.msra.gmra.mrb[212].mxu1 %vm2269_vm6, %v6917_v33 }
0x1ea7   :  { %v8285_v60 = vpop.f32.mrb[212].mxu1 }
0x1ea8   :  { %v6995_v57 = vadd.f32 %v8285_v60, %v6921_v45  ;;  %v6986_v63 = vpop.f32.mrb[213].mxu1 }
0x1ea9   :  { %v6987_v36 = vadd.f32 %v6986_v63, %v6921_v45  ;;  %v8286_v62 = vpop.f32.mrb[214].mxu1 }
0x1eaa   :  { %v7003_v19 = vadd.f32 %v6995_v57, %v6837_v35  ;;  %v6998_v25 = vadd.f32 %v8286_v62, %v6921_v45  ;;  %v6989_v41 = vpop.f32.mrb[215].mxu1 }
0x1eab   :  { %v6990_v10 = vadd.f32 %v6989_v41, %v6921_v45  ;;  %v7001_v59 = vadd.f32 %v6987_v36, %v6835_v37 }
0x1eac   :  { %v7004_v44 = vadd.f32 %v6998_v25, %v6838_v26  ;;  %v7011_v50 = vsel %vm96_vm0, %v7003_v19, 0.0 }
0x1ead   :  { %7012 = vadd.xlane.f32.xlu1 %v7011_v50  ;;  %v7002_v43 = vadd.f32 %v6990_v10, %v6836_v15  ;;  %v7005_v55 = vsel %vm96_vm0, %v7001_v59, 0.0 }
0x1eae   :  { %v7014_v51 = vsel %vm96_vm0, %v7004_v44, 0.0 }
0x1eaf   :  { %7015 = vadd.xlane.f32.xlu0 %v7014_v51  ;;  %v7008_v8 = vsel %vm96_vm0, %v7002_v43, 0.0 }
0x1eb1   :  { %7006 = vadd.xlane.f32.xlu1 %v7005_v55 }
0x1eb3   :  { %7009 = vadd.xlane.f32.xlu0 %v7008_v8 }
0x1f3a   :  { %v7013_v22 = vpop.xlane.xlu1 %7012 }
0x1f3b   :  { %v7019_v2 = vmul.f32 0.03125, %v7013_v22 }
0x1f3c   :  { %v7016_v7 = vpop.xlane.xlu0 %7015 }
0x1f3d   :  { %v7023_v53 = vsub.f32 %v7003_v19, %v7019_v2  ;;  %v7020_v61 = vmul.f32 0.03125, %v7016_v7 }
0x1f3e   :  { %v7007_v20 = vpop.xlane.xlu1 %7006 }
0x1f3f   :  { %v7024_v4 = vsub.f32 %v7004_v44, %v7020_v61  ;;  %v7017_v42 = vmul.f32 0.03125, %v7007_v20  ;;  %v7027_v3 = vmul.f32 %v7023_v53, %v7023_v53 }
0x1f40   :  { %v7010_v27 = vpop.xlane.xlu0 %7009 }
0x1f41   :  { %v7021_v17 = vsub.f32 %v7001_v59, %v7017_v42  ;;  %v7018_v38 = vmul.f32 0.03125, %v7010_v27  ;;  %v7035_v39 = vsel %vm96_vm0, %v7027_v3, 0.0  ;;  %v7028_v11 = vmul.f32 %v7024_v4, %v7024_v4 }
0x1f42   :  { %7036 = vadd.xlane.f32.xlu1 %v7035_v39 }
0x1f43   :  { %v7022_v30 = vsub.f32 %v7002_v43, %v7018_v38  ;;  %v7038_v23 = vsel %vm96_vm0, %v7028_v11, 0.0  ;;  %v7025_v37 = vmul.f32 %v7021_v17, %v7021_v17 }
0x1f44   :  { %7039 = vadd.xlane.f32.xlu0 %v7038_v23 }
0x1f45   :  { %v7029_v15 = vsel %vm96_vm0, %v7025_v37, 0.0  ;;  %v7026_v54 = vmul.f32 %v7022_v30, %v7022_v30 }
0x1f46   :  { %7030 = vadd.xlane.f32.xlu1 %v7029_v15 }
0x1f47   :  { %v7032_v49 = vsel %vm96_vm0, %v7026_v54, 0.0 }
0x1f48   :  { %7033 = vadd.xlane.f32.xlu0 %v7032_v49 }
0x1fcf   :  { %v7037_v31 = vpop.xlane.xlu1 %7036 }
0x1fd0   :  { %v7043_v14 = vmul.f32 0.03125, %v7037_v31 }
0x1fd1   :  { %v7040_v16 = vpop.xlane.xlu0 %7039 }
0x1fd2   :  { %v7047_v35 = vadd.f32 1e-05, %v7043_v14  ;;  %v7044_v26 = vmul.f32 0.03125, %v7040_v16 }
0x1fd3   :  { %v7031_v46 = vpop.xlane.xlu1 %7030 }
0x1fd4   :  { %8745 = vrsqrt.f32 %v7047_v35  ;;  %v7048_v48 = vadd.f32 1e-05, %v7044_v26  ;;  %v7041_v5 = vmul.f32 0.03125, %v7031_v46 }
0x1fd5   :  { %v7034_v40 = vpop.xlane.xlu0 %7033 }
0x1fd6   :  { %8747 = vrsqrt.f32 %v7048_v48  ;;  %v7045_v52 = vadd.f32 1e-05, %v7041_v5  ;;  %v7042_v32 = vmul.f32 0.03125, %v7034_v40 }
0x1fd8   :  { %8749 = vrsqrt.f32 %v7045_v52  ;;  %v7046_v56 = vadd.f32 1e-05, %v7042_v32 }
0x1fda   :  { %8751 = vrsqrt.f32 %v7046_v56 }
0x1fde   :  { %v8746_v29 = vpop.eup %8745 }
0x1fdf   :  { %v7055_v6 = vmul.f32 %v8746_v29, %v7023_v53 }
0x1fe0   :  { %v8748_v34 = vpop.eup %8747 }
0x1fe1   :  { %v7063_v12 = vmul.f32 %v7060_v18, %v7055_v6  ;;  %v7056_v47 = vmul.f32 %v8748_v34, %v7024_v4 }
0x1fe2   :  { %v8750_v24 = vpop.eup %8749 }
0x1fe3   :  { %v7071_v13 = vadd.f32 %v7068_v28, %v7063_v12  ;;  %v7064_v33 = vmul.f32 %v7060_v18, %v7056_v47  ;;  %v7053_v0 = vmul.f32 %v8750_v24, %v7021_v17 }
0x1fe4   :  { %v8752_v45 = vpop.eup %8751 }
0x1fe5   :  { %7075 = vrot.lane.b32.xlu1 %v7071_v13, %s8845_s4  ;;  %v7072_v60 = vadd.f32 %v7068_v28, %v7064_v33  ;;  %v7061_v57 = vmul.f32 %v7060_v18, %v7053_v0  ;;  %v7054_v63 = vmul.f32 %v8752_v45, %v7022_v30  ;;  %v8846_v30 = vmov 1983009808  }
0x1fe6   :  { %v7135_v23 = vunpack.c.l.s4 %v8846_v30 }
0x1fe7   :  { %7077 = vrot.lane.b32.xlu0 %v7072_v60, %s8845_s4  ;;  %v7069_v58 = vadd.f32 %v7068_v28, %v7061_v57  ;;  %v7062_v36 = vmul.f32 %v7060_v18, %v7054_v63 }
0x1fe8   :  { %v7136_v37 = vunpack.c.0.s8 %v7135_v23 }
0x1fe9   :  { %v7070_v62 = vadd.f32 %v7068_v28, %v7062_v36 }
0x1fea   :  { %v7139_v16 = vsub.s32 %v7136_v37, %v8917_v9 }
0x2057   :  { %v7076_v19 = vpop.permute.xlu1 %7075 }
0x2058   :  { %v7081_v21 = vsel %vm96_vm0, %v7069_v58, %v7076_v19 }
0x2059   :  { %v7078_v1 = vpop.permute.xlu0 %7077  ;;  %v7089_v25 = vrot.slane %v7081_v21, 1  ;;  %v7108_v41 = vrot.slane %v7081_v21, 5  ;;  %v7098_v10 = vrot.slane %v7081_v21, 3  ;;  %v7118_v59 = vrot.slane %v7081_v21, 7 }
0x205a   :  { %v7082_v44 = vsel %vm96_vm0, %v7070_v62, %v7078_v1  ;;  %v7104_v50 = vrot.slane %v7081_v21, 4  ;;  %v7094_v43 = vrot.slane %v7081_v21, 2  ;;  %v7114_v51 = vrot.slane %v7081_v21, 6 }
0x205b   :  { %v7090_v55 = vsel %vm7086_vm7, %v7082_v44, %v7089_v25  ;;  %v7109_v8 = vrot.slane %v7082_v44, 4  ;;  %v7099_v22 = vrot.slane %v7082_v44, 2  ;;  %v7119_v2 = vrot.slane %v7082_v44, 6 }
0x205c   :  { %7091 = vrot.lane.b32.xlu1 %v7090_v55, %s8842_s29  ;;  %v7085_v7 = vrot.slane %v7082_v44, 7  ;;  %v7105_v53 = vrot.slane %v7082_v44, 3  ;;  %v7095_v61 = vrot.slane %v7082_v44, 1  ;;  %v7115_v20 = vrot.slane %v7082_v44, 5 }
0x205d   :  { %v7110_v4 = vsel %vm7086_vm7, %v7109_v8, %v7108_v41  ;;  %v7100_v42 = vsel %vm7086_vm7, %v7099_v22, %v7098_v10  ;;  %v7120_v3 = vsel %vm7086_vm7, %v7119_v2, %v7118_v59 }
0x205e   :  { %7111 = vrot.lane.b32.xlu0 %v7110_v4, %s8842_s29  ;;  %v7087_v27 = vsel %vm7086_vm7, %v7085_v7, %v7081_v21  ;;  %v7106_v17 = vsel %vm7086_vm7, %v7105_v53, %v7104_v50  ;;  %v7096_v38 = vsel %vm7086_vm7, %v7095_v61, %v7094_v43  ;;  %v7116_v39 = vsel %vm7086_vm7, %v7115_v20, %v7114_v51 }
0x2060   :  { %7101 = vrot.lane.b32.xlu1 %v7100_v42, %s8842_s29 }
0x2064   :  { %7121 = vrot.lane.b32.xlu1 %v7120_v3, %s8842_s29  ;;  %s8847_s29 = smov [#allocation7]  }
0x2065   :  { %s7157_s19 = sshll.u32 %s8847_s29, 4  ;;  %s7158_s19 = int_to_ptr.vmem [resolvable:$true] %s7157_s19 }
0x2066   :  { %s8804_s20 = scalar_lea.vmem %s7158_s19, 128  ;;  %p8809_p3 = scmp.lt.s32.totalorder %s7158_s19, %s7158_s19 }
0x2067   :  { %p8805_p2 = scmp.ne.s32.totalorder %s7158_s19, %s8804_s20  ;;  %p8810_p4 = scmp.lt.s32.totalorder %s8804_s20, %s8804_s20 }
0x2069   :  { %p8811_p5 = por %p8810_p4, %p8809_p3 }
0x206b   :  { %p8812_p6 = pnand %p8811_p5, %p8805_p2 }
0x20ce   :  { %v7092_v11 = vpop.permute.xlu1 %7091 }
0x20cf   :  { %v7124_v54 = vsel %vm2269_vm6, %v7087_v27, %v7092_v11 }
0x20d0   :  { %v7112_v31 = vpop.permute.xlu0 %7111 }
0x20d1   :  { %v7126_v26 = vsel %vm2269_vm6, %v7106_v17, %v7112_v31 }
0x20d2   :  { %v7102_v15 = vpop.permute.xlu1 %7101 }
0x20d3   :  { %v7125_v49 = vsel %vm2269_vm6, %v7096_v38, %v7102_v15 }
0x20d4   :  { %v7132_v14 = vcombine.low %v7124_v54, %v7125_v49 }
0x20d6   :  { %v7122_v35 = vpop.permute.xlu1 %7121  ;;  %v7140_v5 = vrot.slane %v7132_v14, %v7139_v16 }
0x20d7   :  { %v7127_v46 = vsel %vm2269_vm6, %v7116_v39, %v7122_v35 }
0x20d8   :  { %v7133_v48 = vcombine.low %v7126_v26, %v7127_v46 }
0x20da   :  { %v7147_v40 = vrot.slane %v7133_v48, %v7139_v16 }
0x20dc   :  { %v7148_v52 = vcombine.low %v7140_v5, %v7147_v40 }
0x20de   :  { %7150 = vst [vmem:[#allocation7] sm:$0xff] %v7148_v52 }
0x20df   :  { %8815 = shalt.err (!%p8812_p6)
}
0x20e0   :  { %s8816_s22 = scalar_lea.hbm %s10711_s6, 128 }
0x20e1   :  { %p8817_p7 = scmp.ne.s32.totalorder %s10711_s6, %s8816_s22  ;;  %p8820_p8 = scmp.lt.u32.totalorder %s8816_s22, %s10711_s6 }
0x20e3   :  { %p8822_p9 = pnand %p8820_p8, %p8817_p7 }
0x20e5   :  { %8825 = shalt.err (!%p8822_p9)
}
0x20e6   :  { %7160 = dma.vmem_to_hbm [thread:$0]  %s7158_s19, 128, %s10711_s6, [#allocation4]  }
0x20e7   :  { %8830 = dma.done.wait [#allocation4], 128  }
0x20e8   :  { %8831 = vsyncadd [#allocation4], 4294967168 }
0x20e9   :  { %7164 = vsyncpa [#allocation3], 1 }
0x20ea   :  { %7165 = vsyncpa [#allocation6], 1 }
0x20eb   :  { %7166 = vsyncpa [#allocation4], 1 }

</bundles_post_ra>
